<compile_context>
chip_gen: v5e
topology: v5e:2x2
jax: 0.10.0
libtpu: 0.0.40
codegen_flags: <defaults>
</compile_context>

<pallas_src>
import math

import jax
import jax.numpy as jnp
import numpy as np
from jax.experimental import pallas as pl
from jax.experimental.pallas import tpu as pltpu


HOUT = WOUT = 16            # 32x32 -> 16x16 after 2x2 max-pool
COUT = 16
CIN = 3
K = 3 * 3 * CIN             # 27 im2col taps, ordered (kh, kw, cin)
NSPAT = HOUT * WOUT         # 256 pooled spatial positions per image
NTAP = 4                    # 2x2 pool taps
FC_IN = COUT * NSPAT        # 4096
FC_OUT = 10
FC_OUT_PAD = 128            # lane-pad the fc output for dense full-lane stores


# ------------------------------ Pallas kernel --------------------------------

def fused_cnn_kernel(p_ref, cw_ref, cb_ref, fw_ref, fb_ref, o_ref):
    """conv3x3 (as matmul) + 2x2 maxpool + bias + ReLU + fc for TB images per grid step.

    p_ref : (1, 27, 4*TB*256) bf16  im2col patches^T; col = tap*(TB*256) + i*256 + (h*16+w)
    cw_ref: (16, 27)          bf16  conv weight^T, k ordered (kh, kw, cin)
    cb_ref: (16, 1)           f32   conv bias (per output channel)
    fw_ref: (4096, 128)       bf16  fc weight^T, rows ordered c*256 + h*16 + w (cols padded)
    fb_ref: (1, 128)          f32   fc bias (zero-padded)
    o_ref : (1, TB, 128)      f32   logits per image (padded to 128 lanes)
    """
    ncols = p_ref.shape[2]
    nlane = ncols // NTAP            # TB * 256
    tb = nlane // NSPAT              # images in this block

    # --- conv: one long-N MXU push: (16,27) @ (27, 4*TB*256) -> (16, 4*TB*256), f32 acc
    s = jnp.dot(cw_ref[...], p_ref[0], preferred_element_type=jnp.float32)

    # --- 2x2 max-pool = max over the 4 tap slices (lane-aligned, width TB*256)
    pooled = jnp.maximum(
        jnp.maximum(s[:, 0 * nlane:1 * nlane], s[:, 1 * nlane:2 * nlane]),
        jnp.maximum(s[:, 2 * nlane:3 * nlane], s[:, 3 * nlane:4 * nlane]))
    # bias after pool (commutes with per-channel max), then ReLU: (16, TB*256)
    pooled = jnp.maximum(pooled + cb_ref[...], 0.0)

    # --- relayout (channels-on-sublanes) -> (images-on-sublanes, c*256+p on lanes)
    p3 = pooled.reshape(COUT, tb, NSPAT)                               # (16, TB, 256)
    fc_lhs = jnp.concatenate([p3[c] for c in range(COUT)], axis=1)     # (TB, 4096) f32
    fc_lhs = fc_lhs.astype(jnp.bfloat16)                               # single bulk cast

    # --- fused fc: one (TB,4096) @ (4096,128) matmul, K accumulates inside the MXU
    out = jnp.dot(fc_lhs, fw_ref[...], preferred_element_type=jnp.float32) + fb_ref[...]
    o_ref[...] = out[None]


# --------------------------------- wrapper ------------------------------------

def _pick_tb(batch):
    # biggest batch tile in {32,16,8} that still leaves >= 2 grid blocks (v7x megacore);
    # tiny batches fall back to TB=8 (grid of 1 block).
    for tb in (32, 16, 8):
        if batch >= 2 * tb:
            return tb
    return 8


def big_cnn_forward(x, conv_w, conv_b, fc_w, fc_b):
    """x: (B, 3, 32, 32) float32 NCHW, matching the PyTorch module."""
    B = x.shape[0]
    assert x.shape[1:] == (CIN, 2 * HOUT, 2 * WOUT)
    TB = _pick_tb(B)
    nblk = pl.cdiv(B, TB)
    bp = nblk * TB

    # ---- glue: im2col patches with (tap, image, position) column order, bf16 ----
    xb = x.astype(jnp.bfloat16)
    if bp != B:
        xb = jnp.pad(xb, ((0, bp - B), (0, 0), (0, 0), (0, 0)))
    xpad = jnp.pad(xb, ((0, 0), (0, 0), (1, 1), (1, 1)))               # (BP, 3, 34, 34)
    chunks = []
    for kh in range(3):
        for kw in range(3):
            win = xpad[:, :, kh:kh + 2 * HOUT, kw:kw + 2 * WOUT]        # (BP, 3, 32, 32)
            win = win.reshape(bp, CIN, HOUT, 2, WOUT, 2)                # (b, ci, h, dy, w, dx)
            win = win.transpose(1, 3, 5, 0, 2, 4)                       # (ci, dy, dx, b, h, w)
            chunks.append(win.reshape(CIN, NTAP, nblk, TB, NSPAT))
    patches = jnp.stack(chunks, axis=0)                                 # (9, ci, tap, blk, i, p)
    patches = patches.transpose(3, 0, 1, 2, 4, 5)                       # (blk, khw, ci, tap, i, p)
    patches = patches.reshape(nblk, K, NTAP * TB * NSPAT)               # k = kh*9 + kw*3 + ci

    # conv weight (O, I, kh, kw) -> (O, kh, kw, I) -> (16, 27), matching patch k-order
    cw = jnp.transpose(conv_w, (0, 2, 3, 1)).reshape(COUT, K).astype(jnp.bfloat16)
    cb = conv_b.reshape(COUT, 1).astype(jnp.float32)

    # fc weight (10, 4096): flat index c*256 + h*16 + w == the kernel's fc_lhs lane order
    fw = jnp.pad(fc_w.T, ((0, 0), (0, FC_OUT_PAD - FC_OUT))).astype(jnp.bfloat16)   # (4096, 128)
    fbias = jnp.pad(fc_b, (0, FC_OUT_PAD - FC_OUT)).reshape(1, FC_OUT_PAD).astype(jnp.float32)

    out_padded = pl.pallas_call(
        fused_cnn_kernel,
        out_shape=jax.ShapeDtypeStruct((nblk, TB, FC_OUT_PAD), jnp.float32),
        grid_spec=pltpu.PrefetchScalarGridSpec(
            num_scalar_prefetch=0,
            grid=(nblk,),
            in_specs=[
                pl.BlockSpec((1, K, NTAP * TB * NSPAT), lambda b: (b, 0, 0)),   # patches
                # constant index maps: fetched once, not re-streamed per step
                pl.BlockSpec((COUT, K), lambda b: (0, 0)),                      # conv weight^T
                pl.BlockSpec((COUT, 1), lambda b: (0, 0)),                      # conv bias
                pl.BlockSpec((FC_IN, FC_OUT_PAD), lambda b: (0, 0)),            # fc weight
                pl.BlockSpec((1, FC_OUT_PAD), lambda b: (0, 0)),                # fc bias
            ],
            out_specs=pl.BlockSpec((1, TB, FC_OUT_PAD), lambda b: (b, 0, 0)),
        ),
        compiler_params=pltpu.CompilerParams(
            dimension_semantics=("parallel",),          # v7x: 2 TCs split the batch blocks
            vmem_limit_bytes=32 * 1024 * 1024,
        ),
    )(patches, cw, cb, fw, fbias)

    return out_padded.reshape(bp, FC_OUT_PAD)[:B, :FC_OUT]


# ----------------------------- pure-JAX reference -----------------------------

def reference(x, conv_w, conv_b, fc_w, fc_b):
    y = jax.lax.conv_general_dilated(
        x, conv_w, window_strides=(1, 1), padding="SAME",
        dimension_numbers=("NCHW", "OIHW", "NCHW"))
    y = y + conv_b[None, :, None, None]
    y = jnp.maximum(y, 0.0)
    B, C, H, W = y.shape
    y = y.reshape(B, C, H // 2, 2, W // 2, 2).max(axis=(3, 5))
    y = y.reshape(B, -1)
    return y @ fc_w.T + fc_b


# ------------------------------------ main -------------------------------------

if __name__ == "__main__":
    key = jax.random.PRNGKey(0)
    k1, k2, k3, k4, k5 = jax.random.split(key, 5)

    # deterministic parameter init (PyTorch-default-style uniform bounds)
    bc = 1.0 / math.sqrt(CIN * 3 * 3)
    conv_w = jax.random.uniform(k1, (COUT, CIN, 3, 3), minval=-bc, maxval=bc,
                                dtype=jnp.float32)
    conv_b = jax.random.uniform(k2, (COUT,), minval=-bc, maxval=bc, dtype=jnp.float32)
    bfc = 1.0 / math.sqrt(COUT * HOUT * WOUT)
    fc_w = jax.random.uniform(k3, (FC_OUT, COUT * HOUT * WOUT), minval=-bfc, maxval=bfc,
                              dtype=jnp.float32)
    fc_b = jax.random.uniform(k4, (FC_OUT,), minval=-bfc, maxval=bfc, dtype=jnp.float32)

    # input: batch=2, 3x32x32 (spatial size implied by fc = 16*16*16 after pool)
    x = jax.random.normal(k5, (2, CIN, 2 * HOUT, 2 * WOUT), dtype=jnp.float32)

    fwd = jax.jit(big_cnn_forward)
    out = jax.block_until_ready(fwd(x, conv_w, conv_b, fc_w, fc_b))

    ref = jax.block_until_ready(reference(x, conv_w, conv_b, fc_w, fc_b))
    np.testing.assert_allclose(np.asarray(out), np.asarray(ref), rtol=2e-2, atol=2e-2)

    print("KERNEL_OK")
</pallas_src>

<mosaic_0001>
module attributes {stable_mosaic.version = 11 : i64} {
  func.func @fused_cnn_kernel(%arg0: i32, %arg1: memref<1x27x8192xbf16, #tpu.memory_space<vmem>>, %arg2: memref<16x27xbf16, #tpu.memory_space<vmem>>, %arg3: memref<16x1xf32, #tpu.memory_space<vmem>>, %arg4: memref<4096x128xbf16, #tpu.memory_space<vmem>>, %arg5: memref<1x128xf32, #tpu.memory_space<vmem>>, %arg6: memref<1x8x128xf32, #tpu.memory_space<vmem>>) attributes {dimension_semantics = [#tpu.dimension_semantics<parallel>], iteration_bounds = array<i64: 1>, scalar_prefetch = 0 : i64, scratch_operands = 0 : i64, tpu.core_type = #tpu.core_type<tc>, window_params = [{transform_indices = @transform_0, window_bounds = array<i64: 1, 27, 8192>}, {pipeline_mode = #tpu.pipeline_mode<synchronous>, transform_indices = @transform_1, window_bounds = array<i64: 16, 27>}, {pipeline_mode = #tpu.pipeline_mode<synchronous>, transform_indices = @transform_2, window_bounds = array<i64: 16, 1>}, {pipeline_mode = #tpu.pipeline_mode<synchronous>, transform_indices = @transform_3, window_bounds = array<i64: 4096, 128>}, {pipeline_mode = #tpu.pipeline_mode<synchronous>, transform_indices = @transform_4, window_bounds = array<i64: 1, 128>}, {transform_indices = @transform_5, window_bounds = array<i64: 1, 8, 128>}]} {
    %c0 = arith.constant 0 : index
    %c0_0 = arith.constant 0 : index
    %0 = vector.load %arg2[%c0, %c0_0] : memref<16x27xbf16, #tpu.memory_space<vmem>>, vector<16x27xbf16>
    %c0_1 = arith.constant 0 : index
    %c0_2 = arith.constant 0 : index
    %c0_3 = arith.constant 0 : index
    %1 = vector.load %arg1[%c0_1, %c0_2, %c0_3] : memref<1x27x8192xbf16, #tpu.memory_space<vmem>>, vector<1x27x8192xbf16>
    %2 = vector.shape_cast %1 : vector<1x27x8192xbf16> to vector<27x8192xbf16>
    %cst = arith.constant dense<0.000000e+00> : vector<16x8192xf32>
    %3 = tpu.matmul %0, %2, %cst {dimension_numbers = #tpu.dot_dimension_numbers<[1], [0], [0], [1], [0, 0, 1, 1], [], []>} : vector<16x27xbf16>, vector<27x8192xbf16>, vector<16x8192xf32> -> vector<16x8192xf32>
    %4 = vector.extract_strided_slice %3 {offsets = [0, 0], sizes = [16, 2048], strides = [1, 1]} : vector<16x8192xf32> to vector<16x2048xf32>
    %5 = vector.extract_strided_slice %3 {offsets = [0, 2048], sizes = [16, 2048], strides = [1, 1]} : vector<16x8192xf32> to vector<16x2048xf32>
    %6 = arith.maximumf %4, %5 : vector<16x2048xf32>
    %7 = vector.extract_strided_slice %3 {offsets = [0, 4096], sizes = [16, 2048], strides = [1, 1]} : vector<16x8192xf32> to vector<16x2048xf32>
    %8 = vector.extract_strided_slice %3 {offsets = [0, 6144], sizes = [16, 2048], strides = [1, 1]} : vector<16x8192xf32> to vector<16x2048xf32>
    %9 = arith.maximumf %7, %8 : vector<16x2048xf32>
    %10 = arith.maximumf %6, %9 : vector<16x2048xf32>
    %c0_4 = arith.constant 0 : index
    %c0_5 = arith.constant 0 : index
    %11 = vector.load %arg3[%c0_4, %c0_5] : memref<16x1xf32, #tpu.memory_space<vmem>>, vector<16x1xf32>
    %12 = vector.broadcast %11 : vector<16x1xf32> to vector<16x2048xf32>
    %13 = arith.addf %10, %12 : vector<16x2048xf32>
    %cst_6 = arith.constant 0.000000e+00 : f32
    %14 = vector.broadcast %cst_6 : f32 to vector<16x2048xf32>
    %15 = arith.maximumf %13, %14 : vector<16x2048xf32>
    %16 = vector.shape_cast %15 : vector<16x2048xf32> to vector<16x8x256xf32>
    %17 = vector.extract_strided_slice %16 {offsets = [0, 0, 0], sizes = [1, 8, 256], strides = [1, 1, 1]} : vector<16x8x256xf32> to vector<1x8x256xf32>
    %18 = vector.shape_cast %17 : vector<1x8x256xf32> to vector<8x256xf32>
    %19 = vector.extract_strided_slice %16 {offsets = [1, 0, 0], sizes = [1, 8, 256], strides = [1, 1, 1]} : vector<16x8x256xf32> to vector<1x8x256xf32>
    %20 = vector.shape_cast %19 : vector<1x8x256xf32> to vector<8x256xf32>
    %21 = vector.extract_strided_slice %16 {offsets = [2, 0, 0], sizes = [1, 8, 256], strides = [1, 1, 1]} : vector<16x8x256xf32> to vector<1x8x256xf32>
    %22 = vector.shape_cast %21 : vector<1x8x256xf32> to vector<8x256xf32>
    %23 = vector.extract_strided_slice %16 {offsets = [3, 0, 0], sizes = [1, 8, 256], strides = [1, 1, 1]} : vector<16x8x256xf32> to vector<1x8x256xf32>
    %24 = vector.shape_cast %23 : vector<1x8x256xf32> to vector<8x256xf32>
    %25 = vector.extract_strided_slice %16 {offsets = [4, 0, 0], sizes = [1, 8, 256], strides = [1, 1, 1]} : vector<16x8x256xf32> to vector<1x8x256xf32>
    %26 = vector.shape_cast %25 : vector<1x8x256xf32> to vector<8x256xf32>
    %27 = vector.extract_strided_slice %16 {offsets = [5, 0, 0], sizes = [1, 8, 256], strides = [1, 1, 1]} : vector<16x8x256xf32> to vector<1x8x256xf32>
    %28 = vector.shape_cast %27 : vector<1x8x256xf32> to vector<8x256xf32>
    %29 = vector.extract_strided_slice %16 {offsets = [6, 0, 0], sizes = [1, 8, 256], strides = [1, 1, 1]} : vector<16x8x256xf32> to vector<1x8x256xf32>
    %30 = vector.shape_cast %29 : vector<1x8x256xf32> to vector<8x256xf32>
    %31 = vector.extract_strided_slice %16 {offsets = [7, 0, 0], sizes = [1, 8, 256], strides = [1, 1, 1]} : vector<16x8x256xf32> to vector<1x8x256xf32>
    %32 = vector.shape_cast %31 : vector<1x8x256xf32> to vector<8x256xf32>
    %33 = vector.extract_strided_slice %16 {offsets = [8, 0, 0], sizes = [1, 8, 256], strides = [1, 1, 1]} : vector<16x8x256xf32> to vector<1x8x256xf32>
    %34 = vector.shape_cast %33 : vector<1x8x256xf32> to vector<8x256xf32>
    %35 = vector.extract_strided_slice %16 {offsets = [9, 0, 0], sizes = [1, 8, 256], strides = [1, 1, 1]} : vector<16x8x256xf32> to vector<1x8x256xf32>
    %36 = vector.shape_cast %35 : vector<1x8x256xf32> to vector<8x256xf32>
    %37 = vector.extract_strided_slice %16 {offsets = [10, 0, 0], sizes = [1, 8, 256], strides = [1, 1, 1]} : vector<16x8x256xf32> to vector<1x8x256xf32>
    %38 = vector.shape_cast %37 : vector<1x8x256xf32> to vector<8x256xf32>
    %39 = vector.extract_strided_slice %16 {offsets = [11, 0, 0], sizes = [1, 8, 256], strides = [1, 1, 1]} : vector<16x8x256xf32> to vector<1x8x256xf32>
    %40 = vector.shape_cast %39 : vector<1x8x256xf32> to vector<8x256xf32>
    %41 = vector.extract_strided_slice %16 {offsets = [12, 0, 0], sizes = [1, 8, 256], strides = [1, 1, 1]} : vector<16x8x256xf32> to vector<1x8x256xf32>
    %42 = vector.shape_cast %41 : vector<1x8x256xf32> to vector<8x256xf32>
    %43 = vector.extract_strided_slice %16 {offsets = [13, 0, 0], sizes = [1, 8, 256], strides = [1, 1, 1]} : vector<16x8x256xf32> to vector<1x8x256xf32>
    %44 = vector.shape_cast %43 : vector<1x8x256xf32> to vector<8x256xf32>
    %45 = vector.extract_strided_slice %16 {offsets = [14, 0, 0], sizes = [1, 8, 256], strides = [1, 1, 1]} : vector<16x8x256xf32> to vector<1x8x256xf32>
    %46 = vector.shape_cast %45 : vector<1x8x256xf32> to vector<8x256xf32>
    %47 = vector.extract_strided_slice %16 {offsets = [15, 0, 0], sizes = [1, 8, 256], strides = [1, 1, 1]} : vector<16x8x256xf32> to vector<1x8x256xf32>
    %48 = vector.shape_cast %47 : vector<1x8x256xf32> to vector<8x256xf32>
    %49 = tpu.concatenate %18, %20, %22, %24, %26, %28, %30, %32, %34, %36, %38, %40, %42, %44, %46, %48 in 1 : vector<8x256xf32>, vector<8x256xf32>, vector<8x256xf32>, vector<8x256xf32>, vector<8x256xf32>, vector<8x256xf32>, vector<8x256xf32>, vector<8x256xf32>, vector<8x256xf32>, vector<8x256xf32>, vector<8x256xf32>, vector<8x256xf32>, vector<8x256xf32>, vector<8x256xf32>, vector<8x256xf32>, vector<8x256xf32> -> vector<8x4096xf32>
    %50 = arith.truncf %49 : vector<8x4096xf32> to vector<8x4096xbf16>
    %c0_7 = arith.constant 0 : index
    %c0_8 = arith.constant 0 : index
    %51 = vector.load %arg4[%c0_7, %c0_8] : memref<4096x128xbf16, #tpu.memory_space<vmem>>, vector<4096x128xbf16>
    %cst_9 = arith.constant dense<0.000000e+00> : vector<8x128xf32>
    %52 = tpu.matmul %50, %51, %cst_9 {dimension_numbers = #tpu.dot_dimension_numbers<[1], [0], [0], [1], [0, 0, 1, 1], [], []>} : vector<8x4096xbf16>, vector<4096x128xbf16>, vector<8x128xf32> -> vector<8x128xf32>
    %c0_10 = arith.constant 0 : index
    %c0_11 = arith.constant 0 : index
    %53 = vector.load %arg5[%c0_10, %c0_11] : memref<1x128xf32, #tpu.memory_space<vmem>>, vector<1x128xf32>
    %54 = vector.broadcast %53 : vector<1x128xf32> to vector<8x128xf32>
    %55 = arith.addf %52, %54 : vector<8x128xf32>
    %56 = vector.shape_cast %55 : vector<8x128xf32> to vector<1x8x128xf32>
    %c0_12 = arith.constant 0 : index
    %c0_13 = arith.constant 0 : index
    %c0_14 = arith.constant 0 : index
    %57 = vector.load %arg6[%c0_12, %c0_13, %c0_14] : memref<1x8x128xf32, #tpu.memory_space<vmem>>, vector<1x8x128xf32>
    tpu.vector_store %arg6[%c0_12, %c0_13, %c0_14], %56 {strides = array<i32>} : memref<1x8x128xf32, #tpu.memory_space<vmem>>, vector<1x8x128xf32>,
    return
  }
  func.func @transform_0(%arg0: i32) -> (i32, i32, i32) {
    %c0_i32 = arith.constant 0 : i32
    %c0_i32_0 = arith.constant 0 : i32
    %c0_i32_1 = arith.constant 0 : i32
    return %arg0, %c0_i32, %c0_i32_0 : i32, i32, i32
  }
  func.func @transform_1(%arg0: i32) -> (i32, i32) {
    %c0_i32 = arith.constant 0 : i32
    %c0_i32_0 = arith.constant 0 : i32
    %c0_i32_1 = arith.constant 0 : i32
    return %c0_i32, %c0_i32_0 : i32, i32
  }
  func.func @transform_2(%arg0: i32) -> (i32, i32) {
    %c0_i32 = arith.constant 0 : i32
    %c0_i32_0 = arith.constant 0 : i32
    %c0_i32_1 = arith.constant 0 : i32
    return %c0_i32, %c0_i32_0 : i32, i32
  }
  func.func @transform_3(%arg0: i32) -> (i32, i32) {
    %c0_i32 = arith.constant 0 : i32
    %c0_i32_0 = arith.constant 0 : i32
    %c0_i32_1 = arith.constant 0 : i32
    return %c0_i32, %c0_i32_0 : i32, i32
  }
  func.func @transform_4(%arg0: i32) -> (i32, i32) {
    %c0_i32 = arith.constant 0 : i32
    %c0_i32_0 = arith.constant 0 : i32
    %c0_i32_1 = arith.constant 0 : i32
    return %c0_i32, %c0_i32_0 : i32, i32
  }
  func.func @transform_5(%arg0: i32) -> (i32, i32, i32) {
    %c0_i32 = arith.constant 0 : i32
    %c0_i32_0 = arith.constant 0 : i32
    %c0_i32_1 = arith.constant 0 : i32
    return %arg0, %c0_i32, %c0_i32_0 : i32, i32, i32
  }
}

</mosaic_0001>

<bundles_post_ra>
// kernel: big_cnn_forward.1
= control target key start
LH: loop header
LB: loop body
LE: loop exit
PB: predicated region body
PF: predicated region fallthrough
CT: control target
= control target key end

     0   :  { %vm736_vm0 = vcmask 1044480   ;;  %vm737_vm1 = vcmask 1045504   ;;  %v6950_v2 = vmov 65535   ;;  %vm732_vm2 = vcmask 220160   ;;  %s9722_s0 = inlined_call_operand.vmem [shape: bf16[1,27,8192], index: 0, kind: input, shape index: {}]   ;;  %s9723_s1 = inlined_call_operand.vmem [shape: bf16[16,27], index: 1, kind: input, shape index: {}]   ;;  %s9724_s2 = inlined_call_operand.vmem [shape: f32[16,1], index: 2, kind: input, shape index: {}]   ;;  %s9725_s3 = inlined_call_operand.vmem [shape: bf16[4096,128], index: 3, kind: input, shape index: {}]   ;;  %s9726_s4 = inlined_call_operand.vmem [shape: f32[1,128], index: 4, kind: input, shape index: {}]   ;;  %s9727_s5 = inlined_call_operand.vmem [shape: f32[1,8,128], index: 5, kind: output, shape index: {}]  }
   0x1   :  { %v5216_v0 = vld [vmem:[%s9722_s0 + $0x200] sm:$0xf]  ;;  %v738_v3 = vsel %vm736_vm0, 4294967295, %v6950_v2  ;;  %v6623_v6 = vld [vmem:[%s9722_s0 + $0x204] sm:$0xf]  ;;  %vm2001_vm3 = vcmask 1047556  }
   0x2   :  { %v6655_v1 = vld [vmem:[%s9722_s0 + $0x2fc] sm:$0x30]  ;;  %v6990_v5 = vsel %vm737_vm1, %v738_v3, 0  ;;  %v5218_v7 = vld [vmem:[%s9722_s0 + $0x300] sm:$0x30] }
   0x3   :  { %v5217_v4 = vor.u32 %v6655_v1, %v5216_v0  ;;  %v5221_v8 = vor.u32 %v6623_v6, %v5218_v7  ;;  %v5224_v9 = vld [vmem:[%s9722_s0 + $0x208] sm:$0xf]  ;;  %v6624_v11 = vld [vmem:[%s9722_s0 + $0x20c] sm:$0xf]  ;;  %v4960_v15 = vld [vmem:[%s9722_s0] sm:$0xf] }
   0x4   :  { %v6656_v10 = vld [vmem:[%s9722_s0 + $0x304] sm:$0x30]  ;;  %v5226_v14 = vld [vmem:[%s9722_s0 + $0x308] sm:$0x30]  ;;  %v6591_v16 = vld [vmem:[%s9722_s0 + $0xfc] sm:$0xf0] }
   0x5   :  { %v741_v12 = vand.u32 %v5217_v4, %v6990_v5  ;;  %v5225_v13 = vor.u32 %v6656_v10, %v5224_v9  ;;  %v744_v17 = vand.u32 %v5221_v8, %v6990_v5  ;;  %v5229_v18 = vor.u32 %v6624_v11, %v5226_v14  ;;  %v6559_v19 = vld [vmem:[%s9722_s0 + $0x4] sm:$0xf]  ;;  %v4968_v21 = vld [vmem:[%s9722_s0 + $0x8] sm:$0xf]  ;;  %v6560_v25 = vld [vmem:[%s9722_s0 + $0xc] sm:$0xf] }
   0x6   :  { %v4962_v20 = vld [vmem:[%s9722_s0 + $0x100] sm:$0xf0]  ;;  %v4961_v23 = vor.u32 %v6591_v16, %v4960_v15  ;;  %v6592_v24 = vld [vmem:[%s9722_s0 + $0x104] sm:$0xf0]  ;;  %v4970_v26 = vld [vmem:[%s9722_s0 + $0x108] sm:$0xf0] }
   0x7   :  { %938 = vmatpush.bf16.msra.mxu0 %v741_v12  ;;  %v747_v22 = vand.u32 %v5225_v13, %v6990_v5  ;;  %952 = vmatpush.bf16.msra.mxu1 %v744_v17  ;;  %v750_v27 = vand.u32 %v5229_v18, %v6990_v5  ;;  %v4965_v28 = vor.u32 %v6559_v19, %v4962_v20  ;;  %v7041_v29 = vld [vmem:[%s9723_s1] sm:$0xff]  ;;  %v5232_v30 = vld [vmem:[%s9722_s0 + $0x210] sm:$0xf]  ;;  %v6625_v32 = vld [vmem:[%s9722_s0 + $0x214] sm:$0xf] }
   0x8   :  { %v6657_v31 = vld [vmem:[%s9722_s0 + $0x30c] sm:$0x30]  ;;  %v4969_v33 = vor.u32 %v6592_v24, %v4968_v21  ;;  %v5234_v35 = vld [vmem:[%s9722_s0 + $0x310] sm:$0x30]  ;;  %v5240_v36 = vld [vmem:[%s9722_s0 + $0x218] sm:$0xf]  ;;  %v4973_v38 = vor.u32 %v6560_v25, %v4970_v26 }
   0x9   :  { %966 = vmatpush.bf16.msra.mxu2 %v747_v22  ;;  %v5233_v34 = vor.u32 %v6657_v31, %v5232_v30  ;;  %v6658_v37 = vld [vmem:[%s9722_s0 + $0x314] sm:$0x30]  ;;  %980 = vmatpush.bf16.msra.mxu3 %v750_v27  ;;  %v5237_v39 = vor.u32 %v6625_v32, %v5234_v35  ;;  %v6626_v41 = vld [vmem:[%s9722_s0 + $0x21c] sm:$0xf]  ;;  %v4976_v43 = vld [vmem:[%s9722_s0 + $0x10] sm:$0xf] }
   0xa   :  { %v5241_v40 = vor.u32 %v6658_v37, %v5240_v36  ;;  %v5242_v42 = vld [vmem:[%s9722_s0 + $0x318] sm:$0x30]  ;;  %v6593_v46 = vld [vmem:[%s9722_s0 + $0x10c] sm:$0xf0]  ;;  %v6561_v47 = vld [vmem:[%s9722_s0 + $0x14] sm:$0xf] }
   0xb   :  { %939 = vmatpush.bf16.msra.mxu0 %v4961_v23  ;;  %v753_v44 = vand.u32 %v5233_v34, %v6990_v5  ;;  %v5245_v45 = vor.u32 %v6626_v41, %v5242_v42  ;;  %953 = vmatpush.bf16.msra.mxu1 %v4965_v28  ;;  %v756_v48 = vand.u32 %v5237_v39, %v6990_v5  ;;  %v4978_v50 = vld [vmem:[%s9722_s0 + $0x110] sm:$0xf0]  ;;  %v4984_v51 = vld [vmem:[%s9722_s0 + $0x18] sm:$0xf]  ;;  %v6562_v54 = vld [vmem:[%s9722_s0 + $0x1c] sm:$0xf] }
   0xc   :  { %v759_v49 = vand.u32 %v5241_v40, %v6990_v5  ;;  %v6594_v52 = vld [vmem:[%s9722_s0 + $0x114] sm:$0xf0]  ;;  %v4977_v53 = vor.u32 %v6593_v46, %v4976_v43  ;;  %v4986_v55 = vld [vmem:[%s9722_s0 + $0x118] sm:$0xf0]  ;;  %v5248_v56 = vld [vmem:[%s9722_s0 + $0x220] sm:$0xf]  ;;  %v4981_v63 = vor.u32 %v6561_v47, %v4978_v50 }
   0xd   :  { %967 = vmatpush.bf16.msra.mxu2 %v4969_v33  ;;  %v6659_v57 = vld [vmem:[%s9722_s0 + $0x31c] sm:$0x30]  ;;  %981 = vmatpush.bf16.msra.mxu3 %v4973_v38  ;;  %v762_v58 = vand.u32 %v5245_v45, %v6990_v5  ;;  %v6627_v60 = vld [vmem:[%s9722_s0 + $0x224] sm:$0xf]  ;;  %v5256_v62 = vld [vmem:[%s9722_s0 + $0x228] sm:$0xf]  ;;  %v4985_v0 = vor.u32 %v6594_v52, %v4984_v51  ;;  %v4989_v14 = vor.u32 %v6562_v54, %v4986_v55 }
   0xe   :  { %5470 = vmatmul.msk.bf16.vlgmr.msra.gmra.mxu0 %vm732_vm2, %v7041_v29  ;;  %v5249_v59 = vor.u32 %v6659_v57, %v5248_v56  ;;  %v5250_v61 = vld [vmem:[%s9722_s0 + $0x320] sm:$0x30]  ;;  %5471 = vmatmul.msk.bf16.vlgmr.msra.gmra.mxu1 %vm732_vm2, %v7041_v29  ;;  %v6660_v2 = vld [vmem:[%s9722_s0 + $0x324] sm:$0x30]  ;;  %v6628_v3 = vld [vmem:[%s9722_s0 + $0x22c] sm:$0xf] }
   0xf   :  { %994 = vmatpush.bf16.msrb.mxu0 %v753_v44  ;;  %v5253_v1 = vor.u32 %v6627_v60, %v5250_v61  ;;  %v5258_v4 = vld [vmem:[%s9722_s0 + $0x328] sm:$0x30]  ;;  %1008 = vmatpush.bf16.msrb.mxu1 %v756_v48  ;;  %v5257_v7 = vor.u32 %v6660_v2, %v5256_v62  ;;  %v4992_v9 = vld [vmem:[%s9722_s0 + $0x20] sm:$0xf]  ;;  %v5000_v12 = vld [vmem:[%s9722_s0 + $0x28] sm:$0xf] }
  0x10   :  { %5472 = vmatmul.msk.bf16.vlgmr.msra.gmra.mxu2 %vm732_vm2, %v7041_v29  ;;  %v765_v6 = vand.u32 %v5249_v59, %v6990_v5  ;;  %v5261_v8 = vor.u32 %v6628_v3, %v5258_v4  ;;  %v6595_v10 = vld [vmem:[%s9722_s0 + $0x11c] sm:$0xf0]  ;;  %5473 = vmatmul.msk.bf16.vlgmr.msra.gmra.mxu3 %vm732_vm2, %v7041_v29  ;;  %v6596_v13 = vld [vmem:[%s9722_s0 + $0x124] sm:$0xf0]  ;;  %v6563_v17 = vld [vmem:[%s9722_s0 + $0x24] sm:$0xf] }
  0x11   :  { %1022 = vmatpush.bf16.msrb.mxu2 %v759_v49  ;;  %v768_v11 = vand.u32 %v5253_v1, %v6990_v5  ;;  %1036 = vmatpush.bf16.msrb.mxu3 %v762_v58  ;;  %v771_v15 = vand.u32 %v5257_v7, %v6990_v5  ;;  %v4993_v16 = vor.u32 %v6595_v10, %v4992_v9  ;;  %v4994_v18 = vld [vmem:[%s9722_s0 + $0x120] sm:$0xf0]  ;;  %v6564_v20 = vld [vmem:[%s9722_s0 + $0x2c] sm:$0xf]  ;;  %v5264_v23 = vld [vmem:[%s9722_s0 + $0x230] sm:$0xf] }
  0x12   :  { %v774_v19 = vand.u32 %v5261_v8, %v6990_v5  ;;  %v5001_v21 = vor.u32 %v6596_v13, %v5000_v12  ;;  %v5002_v22 = vld [vmem:[%s9722_s0 + $0x128] sm:$0xf0]  ;;  %v6661_v24 = vld [vmem:[%s9722_s0 + $0x32c] sm:$0x30]  ;;  %v4997_v25 = vor.u32 %v6563_v17, %v4994_v18  ;;  %v6629_v26 = vld [vmem:[%s9722_s0 + $0x234] sm:$0xf] }
  0x13   :  { %995 = vmatpush.bf16.msrb.mxu0 %v4977_v53  ;;  %1009 = vmatpush.bf16.msrb.mxu1 %v4981_v63  ;;  %v5266_v27 = vld [vmem:[%s9722_s0 + $0x330] sm:$0x30]  ;;  %v5272_v28 = vld [vmem:[%s9722_s0 + $0x238] sm:$0xf]  ;;  %v5005_v31 = vor.u32 %v6564_v20, %v5002_v22  ;;  %v5265_v32 = vor.u32 %v6661_v24, %v5264_v23  ;;  %v6630_v33 = vld [vmem:[%s9722_s0 + $0x23c] sm:$0xf] }
  0x14   :  { %v6662_v30 = vld [vmem:[%s9722_s0 + $0x334] sm:$0x30]  ;;  %v5274_v34 = vld [vmem:[%s9722_s0 + $0x338] sm:$0x30]  ;;  %v5269_v35 = vor.u32 %v6629_v26, %v5266_v27  ;;  %v5008_v40 = vld [vmem:[%s9722_s0 + $0x30] sm:$0xf] }
  0x15   :  { %1023 = vmatpush.bf16.msrb.mxu2 %v4985_v0  ;;  %1037 = vmatpush.bf16.msrb.mxu3 %v4989_v14  ;;  %v5273_v36 = vor.u32 %v6662_v30, %v5272_v28  ;;  %v5277_v37 = vor.u32 %v6630_v33, %v5274_v34  ;;  %v777_v38 = vand.u32 %v5265_v32, %v6990_v5  ;;  %v6597_v41 = vld [vmem:[%s9722_s0 + $0x12c] sm:$0xf0]  ;;  %v6565_v43 = vld [vmem:[%s9722_s0 + $0x34] sm:$0xf]  ;;  %v5016_v46 = vld [vmem:[%s9722_s0 + $0x38] sm:$0xf] }
  0x16   :  { %v780_v39 = vand.u32 %v5269_v35, %v6990_v5  ;;  %v5010_v44 = vld [vmem:[%s9722_s0 + $0x130] sm:$0xf0]  ;;  %v6598_v47 = vld [vmem:[%s9722_s0 + $0x134] sm:$0xf0]  ;;  %v5009_v48 = vor.u32 %v6597_v41, %v5008_v40  ;;  %v6566_v49 = vld [vmem:[%s9722_s0 + $0x3c] sm:$0xf] }
  0x17   :  { %1050 = vmatpush.bf16.msra.mxu0 %v765_v6  ;;  %1064 = vmatpush.bf16.msra.mxu1 %v768_v11  ;;  %v783_v42 = vand.u32 %v5273_v36, %v6990_v5  ;;  %v786_v45 = vand.u32 %v5277_v37, %v6990_v5  ;;  %v5018_v50 = vld [vmem:[%s9722_s0 + $0x138] sm:$0xf0]  ;;  %v5013_v51 = vor.u32 %v6565_v43, %v5010_v44  ;;  %v5280_v54 = vld [vmem:[%s9722_s0 + $0x240] sm:$0xf]  ;;  %v6631_v56 = vld [vmem:[%s9722_s0 + $0x244] sm:$0xf] }
  0x18   :  { %v5017_v52 = vor.u32 %v6598_v47, %v5016_v46  ;;  %v5021_v53 = vor.u32 %v6566_v49, %v5018_v50  ;;  %v6663_v55 = vld [vmem:[%s9722_s0 + $0x33c] sm:$0x30]  ;;  %v5282_v57 = vld [vmem:[%s9722_s0 + $0x340] sm:$0x30]  ;;  %v5288_v58 = vld [vmem:[%s9722_s0 + $0x248] sm:$0xf] }
  0x19   :  { %1078 = vmatpush.bf16.msra.mxu2 %v771_v15  ;;  %1092 = vmatpush.bf16.msra.mxu3 %v774_v19  ;;  %v6664_v59 = vld [vmem:[%s9722_s0 + $0x344] sm:$0x30]  ;;  %v5281_v60 = vor.u32 %v6663_v55, %v5280_v54  ;;  %v6632_v61 = vld [vmem:[%s9722_s0 + $0x24c] sm:$0xf]  ;;  %v5285_v63 = vor.u32 %v6631_v56, %v5282_v57  ;;  %v5024_v4 = vld [vmem:[%s9722_s0 + $0x40] sm:$0xf] }
  0x1a   :  { %v5290_v62 = vld [vmem:[%s9722_s0 + $0x348] sm:$0x30]  ;;  %v5289_v0 = vor.u32 %v6664_v59, %v5288_v58  ;;  %v6599_v6 = vld [vmem:[%s9722_s0 + $0x13c] sm:$0xf0]  ;;  %v6567_v8 = vld [vmem:[%s9722_s0 + $0x44] sm:$0xf] }
  0x1b   :  { %1051 = vmatpush.bf16.msra.mxu0 %v4993_v16  ;;  %1065 = vmatpush.bf16.msra.mxu1 %v4997_v25  ;;  %v5293_v1 = vor.u32 %v6632_v61, %v5290_v62  ;;  %v789_v2 = vand.u32 %v5281_v60, %v6990_v5  ;;  %v792_v3 = vand.u32 %v5285_v63, %v6990_v5  ;;  %v5026_v9 = vld [vmem:[%s9722_s0 + $0x140] sm:$0xf0]  ;;  %v5032_v11 = vld [vmem:[%s9722_s0 + $0x48] sm:$0xf]  ;;  %v6568_v14 = vld [vmem:[%s9722_s0 + $0x4c] sm:$0xf] }
  0x1c   :  { %v795_v7 = vand.u32 %v5289_v0, %v6990_v5  ;;  %v6600_v12 = vld [vmem:[%s9722_s0 + $0x144] sm:$0xf0]  ;;  %v5025_v13 = vor.u32 %v6599_v6, %v5024_v4  ;;  %v5034_v15 = vld [vmem:[%s9722_s0 + $0x148] sm:$0xf0]  ;;  %v5029_v16 = vor.u32 %v6567_v8, %v5026_v9  ;;  %v5296_v19 = vld [vmem:[%s9722_s0 + $0x250] sm:$0xf] }
  0x1d   :  { %1079 = vmatpush.bf16.msra.mxu2 %v5001_v21  ;;  %1093 = vmatpush.bf16.msra.mxu3 %v5005_v31  ;;  %v798_v10 = vand.u32 %v5293_v1, %v6990_v5  ;;  %v5033_v17 = vor.u32 %v6600_v12, %v5032_v11  ;;  %v5037_v18 = vor.u32 %v6568_v14, %v5034_v15  ;;  %v6665_v20 = vld [vmem:[%s9722_s0 + $0x34c] sm:$0x30]  ;;  %v6633_v21 = vld [vmem:[%s9722_s0 + $0x254] sm:$0xf]  ;;  %v5304_v23 = vld [vmem:[%s9722_s0 + $0x258] sm:$0xf] }
  0x1e   :  { %5474 = vmatmul.msk.bf16.vlgmr.msrb.gmra.mxu0 %vm732_vm2, %v7041_v29  ;;  %5475 = vmatmul.msk.bf16.vlgmr.msrb.gmra.mxu1 %vm732_vm2, %v7041_v29  ;;  %v5298_v22 = vld [vmem:[%s9722_s0 + $0x350] sm:$0x30]  ;;  %v6666_v24 = vld [vmem:[%s9722_s0 + $0x354] sm:$0x30]  ;;  %v5297_v25 = vor.u32 %v6665_v20, %v5296_v19  ;;  %v6634_v26 = vld [vmem:[%s9722_s0 + $0x25c] sm:$0xf] }
  0x1f   :  { %1106 = vmatpush.bf16.msrb.mxu0 %v777_v38  ;;  %1120 = vmatpush.bf16.msrb.mxu1 %v780_v39  ;;  %v5306_v27 = vld [vmem:[%s9722_s0 + $0x358] sm:$0x30]  ;;  %v5301_v28 = vor.u32 %v6633_v21, %v5298_v22  ;;  %v5305_v30 = vor.u32 %v6666_v24, %v5304_v23  ;;  %v5040_v34 = vld [vmem:[%s9722_s0 + $0x50] sm:$0xf]  ;;  %v6569_v37 = vld [vmem:[%s9722_s0 + $0x54] sm:$0xf] }
  0x20   :  { %5476 = vmatmul.msk.bf16.vlgmr.msrb.gmra.mxu2 %vm732_vm2, %v7041_v29  ;;  %5477 = vmatmul.msk.bf16.vlgmr.msrb.gmra.mxu3 %vm732_vm2, %v7041_v29  ;;  %v5309_v31 = vor.u32 %v6634_v26, %v5306_v27  ;;  %v801_v32 = vand.u32 %v5297_v25, %v6990_v5  ;;  %v6601_v35 = vld [vmem:[%s9722_s0 + $0x14c] sm:$0xf0]  ;;  %v5042_v38 = vld [vmem:[%s9722_s0 + $0x150] sm:$0xf0]  ;;  %v5048_v40 = vld [vmem:[%s9722_s0 + $0x58] sm:$0xf] }
  0x21   :  { %1134 = vmatpush.bf16.msrb.mxu2 %v783_v42  ;;  %1148 = vmatpush.bf16.msrb.mxu3 %v786_v45  ;;  %v804_v33 = vand.u32 %v5301_v28, %v6990_v5  ;;  %v807_v36 = vand.u32 %v5305_v30, %v6990_v5  ;;  %v6602_v41 = vld [vmem:[%s9722_s0 + $0x154] sm:$0xf0]  ;;  %v5041_v42 = vor.u32 %v6601_v35, %v5040_v34  ;;  %v6570_v43 = vld [vmem:[%s9722_s0 + $0x5c] sm:$0xf]  ;;  %v6667_v49 = vld [vmem:[%s9722_s0 + $0x35c] sm:$0x30] }
  0x22   :  { %v810_v39 = vand.u32 %v5309_v31, %v6990_v5  ;;  %v5050_v44 = vld [vmem:[%s9722_s0 + $0x158] sm:$0xf0]  ;;  %v5045_v45 = vor.u32 %v6569_v37, %v5042_v38  ;;  %v5049_v46 = vor.u32 %v6602_v41, %v5048_v40  ;;  %v6635_v50 = vld [vmem:[%s9722_s0 + $0x264] sm:$0xf]  ;;  %v6636_v55 = vld [vmem:[%s9722_s0 + $0x26c] sm:$0xf] }
  0x23   :  { %1107 = vmatpush.bf16.msrb.mxu0 %v5009_v48  ;;  %1121 = vmatpush.bf16.msrb.mxu1 %v5013_v51  ;;  %v5053_v47 = vor.u32 %v6570_v43, %v5050_v44  ;;  %v5312_v48 = vld [vmem:[%s9722_s0 + $0x260] sm:$0xf]  ;;  %v5314_v51 = vld [vmem:[%s9722_s0 + $0x360] sm:$0x30]  ;;  %v5322_v56 = vld [vmem:[%s9722_s0 + $0x368] sm:$0x30] }
  0x24   :  { %v5313_v54 = vor.u32 %v6667_v49, %v5312_v48  ;;  %v5317_v57 = vor.u32 %v6635_v50, %v5314_v51  ;;  %v5325_v59 = vor.u32 %v6636_v55, %v5322_v56  ;;  %v5056_v62 = vld [vmem:[%s9722_s0 + $0x60] sm:$0xf]  ;;  %v6571_v1 = vld [vmem:[%s9722_s0 + $0x64] sm:$0xf]  ;;  %v5064_v4 = vld [vmem:[%s9722_s0 + $0x68] sm:$0xf] }
  0x25   :  { %1135 = vmatpush.bf16.msrb.mxu2 %v5017_v52  ;;  %1149 = vmatpush.bf16.msrb.mxu3 %v5021_v53  ;;  %v5320_v52 = vld [vmem:[%s9722_s0 + $0x268] sm:$0xf]  ;;  %v6603_v63 = vld [vmem:[%s9722_s0 + $0x15c] sm:$0xf0]  ;;  %v6572_v8 = vld [vmem:[%s9722_s0 + $0x6c] sm:$0xf] }
  0x26   :  { %v6668_v53 = vld [vmem:[%s9722_s0 + $0x364] sm:$0x30]  ;;  %v813_v60 = vand.u32 %v5313_v54, %v6990_v5  ;;  %v816_v61 = vand.u32 %v5317_v57, %v6990_v5  ;;  %v5066_v9 = vld [vmem:[%s9722_s0 + $0x168] sm:$0xf0]  ;;  %v6669_v14 = vld [vmem:[%s9722_s0 + $0x36c] sm:$0x30] }
  0x27   :  { %v5321_v58 = vor.u32 %v6668_v53, %v5320_v52  ;;  %v6604_v6 = vld [vmem:[%s9722_s0 + $0x164] sm:$0xf0]  ;;  %v5069_v12 = vor.u32 %v6572_v8, %v5066_v9  ;;  %v6637_v15 = vld [vmem:[%s9722_s0 + $0x274] sm:$0xf]  ;;  %v6638_v20 = vld [vmem:[%s9722_s0 + $0x27c] sm:$0xf] }
  0x28   :  { %v5065_v11 = vor.u32 %v6604_v6, %v5064_v4  ;;  %v5338_v21 = vld [vmem:[%s9722_s0 + $0x378] sm:$0x30]  ;;  %v5072_v27 = vld [vmem:[%s9722_s0 + $0x70] sm:$0xf]  ;;  %v6573_v31 = vld [vmem:[%s9722_s0 + $0x74] sm:$0xf] }
  0x29   :  { %v819_v0 = vand.u32 %v5321_v58, %v6990_v5  ;;  %v5341_v24 = vor.u32 %v6638_v20, %v5338_v21  ;;  %v6605_v28 = vld [vmem:[%s9722_s0 + $0x16c] sm:$0xf0]  ;;  %v5080_v34 = vld [vmem:[%s9722_s0 + $0x78] sm:$0xf]  ;;  %v6574_v37 = vld [vmem:[%s9722_s0 + $0x7c] sm:$0xf] }
  0x2a   :  { %v6606_v35 = vld [vmem:[%s9722_s0 + $0x174] sm:$0xf0]  ;;  %v5082_v38 = vld [vmem:[%s9722_s0 + $0x178] sm:$0xf0]  ;;  %v6671_v43 = vld [vmem:[%s9722_s0 + $0x37c] sm:$0x30] }
  0x2b   :  { %v5081_v40 = vor.u32 %v6606_v35, %v5080_v34  ;;  %v5085_v41 = vor.u32 %v6574_v37, %v5082_v38  ;;  %v6639_v44 = vld [vmem:[%s9722_s0 + $0x284] sm:$0xf]  ;;  %v6640_v49 = vld [vmem:[%s9722_s0 + $0x28c] sm:$0xf]  ;;  %v5088_v56 = vld [vmem:[%s9722_s0 + $0x80] sm:$0xf] }
  0x2c   :  { %v5354_v50 = vld [vmem:[%s9722_s0 + $0x388] sm:$0x30]  ;;  %v6607_v57 = vld [vmem:[%s9722_s0 + $0x17c] sm:$0xf0]  ;;  %v6673_v8 = vld [vmem:[%s9722_s0 + $0x38c] sm:$0x30] }
  0x2d   :  { %v5357_v53 = vor.u32 %v6640_v49, %v5354_v50  ;;  %v6641_v9 = vld [vmem:[%s9722_s0 + $0x294] sm:$0xf]  ;;  %v5104_v21 = vld [vmem:[%s9722_s0 + $0x90] sm:$0xf]  ;;  %v6675_v37 = vld [vmem:[%s9722_s0 + $0x39c] sm:$0x30] }
  0x2e   :  { %5478 = vmatmul.msk.bf16.vlgmr.msra.gmra.mxu0 %vm732_vm2, %v7041_v29  ;;  %5479 = vmatmul.msk.bf16.vlgmr.msra.gmra.mxu1 %vm732_vm2, %v7041_v29  ;;  %v6643_v38 = vld [vmem:[%s9722_s0 + $0x2a4] sm:$0xf] }
  0x2f   :  { %1162 = vmatpush.bf16.msra.mxu0 %v789_v2  ;;  %1176 = vmatpush.bf16.msra.mxu1 %v792_v3  ;;  %v5058_v2 = vld [vmem:[%s9722_s0 + $0x160] sm:$0xf0]  ;;  %v822_v3 = vand.u32 %v5325_v59, %v6990_v5 }
  0x30   :  { %5480 = vmatmul.msk.bf16.vlgmr.msra.gmra.mxu2 %vm732_vm2, %v7041_v29  ;;  %5481 = vmatmul.msk.bf16.vlgmr.msra.gmra.mxu3 %vm732_vm2, %v7041_v29  ;;  %v6575_v59 = vld [vmem:[%s9722_s0 + $0x84] sm:$0xf] }
  0x31   :  { %1190 = vmatpush.bf16.msra.mxu2 %v795_v7  ;;  %1204 = vmatpush.bf16.msra.mxu3 %v798_v10  ;;  %v5057_v7 = vor.u32 %v6603_v63, %v5056_v62  ;;  %v5061_v10 = vor.u32 %v6571_v1, %v5058_v2  ;;  %v5096_v62 = vld [vmem:[%s9722_s0 + $0x88] sm:$0xf]  ;;  %v6576_v1 = vld [vmem:[%s9722_s0 + $0x8c] sm:$0xf] }
  0x32   :  { %v6608_v63 = vld [vmem:[%s9722_s0 + $0x184] sm:$0xf0]  ;;  %v5098_v2 = vld [vmem:[%s9722_s0 + $0x188] sm:$0xf0] }
  0x33   :  { %1163 = vmatpush.bf16.msra.mxu0 %v5025_v13  ;;  %1177 = vmatpush.bf16.msra.mxu1 %v5029_v16  ;;  %v5328_v13 = vld [vmem:[%s9722_s0 + $0x270] sm:$0xf]  ;;  %v5330_v16 = vld [vmem:[%s9722_s0 + $0x370] sm:$0x30]  ;;  %v5097_v4 = vor.u32 %v6608_v63, %v5096_v62  ;;  %v5101_v6 = vor.u32 %v6576_v1, %v5098_v2  ;;  %v5130_v62 = vld [vmem:[%s9722_s0 + $0x1a8] sm:$0xf0] }
  0x34   :  { %v5329_v19 = vor.u32 %v6669_v14, %v5328_v13  ;;  %v5333_v22 = vor.u32 %v6637_v15, %v5330_v16  ;;  %v6642_v14 = vld [vmem:[%s9722_s0 + $0x29c] sm:$0xf] }
  0x35   :  { %1191 = vmatpush.bf16.msra.mxu2 %v5033_v17  ;;  %1205 = vmatpush.bf16.msra.mxu3 %v5037_v18  ;;  %v5336_v17 = vld [vmem:[%s9722_s0 + $0x278] sm:$0xf]  ;;  %v5370_v15 = vld [vmem:[%s9722_s0 + $0x398] sm:$0x30] }
  0x36   :  { %v6670_v18 = vld [vmem:[%s9722_s0 + $0x374] sm:$0x30]  ;;  %v825_v25 = vand.u32 %v5329_v19, %v6990_v5  ;;  %v828_v26 = vand.u32 %v5333_v22, %v6990_v5  ;;  %v6609_v22 = vld [vmem:[%s9722_s0 + $0x18c] sm:$0xf0] }
  0x37   :  { %v5337_v23 = vor.u32 %v6670_v18, %v5336_v17  ;;  %v5373_v18 = vor.u32 %v6642_v14, %v5370_v15  ;;  %v6646_v14 = vld [vmem:[%s9722_s0 + $0x2bc] sm:$0xf] }
  0x38   :  { %v5402_v15 = vld [vmem:[%s9722_s0 + $0x3b8] sm:$0x30] }
  0x39   :  { %v831_v30 = vand.u32 %v5337_v23, %v6990_v5 }
  0x3e   :  { %5482 = vmatmul.msk.bf16.vlgmr.msrb.gmra.mxu0 %vm732_vm2, %v7041_v29  ;;  %5483 = vmatmul.msk.bf16.vlgmr.msrb.gmra.mxu1 %vm732_vm2, %v7041_v29 }
  0x3f   :  { %1218 = vmatpush.bf16.msrb.mxu0 %v801_v32  ;;  %1232 = vmatpush.bf16.msrb.mxu1 %v804_v33  ;;  %v5074_v32 = vld [vmem:[%s9722_s0 + $0x170] sm:$0xf0]  ;;  %v834_v33 = vand.u32 %v5341_v24, %v6990_v5 }
  0x40   :  { %5484 = vmatmul.msk.bf16.vlgmr.msrb.gmra.mxu2 %vm732_vm2, %v7041_v29  ;;  %5485 = vmatmul.msk.bf16.vlgmr.msrb.gmra.mxu3 %vm732_vm2, %v7041_v29  ;;  %v6577_v24 = vld [vmem:[%s9722_s0 + $0x94] sm:$0xf] }
  0x41   :  { %1246 = vmatpush.bf16.msrb.mxu2 %v807_v36  ;;  %1260 = vmatpush.bf16.msrb.mxu3 %v810_v39  ;;  %v5073_v36 = vor.u32 %v6605_v28, %v5072_v27  ;;  %v5077_v39 = vor.u32 %v6573_v31, %v5074_v32  ;;  %v5112_v27 = vld [vmem:[%s9722_s0 + $0x98] sm:$0xf]  ;;  %v6578_v31 = vld [vmem:[%s9722_s0 + $0x9c] sm:$0xf] }
  0x42   :  { %v6610_v28 = vld [vmem:[%s9722_s0 + $0x194] sm:$0xf0]  ;;  %v5114_v32 = vld [vmem:[%s9722_s0 + $0x198] sm:$0xf0] }
  0x43   :  { %1219 = vmatpush.bf16.msrb.mxu0 %v5041_v42  ;;  %1233 = vmatpush.bf16.msrb.mxu1 %v5045_v45  ;;  %v5344_v42 = vld [vmem:[%s9722_s0 + $0x280] sm:$0xf]  ;;  %v5346_v45 = vld [vmem:[%s9722_s0 + $0x380] sm:$0x30]  ;;  %v5113_v34 = vor.u32 %v6610_v28, %v5112_v27  ;;  %v5117_v35 = vor.u32 %v6578_v31, %v5114_v32  ;;  %v6581_v28 = vld [vmem:[%s9722_s0 + $0xb4] sm:$0xf] }
  0x44   :  { %v5345_v48 = vor.u32 %v6671_v43, %v5344_v42  ;;  %v5349_v51 = vor.u32 %v6639_v44, %v5346_v45  ;;  %v6644_v43 = vld [vmem:[%s9722_s0 + $0x2ac] sm:$0xf]  ;;  %v5144_v32 = vld [vmem:[%s9722_s0 + $0xb8] sm:$0xf] }
  0x45   :  { %1247 = vmatpush.bf16.msrb.mxu2 %v5049_v46  ;;  %1261 = vmatpush.bf16.msrb.mxu3 %v5053_v47  ;;  %v5352_v46 = vld [vmem:[%s9722_s0 + $0x288] sm:$0xf]  ;;  %v5386_v44 = vld [vmem:[%s9722_s0 + $0x3a8] sm:$0x30] }
  0x46   :  { %v6672_v47 = vld [vmem:[%s9722_s0 + $0x384] sm:$0x30]  ;;  %v837_v54 = vand.u32 %v5345_v48, %v6990_v5  ;;  %v840_v55 = vand.u32 %v5349_v51, %v6990_v5 }
  0x47   :  { %v5353_v52 = vor.u32 %v6672_v47, %v5352_v46  ;;  %v5389_v47 = vor.u32 %v6644_v43, %v5386_v44  ;;  %v5408_v44 = vld [vmem:[%s9722_s0 + $0x2c0] sm:$0xf] }
  0x49   :  { %v843_v58 = vand.u32 %v5353_v52, %v6990_v5  ;;  %v5120_v52 = vld [vmem:[%s9722_s0 + $0xa0] sm:$0xf] }
  0x4e   :  { %5486 = vmatmul.msk.bf16.vlgmr.msra.gmra.mxu0 %vm732_vm2, %v7041_v29  ;;  %5487 = vmatmul.msk.bf16.vlgmr.msra.gmra.mxu1 %vm732_vm2, %v7041_v29 }
  0x4f   :  { %1274 = vmatpush.bf16.msra.mxu0 %v813_v60  ;;  %1288 = vmatpush.bf16.msra.mxu1 %v816_v61  ;;  %v5090_v60 = vld [vmem:[%s9722_s0 + $0x180] sm:$0xf0]  ;;  %v846_v61 = vand.u32 %v5357_v53, %v6990_v5  ;;  %v6611_v53 = vld [vmem:[%s9722_s0 + $0x19c] sm:$0xf0] }
  0x50   :  { %5488 = vmatmul.msk.bf16.vlgmr.msra.gmra.mxu2 %vm732_vm2, %v7041_v29  ;;  %5489 = vmatmul.msk.bf16.vlgmr.msra.gmra.mxu3 %vm732_vm2, %v7041_v29 }
  0x51   :  { %1302 = vmatpush.bf16.msra.mxu2 %v819_v0  ;;  %1316 = vmatpush.bf16.msra.mxu3 %v822_v3  ;;  %v5089_v0 = vor.u32 %v6607_v57, %v5088_v56  ;;  %v5093_v3 = vor.u32 %v6575_v59, %v5090_v60  ;;  %v5122_v56 = vld [vmem:[%s9722_s0 + $0x1a0] sm:$0xf0]  ;;  %v870_v57 = vand.u32 %v5389_v47, %v6990_v5  ;;  %v6612_v59 = vld [vmem:[%s9722_s0 + $0x1a4] sm:$0xf0] }
  0x52   :  { %v5121_v60 = vor.u32 %v6611_v53, %v5120_v52  ;;  %v5410_v47 = vld [vmem:[%s9722_s0 + $0x3c0] sm:$0x30]  ;;  %v6648_v53 = vld [vmem:[%s9722_s0 + $0x2cc] sm:$0xf] }
  0x53   :  { %1275 = vmatpush.bf16.msra.mxu0 %v5057_v7  ;;  %1289 = vmatpush.bf16.msra.mxu1 %v5061_v10  ;;  %v5360_v7 = vld [vmem:[%s9722_s0 + $0x290] sm:$0xf]  ;;  %v5362_v10 = vld [vmem:[%s9722_s0 + $0x390] sm:$0x30] }
  0x54   :  { %v5361_v13 = vor.u32 %v6673_v8, %v5360_v7  ;;  %v5365_v16 = vor.u32 %v6641_v9, %v5362_v10  ;;  %v5392_v7 = vld [vmem:[%s9722_s0 + $0x2b0] sm:$0xf]  ;;  %v6645_v9 = vld [vmem:[%s9722_s0 + $0x2b4] sm:$0xf] }
  0x55   :  { %1303 = vmatpush.bf16.msra.mxu2 %v5065_v11  ;;  %1317 = vmatpush.bf16.msra.mxu3 %v5069_v12  ;;  %v5368_v11 = vld [vmem:[%s9722_s0 + $0x298] sm:$0xf]  ;;  %v6677_v8 = vld [vmem:[%s9722_s0 + $0x3ac] sm:$0x30]  ;;  %v5394_v10 = vld [vmem:[%s9722_s0 + $0x3b0] sm:$0x30] }
  0x56   :  { %v6674_v12 = vld [vmem:[%s9722_s0 + $0x394] sm:$0x30]  ;;  %v849_v19 = vand.u32 %v5361_v13, %v6990_v5  ;;  %v852_v20 = vand.u32 %v5365_v16, %v6990_v5  ;;  %v5393_v13 = vor.u32 %v6677_v8, %v5392_v7  ;;  %v5397_v16 = vor.u32 %v6645_v9, %v5394_v10  ;;  %v6583_v8 = vld [vmem:[%s9722_s0 + $0xc4] sm:$0xf] }
  0x57   :  { %v5369_v17 = vor.u32 %v6674_v12, %v5368_v11  ;;  %v5400_v11 = vld [vmem:[%s9722_s0 + $0x2b8] sm:$0xf]  ;;  %v5154_v9 = vld [vmem:[%s9722_s0 + $0x1c0] sm:$0xf0] }
  0x58   :  { %v6678_v12 = vld [vmem:[%s9722_s0 + $0x3b4] sm:$0x30] }
  0x59   :  { %v855_v23 = vand.u32 %v5369_v17, %v6990_v5  ;;  %v5401_v17 = vor.u32 %v6678_v12, %v5400_v11  ;;  %v5160_v11 = vld [vmem:[%s9722_s0 + $0xc8] sm:$0xf] }
  0x5a   :  { %v6616_v12 = vld [vmem:[%s9722_s0 + $0x1c4] sm:$0xf0] }
  0x5b   :  { %v879_v27 = vand.u32 %v5401_v17, %v6990_v5  ;;  %v5161_v17 = vor.u32 %v6616_v12, %v5160_v11 }
  0x5e   :  { %5490 = vmatmul.msk.bf16.vlgmr.msrb.gmra.mxu0 %vm732_vm2, %v7041_v29  ;;  %5491 = vmatmul.msk.bf16.vlgmr.msrb.gmra.mxu1 %vm732_vm2, %v7041_v29 }
  0x5f   :  { %1330 = vmatpush.bf16.msrb.mxu0 %v825_v25  ;;  %1344 = vmatpush.bf16.msrb.mxu1 %v828_v26  ;;  %v5106_v25 = vld [vmem:[%s9722_s0 + $0x190] sm:$0xf0]  ;;  %v858_v26 = vand.u32 %v5373_v18, %v6990_v5  ;;  %v5405_v18 = vor.u32 %v6646_v14, %v5402_v15  ;;  %v6584_v14 = vld [vmem:[%s9722_s0 + $0xcc] sm:$0xf] }
  0x60   :  { %5492 = vmatmul.msk.bf16.vlgmr.msrb.gmra.mxu2 %vm732_vm2, %v7041_v29  ;;  %5493 = vmatmul.msk.bf16.vlgmr.msrb.gmra.mxu3 %vm732_vm2, %v7041_v29  ;;  %v5162_v15 = vld [vmem:[%s9722_s0 + $0x1c8] sm:$0xf0] }
  0x61   :  { %1358 = vmatpush.bf16.msrb.mxu2 %v831_v30  ;;  %1372 = vmatpush.bf16.msrb.mxu3 %v834_v33  ;;  %v5105_v30 = vor.u32 %v6609_v22, %v5104_v21  ;;  %v5109_v33 = vor.u32 %v6577_v24, %v5106_v25  ;;  %v873_v21 = vand.u32 %v5393_v13, %v6990_v5  ;;  %v5136_v25 = vld [vmem:[%s9722_s0 + $0xb0] sm:$0xf] }
  0x62   :  { %v876_v24 = vand.u32 %v5397_v16, %v6990_v5  ;;  %v882_v31 = vand.u32 %v5405_v18, %v6990_v5  ;;  %v5157_v16 = vor.u32 %v6583_v8, %v5154_v9  ;;  %v5165_v18 = vor.u32 %v6584_v14, %v5162_v15  ;;  %v5178_v8 = vld [vmem:[%s9722_s0 + $0x1d8] sm:$0xf0]  ;;  %v1924_v9 = vld [vmem:[%s9724_s2] sm:$0xff] }
  0x63   :  { %1331 = vmatpush.bf16.msrb.mxu0 %v5073_v36  ;;  %1345 = vmatpush.bf16.msrb.mxu1 %v5077_v39  ;;  %v5376_v36 = vld [vmem:[%s9722_s0 + $0x2a0] sm:$0xf]  ;;  %v5378_v39 = vld [vmem:[%s9722_s0 + $0x3a0] sm:$0x30] }
  0x64   :  { %v5377_v42 = vor.u32 %v6675_v37, %v5376_v36  ;;  %v5381_v45 = vor.u32 %v6643_v38, %v5378_v39  ;;  %v5146_v36 = vld [vmem:[%s9722_s0 + $0x1b8] sm:$0xf0] }
  0x65   :  { %1359 = vmatpush.bf16.msrb.mxu2 %v5081_v40  ;;  %1373 = vmatpush.bf16.msrb.mxu3 %v5085_v41  ;;  %v5384_v40 = vld [vmem:[%s9722_s0 + $0x2a8] sm:$0xf] }
  0x66   :  { %v6676_v41 = vld [vmem:[%s9722_s0 + $0x3a4] sm:$0x30]  ;;  %v861_v49 = vand.u32 %v5377_v42, %v6990_v5  ;;  %v864_v51 = vand.u32 %v5381_v45, %v6990_v5  ;;  %v6679_v45 = vld [vmem:[%s9722_s0 + $0x3bc] sm:$0x30] }
  0x67   :  { %v5385_v46 = vor.u32 %v6676_v41, %v5384_v40  ;;  %v5409_v52 = vor.u32 %v6679_v45, %v5408_v44 }
  0x6e   :  { %5494 = vmatmul.msk.bf16.vlgmr.msra.gmra.mxu0 %vm732_vm2, %v7041_v29  ;;  %5495 = vmatmul.msk.bf16.vlgmr.msra.gmra.mxu1 %vm732_vm2, %v7041_v29 }
  0x6f   :  { %1386 = vmatpush.bf16.msra.mxu0 %v837_v54  ;;  %1400 = vmatpush.bf16.msra.mxu1 %v840_v55  ;;  %v867_v54 = vand.u32 %v5385_v46, %v6990_v5  ;;  %v6579_v55 = vld [vmem:[%s9722_s0 + $0xa4] sm:$0xf] }
  0x70   :  { %5496 = vmatmul.msk.bf16.vlgmr.msra.gmra.mxu2 %vm732_vm2, %v7041_v29  ;;  %5497 = vmatmul.msk.bf16.vlgmr.msra.gmra.mxu3 %vm732_vm2, %v7041_v29  ;;  %v5125_v63 = vor.u32 %v6579_v55, %v5122_v56  ;;  %v6647_v46 = vld [vmem:[%s9722_s0 + $0x2c4] sm:$0xf] }
  0x71   :  { %1414 = vmatpush.bf16.msra.mxu2 %v843_v58  ;;  %1428 = vmatpush.bf16.msra.mxu3 %v846_v61  ;;  %v5128_v58 = vld [vmem:[%s9722_s0 + $0xa8] sm:$0xf]  ;;  %v6580_v61 = vld [vmem:[%s9722_s0 + $0xac] sm:$0xf]  ;;  %v5413_v55 = vor.u32 %v6647_v46, %v5410_v47 }
  0x72   :  { %v5133_v1 = vor.u32 %v6580_v61, %v5130_v62 }
  0x73   :  { %1387 = vmatpush.bf16.msra.mxu0 %v5089_v0  ;;  %1401 = vmatpush.bf16.msra.mxu1 %v5093_v3  ;;  %v5129_v0 = vor.u32 %v6612_v59, %v5128_v58 }
  0x75   :  { %1415 = vmatpush.bf16.msra.mxu2 %v5097_v4  ;;  %1429 = vmatpush.bf16.msra.mxu3 %v5101_v6 }
  0x7e   :  { %5498 = vmatmul.msk.bf16.vlgmr.msrb.gmra.mxu0 %vm732_vm2, %v7041_v29  ;;  %5499 = vmatmul.msk.bf16.vlgmr.msrb.gmra.mxu1 %vm732_vm2, %v7041_v29 }
  0x7f   :  { %1442 = vmatpush.bf16.msrb.mxu0 %v849_v19  ;;  %1456 = vmatpush.bf16.msrb.mxu1 %v852_v20 }
  0x80   :  { %5500 = vmatmul.msk.bf16.vlgmr.msrb.gmra.mxu2 %vm732_vm2, %v7041_v29  ;;  %5501 = vmatmul.msk.bf16.vlgmr.msrb.gmra.mxu3 %vm732_vm2, %v7041_v29 }
  0x81   :  { %1470 = vmatpush.bf16.msrb.mxu2 %v855_v23  ;;  %1484 = vmatpush.bf16.msrb.mxu3 %v858_v26  ;;  %v6613_v26 = vld [vmem:[%s9722_s0 + $0x1ac] sm:$0xf0] }
  0x83   :  { %1443 = vmatpush.bf16.msrb.mxu0 %v5105_v30  ;;  %1457 = vmatpush.bf16.msrb.mxu1 %v5109_v33  ;;  %v5138_v30 = vld [vmem:[%s9722_s0 + $0x1b0] sm:$0xf0]  ;;  %v6614_v33 = vld [vmem:[%s9722_s0 + $0x1b4] sm:$0xf0] }
  0x84   :  { %v5141_v37 = vor.u32 %v6581_v28, %v5138_v30  ;;  %v5145_v38 = vor.u32 %v6614_v33, %v5144_v32  ;;  %v6649_v28 = vld [vmem:[%s9722_s0 + $0x2d4] sm:$0xf]  ;;  %v6682_v32 = vld [vmem:[%s9722_s0 + $0x3d4] sm:$0x30] }
  0x85   :  { %1471 = vmatpush.bf16.msrb.mxu2 %v5113_v34  ;;  %1485 = vmatpush.bf16.msrb.mxu3 %v5117_v35  ;;  %v5137_v34 = vor.u32 %v6613_v26, %v5136_v25  ;;  %v6582_v35 = vld [vmem:[%s9722_s0 + $0xbc] sm:$0xf]  ;;  %v5426_v30 = vld [vmem:[%s9722_s0 + $0x3d0] sm:$0x30] }
  0x86   :  { %v5149_v39 = vor.u32 %v6582_v35, %v5146_v36  ;;  %v5434_v35 = vld [vmem:[%s9722_s0 + $0x3d8] sm:$0x30]  ;;  %v5429_v36 = vor.u32 %v6649_v28, %v5426_v30  ;;  %v5442_v28 = vld [vmem:[%s9722_s0 + $0x3e0] sm:$0x30]  ;;  %v5448_v30 = vld [vmem:[%s9722_s0 + $0x2e8] sm:$0xf] }
  0x8b   :  { %v7599_v48 = vpop.f32.mrf.mxu0  ;;  %v7602_v50 = vpop.f32.mrf.mxu1 }
  0x8e   :  { %5502 = vmatmul.msk.bf16.vlgmr.msra.gmra.mxu0 %vm732_vm2, %v7041_v29  ;;  %5503 = vmatmul.msk.bf16.vlgmr.msra.gmra.mxu1 %vm732_vm2, %v7041_v29 }
  0x8f   :  { %1498 = vmatpush.bf16.msra.mxu0 %v861_v49  ;;  %1512 = vmatpush.bf16.msra.mxu1 %v864_v51  ;;  %v5416_v49 = vld [vmem:[%s9722_s0 + $0x2c8] sm:$0xf] }
  0x90   :  { %5504 = vmatmul.msk.bf16.vlgmr.msra.gmra.mxu2 %vm732_vm2, %v7041_v29  ;;  %5505 = vmatmul.msk.bf16.vlgmr.msra.gmra.mxu3 %vm732_vm2, %v7041_v29  ;;  %v6680_v51 = vld [vmem:[%s9722_s0 + $0x3c4] sm:$0x30] }
  0x91   :  { %1526 = vmatpush.bf16.msra.mxu2 %v867_v54  ;;  %1540 = vmatpush.bf16.msra.mxu3 %v870_v57  ;;  %v5418_v54 = vld [vmem:[%s9722_s0 + $0x3c8] sm:$0x30]  ;;  %v5417_v56 = vor.u32 %v6680_v51, %v5416_v49  ;;  %v900_v49 = vand.u32 %v5429_v36, %v6990_v5  ;;  %v5168_v51 = vld [vmem:[%s9722_s0 + $0xd0] sm:$0xf] }
  0x92   :  { %v5421_v57 = vor.u32 %v6648_v53, %v5418_v54  ;;  %v6585_v54 = vld [vmem:[%s9722_s0 + $0xd4] sm:$0xf] }
  0x93   :  { %v7639_v2 = vpop.f32.mrf.mxu2  ;;  %v7641_v3 = vpop.f32.mrf.mxu0  ;;  %1499 = vmatpush.bf16.msra.mxu0 %v5121_v60  ;;  %1513 = vmatpush.bf16.msra.mxu1 %v5125_v63  ;;  %v885_v60 = vand.u32 %v5409_v52, %v6990_v5  ;;  %v888_v63 = vand.u32 %v5413_v55, %v6990_v5  ;;  %v891_v7 = vand.u32 %v5417_v56, %v6990_v5  ;;  %v6617_v52 = vld [vmem:[%s9722_s0 + $0x1cc] sm:$0xf0]  ;;  %v5170_v55 = vld [vmem:[%s9722_s0 + $0x1d0] sm:$0xf0]  ;;  %v7849_v56 = vld [vmem:[%s9723_s1] sm:$0xff] }
  0x94   :  { %v7643_v4 = vpop.f32.mrf.mxu3  ;;  %v7645_v6 = vpop.f32.mrf.mxu1  ;;  %v894_v10 = vand.u32 %v5421_v57, %v6990_v5 }
  0x95   :  { %1527 = vmatpush.bf16.msra.mxu2 %v5129_v0  ;;  %1541 = vmatpush.bf16.msra.mxu3 %v5133_v1  ;;  %v5152_v0 = vld [vmem:[%s9722_s0 + $0xc0] sm:$0xf] }
  0x96   :  { %v6615_v1 = vld [vmem:[%s9722_s0 + $0x1bc] sm:$0xf0] }
  0x97   :  { %v5153_v13 = vor.u32 %v6615_v1, %v5152_v0  ;;  %v6951_v0 = vmov 0   ;;  %v5169_v1 = vor.u32 %v6617_v52, %v5168_v51 }
  0x98   :  { %6947 = vset.pattern.permute.xlu0 %v6951_v0  ;;  %v6587_v0 = vld [vmem:[%s9722_s0 + $0xe4] sm:$0xf] }
  0x99   :  { %1928 = vperm.xlu0 %6947, %v1924_v9   ;;  %v6620_v9 = vld [vmem:[%s9722_s0 + $0x1e4] sm:$0xf0] }
  0x9b   :  { %v7671_v19 = vpop.f32.mrf.mxu2  ;;  %v7673_v20 = vpop.f32.mrf.mxu0 }
  0x9c   :  { %v7676_v22 = vpop.f32.mrf.mxu3  ;;  %v7678_v23 = vpop.f32.mrf.mxu1 }
  0x9e   :  { %5506 = vmatmul.msk.bf16.vlgmr.msrb.gmra.mxu0 %vm732_vm2, %v7041_v29  ;;  %5507 = vmatmul.msk.bf16.vlgmr.msrb.gmra.mxu1 %vm732_vm2, %v7041_v29 }
  0x9f   :  { %1554 = vmatpush.bf16.msrb.mxu0 %v873_v21  ;;  %1568 = vmatpush.bf16.msrb.mxu1 %v876_v24 }
  0xa0   :  { %5508 = vmatmul.msk.bf16.vlgmr.msrb.gmra.mxu2 %vm732_vm2, %v7041_v29  ;;  %5509 = vmatmul.msk.bf16.vlgmr.msrb.gmra.mxu3 %vm732_vm2, %v7041_v29 }
  0xa1   :  { %1582 = vmatpush.bf16.msrb.mxu2 %v879_v27  ;;  %1596 = vmatpush.bf16.msrb.mxu3 %v882_v31  ;;  %v5424_v27 = vld [vmem:[%s9722_s0 + $0x2d0] sm:$0xf]  ;;  %v5432_v31 = vld [vmem:[%s9722_s0 + $0x2d8] sm:$0xf] }
  0xa3   :  { %v7715_v40 = vpop.f32.mrf.mxu2  ;;  %v7717_v41 = vpop.f32.mrf.mxu0  ;;  %1555 = vmatpush.bf16.msrb.mxu0 %v5137_v34  ;;  %1569 = vmatpush.bf16.msrb.mxu1 %v5141_v37  ;;  %v6650_v34 = vld [vmem:[%s9722_s0 + $0x2dc] sm:$0xf]  ;;  %v5433_v37 = vor.u32 %v6682_v32, %v5432_v31  ;;  %v6684_v32 = vld [vmem:[%s9722_s0 + $0x3e4] sm:$0x30] }
  0xa4   :  { %v7719_v42 = vpop.f32.mrf.mxu3  ;;  %v7721_v43 = vpop.f32.mrf.mxu1  ;;  %v5449_v36 = vor.u32 %v6684_v32, %v5448_v30 }
  0xa5   :  { %9753 = vst [vmem:[#allocation2_spill] sm:$0xff] %v7719_v42  ;;  %1583 = vmatpush.bf16.msrb.mxu2 %v5145_v38  ;;  %1597 = vmatpush.bf16.msrb.mxu3 %v5149_v39  ;;  %v5437_v38 = vor.u32 %v6650_v34, %v5434_v35  ;;  %v903_v53 = vand.u32 %v5433_v37, %v6990_v5  ;;  %v5450_v34 = vld [vmem:[%s9722_s0 + $0x3e8] sm:$0x30] }
  0xa7   :  { %v906_v57 = vand.u32 %v5437_v38, %v6990_v5 }
  0xab   :  { %v7747_v58 = vpop.f32.mrf.mxu2  ;;  %v7749_v59 = vpop.f32.mrf.mxu0 }
  0xac   :  { %9754 = vst [vmem:[#allocation3_spill] sm:$0xff] %v7749_v59  ;;  %v7752_v61 = vpop.f32.mrf.mxu3  ;;  %v7754_v62 = vpop.f32.mrf.mxu1 }
  0xad   :  { %9755 = vst [vmem:[#allocation4_spill] sm:$0xff] %v7754_v62 }
  0xae   :  { %5510 = vmatmul.msk.bf16.vlgmr.msra.gmra.mxu0 %vm732_vm2, %v7041_v29  ;;  %5511 = vmatmul.msk.bf16.vlgmr.msra.gmra.mxu1 %vm732_vm2, %v7041_v29 }
  0xaf   :  { %1610 = vmatpush.bf16.msra.mxu0 %v885_v60  ;;  %1624 = vmatpush.bf16.msra.mxu1 %v888_v63  ;;  %v5176_v60 = vld [vmem:[%s9722_s0 + $0xd8] sm:$0xf] }
  0xb0   :  { %5512 = vmatmul.msk.bf16.vlgmr.msra.gmra.mxu2 %vm732_vm2, %v7041_v29  ;;  %5513 = vmatmul.msk.bf16.vlgmr.msra.gmra.mxu3 %vm732_vm2, %v7041_v29  ;;  %v6681_v29 = vld [vmem:[%s9722_s0 + $0x3cc] sm:$0x30]  ;;  %v6618_v63 = vld [vmem:[%s9722_s0 + $0x1d4] sm:$0xf0] }
  0xb1   :  { %1638 = vmatpush.bf16.msra.mxu2 %v891_v7  ;;  %1652 = vmatpush.bf16.msra.mxu3 %v894_v10  ;;  %v5425_v33 = vor.u32 %v6681_v29, %v5424_v27  ;;  %v6586_v7 = vld [vmem:[%s9722_s0 + $0xdc] sm:$0xf]  ;;  %v5173_v10 = vor.u32 %v6585_v54, %v5170_v55  ;;  %v5177_v11 = vor.u32 %v6618_v63, %v5176_v60  ;;  %v6683_v27 = vld [vmem:[%s9722_s0 + $0x3dc] sm:$0x30]  ;;  %v6651_v29 = vld [vmem:[%s9722_s0 + $0x2e4] sm:$0xf] }
  0xb2   :  { %v5181_v12 = vor.u32 %v6586_v7, %v5178_v8  ;;  %v5445_v35 = vor.u32 %v6651_v29, %v5442_v28  ;;  %v5184_v55 = vld [vmem:[%s9722_s0 + $0xe0] sm:$0xf]  ;;  %v915_v63 = vand.u32 %v5449_v36, %v6990_v5  ;;  %v5192_v8 = vld [vmem:[%s9722_s0 + $0xe8] sm:$0xf]  ;;  %v6653_v36 = vld [vmem:[%s9722_s0 + $0x2f4] sm:$0xf] }
  0xb3   :  { %v7791_v21 = vpop.f32.mrf.mxu2  ;;  %v7793_v24 = vpop.f32.mrf.mxu0  ;;  %1611 = vmatpush.bf16.msra.mxu0 %v5153_v13  ;;  %1625 = vmatpush.bf16.msra.mxu1 %v5157_v16  ;;  %v897_v45 = vand.u32 %v5425_v33, %v6990_v5  ;;  %v6652_v33 = vld [vmem:[%s9722_s0 + $0x2ec] sm:$0xf] }
  0xb4   :  { %9756 = vst [vmem:[#allocation5_spill] sm:$0xff] %v7791_v21  ;;  %v7795_v25 = vpop.f32.mrf.mxu3  ;;  %v7797_v26 = vpop.f32.mrf.mxu1  ;;  %v5453_v37 = vor.u32 %v6652_v33, %v5450_v34  ;;  %v912_v54 = vand.u32 %v5445_v35, %v6990_v5  ;;  %v5456_v34 = vld [vmem:[%s9722_s0 + $0x2f0] sm:$0xf] }
  0xb5   :  { %9757 = vst [vmem:[#allocation6_spill] sm:$0xff] %v7795_v25  ;;  %1639 = vmatpush.bf16.msra.mxu2 %v5161_v17  ;;  %1653 = vmatpush.bf16.msra.mxu3 %v5165_v18  ;;  %v1925_v17 = vld [vmem:[%s9724_s2 + $0x8] sm:$0xff]  ;;  %v5440_v18 = vld [vmem:[%s9722_s0 + $0x2e0] sm:$0xf]  ;;  %v6685_v35 = vld [vmem:[%s9722_s0 + $0x3ec] sm:$0x30] }
  0xb6   :  { %v5441_v31 = vor.u32 %v6683_v27, %v5440_v18  ;;  %1933 = vperm.xlu0 %6947, %v1925_v17   ;;  %v918_v7 = vand.u32 %v5453_v37, %v6990_v5  ;;  %v5193_v18 = vor.u32 %v6620_v9, %v5192_v8  ;;  %v5458_v37 = vld [vmem:[%s9722_s0 + $0x3f0] sm:$0x30] }
  0xbb   :  { %v7823_v39 = vpop.f32.mrf.mxu2  ;;  %v7825_v44 = vpop.f32.mrf.mxu0 }
  0xbc   :  { %9758 = vst [vmem:[#allocation7_spill] sm:$0xff] %v7825_v44  ;;  %v7828_v46 = vpop.f32.mrf.mxu3  ;;  %v7830_v47 = vpop.f32.mrf.mxu1 }
  0xbd   :  { %9759 = vst [vmem:[#allocation8_spill] sm:$0xff] %v7830_v47 }
  0xbe   :  { %5514 = vmatmul.msk.bf16.vlgmr.msrb.gmra.mxu0 %vm732_vm2, %v7849_v56  ;;  %5515 = vmatmul.msk.bf16.vlgmr.msrb.gmra.mxu1 %vm732_vm2, %v7849_v56 }
  0xbf   :  { %1666 = vmatpush.bf16.msrb.mxu0 %v897_v45  ;;  %1680 = vmatpush.bf16.msrb.mxu1 %v900_v49  ;;  %v909_v49 = vand.u32 %v5441_v31, %v6990_v5 }
  0xc0   :  { %5516 = vmatmul.msk.bf16.vlgmr.msrb.gmra.mxu2 %vm732_vm2, %v7849_v56  ;;  %5517 = vmatmul.msk.bf16.vlgmr.msrb.gmra.mxu3 %vm732_vm2, %v7849_v56 }
  0xc1   :  { %1694 = vmatpush.bf16.msrb.mxu2 %v903_v53  ;;  %1708 = vmatpush.bf16.msrb.mxu3 %v906_v57  ;;  %v6619_v57 = vld [vmem:[%s9722_s0 + $0x1dc] sm:$0xf0] }
  0xc3   :  { %v7875_v13 = vpop.f32.mrf.mxu2  ;;  %v7877_v14 = vpop.f32.mrf.mxu0  ;;  %1667 = vmatpush.bf16.msrb.mxu0 %v5169_v1  ;;  %1681 = vmatpush.bf16.msrb.mxu1 %v5173_v10  ;;  %v5186_v1 = vld [vmem:[%s9722_s0 + $0x1e0] sm:$0xf0]  ;;  %v5185_v10 = vor.u32 %v6619_v57, %v5184_v55  ;;  %v5457_v55 = vor.u32 %v6685_v35, %v5456_v34  ;;  %v6654_v57 = vld [vmem:[%s9722_s0 + $0x2fc] sm:$0xf]  ;;  %v6621_v34 = vld [vmem:[%s9722_s0 + $0x1ec] sm:$0xf0] }
  0xc4   :  { %9760 = vst [vmem:[#allocation9_spill] sm:$0xff] %v7875_v13  ;;  %v7879_v15 = vpop.f32.mrf.mxu3  ;;  %v7881_v16 = vpop.f32.mrf.mxu1  ;;  %v5189_v17 = vor.u32 %v6587_v0, %v5186_v1  ;;  %v5461_v0 = vor.u32 %v6653_v36, %v5458_v37  ;;  %v6589_v37 = vld [vmem:[%s9722_s0 + $0xf4] sm:$0xf] }
  0xc5   :  { %9761 = vst [vmem:[#allocation10_spill] sm:$0xff] %v7879_v15  ;;  %1695 = vmatpush.bf16.msrb.mxu2 %v5177_v11  ;;  %1709 = vmatpush.bf16.msrb.mxu3 %v5181_v12  ;;  %v6588_v11 = vld [vmem:[%s9722_s0 + $0xec] sm:$0xf] }
  0xc6   :  { %v5194_v12 = vld [vmem:[%s9722_s0 + $0x1e8] sm:$0xf0] }
  0xc7   :  { %v5197_v27 = vor.u32 %v6588_v11, %v5194_v12 }
  0xcb   :  { %v7910_v38 = vpop.f32.mrf.mxu2  ;;  %v7912_v45 = vpop.f32.mrf.mxu0 }
  0xcc   :  { %9762 = vst [vmem:[#allocation11_spill] sm:$0xff] %v7910_v38  ;;  %v7915_v51 = vpop.f32.mrf.mxu3  ;;  %v7919_v53 = vpop.f32.mrf.mxu1 }
  0xcd   :  { %9763 = vst [vmem:[#allocation12_spill] sm:$0xff] %v7915_v51 }
  0xce   :  { %5518 = vmatmul.msk.bf16.vlgmr.msra.gmra.mxu0 %vm732_vm2, %v7849_v56  ;;  %5519 = vmatmul.msk.bf16.vlgmr.msra.gmra.mxu1 %vm732_vm2, %v7849_v56 }
  0xcf   :  { %1722 = vmatpush.bf16.msra.mxu0 %v909_v49  ;;  %1736 = vmatpush.bf16.msra.mxu1 %v912_v54  ;;  %v5464_v49 = vld [vmem:[%s9722_s0 + $0x2f8] sm:$0xf] }
  0xd0   :  { %5520 = vmatmul.msk.bf16.vlgmr.msra.gmra.mxu2 %vm732_vm2, %v7849_v56  ;;  %5521 = vmatmul.msk.bf16.vlgmr.msra.gmra.mxu3 %vm732_vm2, %v7849_v56  ;;  %v6686_v54 = vld [vmem:[%s9722_s0 + $0x3f4] sm:$0x30] }
  0xd1   :  { %1750 = vmatpush.bf16.msra.mxu2 %v915_v63  ;;  %1764 = vmatpush.bf16.msra.mxu3 %v918_v7  ;;  %v5466_v63 = vld [vmem:[%s9722_s0 + $0x3f8] sm:$0x30]  ;;  %v5465_v1 = vor.u32 %v6686_v54, %v5464_v49  ;;  %v5202_v49 = vld [vmem:[%s9722_s0 + $0x1f0] sm:$0xf0] }
  0xd2   :  { %v5469_v7 = vor.u32 %v6654_v57, %v5466_v63  ;;  %v6622_v57 = vld [vmem:[%s9722_s0 + $0x1f4] sm:$0xf0] }
  0xd3   :  { %v7958_v29 = vpop.f32.mrf.mxu2  ;;  %v7960_v28 = vpop.f32.mrf.mxu0  ;;  %1723 = vmatpush.bf16.msra.mxu0 %v5185_v10  ;;  %1737 = vmatpush.bf16.msra.mxu1 %v5189_v17  ;;  %v921_v10 = vand.u32 %v5457_v55, %v6990_v5  ;;  %v927_v36 = vand.u32 %v5465_v1, %v6990_v5  ;;  %v5208_v55 = vld [vmem:[%s9722_s0 + $0xf8] sm:$0xf]  ;;  %v5205_v1 = vor.u32 %v6589_v37, %v5202_v49 }
  0xd4   :  { %v7964_v31 = vpop.f32.mrf.mxu3  ;;  %v7966_v32 = vpop.f32.mrf.mxu1  ;;  %v930_v54 = vand.u32 %v5469_v7, %v6990_v5  ;;  %v5209_v7 = vor.u32 %v6622_v57, %v5208_v55 }
  0xd5   :  { %1751 = vmatpush.bf16.msra.mxu2 %v5193_v18  ;;  %1765 = vmatpush.bf16.msra.mxu3 %v5197_v27  ;;  %v924_v18 = vand.u32 %v5461_v0, %v6990_v5  ;;  %v5200_v27 = vld [vmem:[%s9722_s0 + $0xf0] sm:$0xf]  ;;  %v6590_v0 = vld [vmem:[%s9722_s0 + $0xfc] sm:$0xf] }
  0xd6   :  { %v5201_v63 = vor.u32 %v6621_v34, %v5200_v27  ;;  %v5210_v5 = vld [vmem:[%s9722_s0 + $0x1f8] sm:$0xf0] }
  0xdb   :  { %v7994_v8 = vpop.f32.mrf.mxu2  ;;  %v7996_v9 = vpop.f32.mrf.mxu0 }
  0xdc   :  { %v7999_v11 = vpop.f32.mrf.mxu3  ;;  %v8003_v17 = vpop.f32.mrf.mxu1 }
  0xde   :  { %5522 = vmatmul.msk.bf16.vlgmr.msrb.gmra.mxu0 %vm732_vm2, %v7849_v56  ;;  %5523 = vmatmul.msk.bf16.vlgmr.msrb.gmra.mxu1 %vm732_vm2, %v7849_v56 }
  0xdf   :  { %1778 = vmatpush.bf16.msrb.mxu0 %v921_v10  ;;  %1792 = vmatpush.bf16.msrb.mxu1 %v924_v18  ;;  %v5213_v10 = vor.u32 %v6590_v0, %v5210_v5 }
  0xe0   :  { %5524 = vmatmul.msk.bf16.vlgmr.msrb.gmra.mxu2 %vm732_vm2, %v7849_v56  ;;  %5525 = vmatmul.msk.bf16.vlgmr.msrb.gmra.mxu3 %vm732_vm2, %v7849_v56 }
  0xe1   :  { %1806 = vmatpush.bf16.msrb.mxu2 %v927_v36  ;;  %1820 = vmatpush.bf16.msrb.mxu3 %v930_v54 }
  0xe3   :  { %v8042_v27 = vpop.f32.mrf.mxu2  ;;  %v8044_v34 = vpop.f32.mrf.mxu0  ;;  %1779 = vmatpush.bf16.msrb.mxu0 %v5201_v63  ;;  %1793 = vmatpush.bf16.msrb.mxu1 %v5205_v1 }
  0xe4   :  { %v8048_v12 = vpop.f32.mrf.mxu3  ;;  %v8050_v33 = vpop.f32.mrf.mxu1 }
  0xe5   :  { %9764 = vst [vmem:[#allocation13_spill] sm:$0xff] %v8048_v12  ;;  %1807 = vmatpush.bf16.msrb.mxu2 %v5209_v7  ;;  %1821 = vmatpush.bf16.msrb.mxu3 %v5213_v10 }
  0xeb   :  { %v8054_v36 = vpop.f32.mrf.mxu2  ;;  %v8056_v37 = vpop.f32.mrf.mxu0 }
  0xec   :  { %9765 = vst [vmem:[#allocation14_spill] sm:$0xff] %v8056_v37  ;;  %v8058_v49 = vpop.f32.mrf.mxu3  ;;  %v8062_v55 = vpop.f32.mrf.mxu1 }
  0xed   :  { %9766 = vst [vmem:[#allocation15_spill] sm:$0xff] %v8062_v55 }
  0xee   :  { %5526 = vmatmul.msk.bf16.vlgmr.msra.gmra.mxu0 %vm732_vm2, %v7849_v56  ;;  %5527 = vmatmul.msk.bf16.vlgmr.msra.gmra.mxu1 %vm732_vm2, %v7849_v56 }
  0xf0   :  { %5528 = vmatmul.msk.bf16.vlgmr.msra.gmra.mxu2 %vm732_vm2, %v7849_v56  ;;  %5529 = vmatmul.msk.bf16.vlgmr.msra.gmra.mxu3 %vm732_vm2, %v7849_v56 }
  0xf3   :  { %v8074_v63 = vpop.f32.mrf.mxu2  ;;  %v8076_v0 = vpop.f32.mrf.mxu0 }
  0xf4   :  { %9767 = vst [vmem:[#allocation16_spill] sm:$0xff] %v8074_v63  ;;  %v8080_v1 = vpop.f32.mrf.mxu3  ;;  %v8082_v7 = vpop.f32.mrf.mxu1 }
  0xf5   :  { %9768 = vst [vmem:[#allocation17_spill] sm:$0xff] %v8080_v1 }
  0xfb   :  { %v8086_v57 = vpop.f32.mrf.mxu2  ;;  %v8088_v54 = vpop.f32.mrf.mxu0 }
  0xfc   :  { %9769 = vst [vmem:[#allocation18_spill] sm:$0xff] %v8088_v54  ;;  %v8090_v18 = vpop.f32.mrf.mxu3  ;;  %v8094_v30 = vpop.f32.mrf.mxu1 }
  0xfd   :  { %9770 = vst [vmem:[#allocation19_spill] sm:$0xff] %v8094_v30 }
  0xfe   :  { %5530 = vmatmul.msk.bf16.vlgmr.msrb.gmra.mxu0 %vm732_vm2, %v7849_v56  ;;  %5531 = vmatmul.msk.bf16.vlgmr.msrb.gmra.mxu1 %vm732_vm2, %v7849_v56 }
 0x100   :  { %5532 = vmatmul.msk.bf16.vlgmr.msrb.gmra.mxu2 %vm732_vm2, %v7849_v56  ;;  %5533 = vmatmul.msk.bf16.vlgmr.msrb.gmra.mxu3 %vm732_vm2, %v7849_v56 }
 0x103   :  { %v8106_v10 = vpop.f32.mrf.mxu2  ;;  %v8108_v35 = vpop.f32.mrf.mxu0 }
 0x104   :  { %9771 = vst [vmem:[#allocation20_spill] sm:$0xff] %v8106_v10  ;;  %v8112_v5 = vpop.f32.mrf.mxu3  ;;  %v8114_v52 = vpop.f32.mrf.mxu1 }
 0x105   :  { %9772 = vst [vmem:[#allocation21_spill] sm:$0xff] %v8112_v5 }
 0x10b   :  { %v8118_v47 = vpop.f32.mrf.mxu2  ;;  %v1389_v54 = vpop.f32.mrf.mxu0 }
 0x10c   :  { %9773 = vst [vmem:[#allocation22_spill] sm:$0xff] %v8118_v47  ;;  %v8120_v44 = vpop.f32.mrf.mxu3  ;;  %v1403_v56 = vpop.f32.mrf.mxu1 }
 0x10d   :  { %9774 = vst [vmem:[#allocation23_spill] sm:$0xff] %v8120_v44 }
 0x113   :  { %v8122_v51 = vpop.f32.mrf.mxu2  ;;  %v8124_v38 = vpop.f32.mrf.mxu0 }
 0x114   :  { %v8126_v1 = vpop.f32.mrf.mxu3  ;;  %v8128_v60 = vpop.f32.mrf.mxu1 }
 0x11b   :  { %v8130_v10 = vpop.f32.mrf.mxu2  ;;  %v8132_v13 = vpop.f32.mrf.mxu0 }
 0x11c   :  { %v8134_v25 = vpop.f32.mrf.mxu3  ;;  %v8136_v30 = vpop.f32.mrf.mxu1 }
 0x123   :  { %v8138_v5 = vpop.f32.mrf.mxu2  ;;  %v8140_v15 = vpop.f32.mrf.mxu0 }
 0x124   :  { %9775 = vst [vmem:[#allocation24_spill] sm:$0xff] %v8140_v15  ;;  %v8142_v44 = vpop.f32.mrf.mxu3  ;;  %v8144_v47 = vpop.f32.mrf.mxu1 }
 0x125   :  { %9776 = vst [vmem:[#allocation25_spill] sm:$0xff] %v8142_v44 }
 0x126   :  { %9777 = vst [vmem:[#allocation26_spill] sm:$0xff] %v8144_v47 }
 0x12b   :  { %v8146_v63 = vpop.f32.mrf.mxu2  ;;  %v8148_v21 = vpop.f32.mrf.mxu0 }
 0x12c   :  { %9778 = vst [vmem:[#allocation27_spill] sm:$0xff] %v8146_v63  ;;  %v8150_v55 = vpop.f32.mrf.mxu3  ;;  %v8152_v62 = vpop.f32.mrf.mxu1 }
 0x12d   :  { %9779 = vst [vmem:[#allocation28_spill] sm:$0xff] %v8148_v21 }
 0x12e   :  { %9780 = vst [vmem:[#allocation29_spill] sm:$0xff] %v8152_v62  ;;  %v6710_v62 = vld [vmem:[%s9725_s3 + $0xb8] sm:$0xff] }
 0x12f   :  { %4559 = vmatpush.bf16.msra.mxu2 %v6710_v62  ;;  %v6717_v62 = vld [vmem:[%s9725_s3 + $0xf0] sm:$0xff] }
 0x133   :  { %v8154_v37 = vpop.f32.mrf.mxu2  ;;  %v8156_v59 = vpop.f32.mrf.mxu0 }
 0x134   :  { %9781 = vst [vmem:[#allocation30_spill] sm:$0xff] %v8154_v37  ;;  %v8158_v12 = vpop.f32.mrf.mxu3  ;;  %v8160_v42 = vpop.f32.mrf.mxu1 }
 0x135   :  { %9782 = vst [vmem:[#allocation31_spill] sm:$0xff] %v8156_v59  ;;  %v6718_v59 = vld [vmem:[%s9725_s3 + $0xf8] sm:$0xff] }
 0x136   :  { %9783 = vst [vmem:[#allocation32_spill] sm:$0xff] %v8158_v12  ;;  %4572 = vmatpush.bf16.msra.mxu3 %v6718_v59  ;;  %v6709_v59 = vld [vmem:[%s9725_s3 + $0xb0] sm:$0xff] }
 0x137   :  { %9784 = vst [vmem:[#allocation33_spill] sm:$0xff] %v8160_v42  ;;  %4560 = vmatpush.bf16.msra.mxu2 %v6709_v59  ;;  %v9795_v59 = vmax.f32 %v7599_v48, %v7912_v45  ;;  %v6692_v48 = vld [vmem:[%s9725_s3 + $0x28] sm:$0xff] }
 0x13a   :  { %4573 = vmatpush.bf16.msra.mxu3 %v6717_v62 }
 0x13b   :  { %v8162_v15 = vpop.f32.mrf.mxu2  ;;  %v8164_v44 = vpop.f32.mrf.mxu0 }
 0x13c   :  { %9785 = vst [vmem:[#allocation34_spill] sm:$0xff] %v8162_v15  ;;  %v8166_v47 = vpop.f32.mrf.mxu3  ;;  %v8168_v63 = vpop.f32.mrf.mxu1  ;;  %v6694_v15 = vld [vmem:[%s9725_s3 + $0x38] sm:$0xff] }
 0x13d   :  { %9786 = vst [vmem:[#allocation35_spill] sm:$0xff] %v8164_v44  ;;  %v6702_v44 = vld [vmem:[%s9725_s3 + $0x78] sm:$0xff]  ;;  %4533 = vmatpush.bf16.msra.mxu0 %v6694_v15 }
 0x13e   :  { %9787 = vst [vmem:[#allocation36_spill] sm:$0xff] %v8166_v47  ;;  %4546 = vmatpush.bf16.msra.mxu1 %v6702_v44 }
 0x13f   :  { %9788 = vst [vmem:[#allocation37_spill] sm:$0xff] %v8168_v63 }
 0x143   :  { %v8182_v63 = vpop.f32.mrf.mxu2  ;;  %v8184_v47 = vpop.f32.mrf.mxu0 }
 0x144   :  { %9789 = vst [vmem:[#allocation38_spill] sm:$0xff] %v8182_v63  ;;  %v8186_v42 = vpop.f32.mrf.mxu3  ;;  %v8188_v12 = vpop.f32.mrf.mxu1 }
 0x145   :  { %9790 = vst [vmem:[#allocation39_spill] sm:$0xff] %v8184_v47 }
 0x146   :  { %9791 = vst [vmem:[#allocation40_spill] sm:$0xff] %v8186_v42  ;;  %v6701_v42 = vld [vmem:[%s9725_s3 + $0x70] sm:$0xff] }
 0x147   :  { %9792 = vst [vmem:[#allocation41_spill] sm:$0xff] %v8188_v12  ;;  %v6693_v12 = vld [vmem:[%s9725_s3 + $0x30] sm:$0xff]  ;;  %4547 = vmatpush.bf16.msra.mxu1 %v6701_v42  ;;  %v6700_v42 = vld [vmem:[%s9725_s3 + $0x68] sm:$0xff] }
 0x148   :  { %4534 = vmatpush.bf16.msra.mxu0 %v6693_v12 }
 0x14b   :  { %v8196_v15 = vpop.f32.mrf.mxu2  ;;  %v1613_v44 = vpop.f32.mrf.mxu0  ;;  %4548 = vmatpush.bf16.msra.mxu1 %v6700_v42  ;;  %v6699_v42 = vld [vmem:[%s9725_s3 + $0x60] sm:$0xff] }
 0x14c   :  { %9793 = vst [vmem:[#allocation42_spill] sm:$0xff] %v8196_v15  ;;  %v8198_v63 = vpop.f32.mrf.mxu3  ;;  %v1860_v47 = vmax.f32 %v1389_v54, %v1613_v44  ;;  %v1627_v37 = vpop.f32.mrf.mxu1  ;;  %v6708_v54 = vld [vmem:[%s9725_s3 + $0xa8] sm:$0xff]  ;;  %4535 = vmatpush.bf16.msra.mxu0 %v6692_v48  ;;  %v6691_v48 = vld [vmem:[%s9725_s3 + $0x20] sm:$0xff] }
 0x14d   :  { %9794 = vst [vmem:[#allocation43_spill] sm:$0xff] %v8198_v63  ;;  %v1861_v21 = vmax.f32 %v1403_v56, %v1627_v37  ;;  %v6716_v44 = vld [vmem:[%s9725_s3 + $0xe8] sm:$0xff]  ;;  %v9796_v63 = vmax.f32 %v7602_v50, %v7919_v53  ;;  %4561 = vmatpush.bf16.msra.mxu2 %v6708_v54  ;;  %v1844_v50 = vmax.f32 %v7641_v3, %v7960_v28  ;;  %v6707_v56 = vld [vmem:[%s9725_s3 + $0xa0] sm:$0xff] }
 0x14e   :  { %v1892_v62 = vmax.f32 %v9795_v59, %v1860_v47  ;;  %4574 = vmatpush.bf16.msra.mxu3 %v6716_v44  ;;  %v8224_v47 = vpop.permute.xlu0 %1928  ;;  %v6715_v59 = vld [vmem:[%s9725_s3 + $0xe0] sm:$0xff]  ;;  %v1845_v54 = vmax.f32 %v7645_v6, %v7966_v32  ;;  %v9798_v6 = vmax.f32 %v7643_v4, %v7964_v31  ;;  %v1848_v4 = vmax.f32 %v7717_v41, %v8044_v34 }
 0x14f   :  { %v1893_v15 = vmax.f32 %v9796_v63, %v1861_v21  ;;  %4549 = vmatpush.bf16.msra.mxu1 %v6699_v42 }
 0x150   :  { %4536 = vmatpush.bf16.msra.mxu0 %v6691_v48  ;;  %v8265_v31 = vadd.f32 %v8224_v47, %v1892_v62  ;;  %v9799_v48 = vmax.f32 %v7673_v20, %v7996_v9  ;;  %v9803_v20 = vld [vmem:[#allocation24_spill] sm:$0xff] }
 0x151   :  { %4562 = vmatpush.bf16.msra.mxu2 %v6707_v56  ;;  %v8278_v62 = vadd.f32 %v8224_v47, %v1893_v15  ;;  %v6713_v15 = vld [vmem:[%s9725_s3 + $0xd0] sm:$0xff] }
 0x152   :  { %4575 = vmatpush.bf16.msra.mxu3 %v6715_v59  ;;  %v6705_v59 = vld [vmem:[%s9725_s3 + $0x90] sm:$0xff] }
 0x153   :  { %v1641_v45 = vpop.f32.mrf.mxu2  ;;  %v1615_v12 = vpop.f32.mrf.mxu0 }
 0x154   :  { %v1862_v21 = vmax.f32 %v8122_v51, %v1641_v45  ;;  %v1655_v53 = vpop.f32.mrf.mxu3  ;;  %v1876_v37 = vmax.f32 %v8124_v38, %v1615_v12  ;;  %v1629_v63 = vpop.f32.mrf.mxu1  ;;  %v9797_v51 = vmax.f32 %v7639_v2, %v7958_v29  ;;  %v6706_v2 = vld [vmem:[%s9725_s3 + $0x98] sm:$0xff]  ;;  %v1847_v45 = vmax.f32 %v7676_v22, %v7999_v11 }
 0x155   :  { %v1863_v44 = vmax.f32 %v8126_v1, %v1655_v53  ;;  %v1877_v3 = vmax.f32 %v8128_v60, %v1629_v63  ;;  %v6714_v29 = vld [vmem:[%s9725_s3 + $0xd8] sm:$0xff]  ;;  %v1846_v1 = vmax.f32 %v7671_v19, %v7994_v8  ;;  %4563 = vmatpush.bf16.msra.mxu2 %v6706_v2  ;;  %v1849_v19 = vmax.f32 %v7721_v43, %v8050_v33  ;;  %v6749_v43 = vld [vmem:[%s9725_s3 + $0x1f0] sm:$0xff] }
 0x156   :  { %v1894_v38 = vmax.f32 %v9797_v51, %v1862_v21  ;;  %v1908_v28 = vmax.f32 %v1844_v50, %v1876_v37  ;;  %4576 = vmatpush.bf16.msra.mxu3 %v6714_v29  ;;  %v6690_v12 = vld [vmem:[%s9725_s3 + $0x18] sm:$0xff]  ;;  %v1850_v22 = vmax.f32 %v7747_v58, %v8054_v36  ;;  %v1851_v21 = vmax.f32 %v7752_v61, %v8058_v49  ;;  %v6747_v61 = vld [vmem:[%s9725_s3 + $0x1e0] sm:$0xff] }
 0x157   :  { %v1895_v32 = vmax.f32 %v9798_v6, %v1863_v44  ;;  %v1909_v60 = vmax.f32 %v1845_v54, %v1877_v3  ;;  %v6698_v50 = vld [vmem:[%s9725_s3 + $0x58] sm:$0xff]  ;;  %4537 = vmatpush.bf16.msra.mxu0 %v6690_v12  ;;  %v1852_v54 = vmax.f32 %v7793_v24, %v8076_v0  ;;  %v8294_v44 = vpop.permute.xlu0 %1933  ;;  %v1968_v6 = vmax.f32 %v8265_v31, 0.0  ;;  %v6743_v24 = vld [vmem:[%s9725_s3 + $0x1c0] sm:$0xff] }
 0x158   :  { %4550 = vmatpush.bf16.msra.mxu1 %v6698_v50  ;;  %v6952_v2 = vmov 1983009808   ;;  %v8305_v12 = vadd.f32 %v8224_v47, %v1894_v38 }
 0x159   :  { %v2006_v29 = vunpack.c.l.s4 %v6952_v2  ;;  %4564 = vmatpush.bf16.msra.mxu2 %v6705_v59  ;;  %v8322_v38 = vadd.f32 %v8224_v47, %v1895_v32  ;;  %v2003_v32 = vrot.slane %v1968_v6, 4 }
 0x15a   :  { %4577 = vmatpush.bf16.msra.mxu3 %v6713_v15 }
 0x15b   :  { %v1643_v8 = vpop.f32.mrf.mxu2  ;;  %v1669_v11 = vpop.f32.mrf.mxu0 }
 0x15c   :  { %v1878_v53 = vmax.f32 %v8130_v10, %v1643_v8  ;;  %v1657_v37 = vpop.f32.mrf.mxu3  ;;  %v1864_v63 = vmax.f32 %v8132_v13, %v1669_v11  ;;  %v1683_v56 = vpop.f32.mrf.mxu1  ;;  %v1853_v10 = vmax.f32 %v7797_v26, %v8082_v7  ;;  %v8319_v8 = vadd.f32 %v8294_v44, %v1908_v28  ;;  %v6697_v11 = vld [vmem:[%s9725_s3 + $0x50] sm:$0xff] }
 0x15d   :  { %v1879_v13 = vmax.f32 %v8134_v25, %v1657_v37  ;;  %v1865_v3 = vmax.f32 %v8136_v30, %v1683_v56  ;;  %v9800_v25 = vmax.f32 %v7678_v23, %v8003_v17  ;;  %v8326_v17 = vadd.f32 %v8294_v44, %v1909_v60  ;;  %4551 = vmatpush.bf16.msra.mxu1 %v6697_v11  ;;  %v6688_v11 = vld [vmem:[%s9725_s3 + $0x8] sm:$0xff] }
 0x15e   :  { %v8298_v51 = vmax.f32 %v1846_v1, %v1878_v53  ;;  %v1896_v42 = vmax.f32 %v9799_v48, %v1864_v63  ;;  %v1969_v1 = vmax.f32 %v8278_v62, 0.0  ;;  %v8336_v53 = vunpack.c.0.s8 %v2006_v29 }
 0x15f   :  { %v8307_v50 = vmax.f32 %v1847_v45, %v1879_v13  ;;  %v1897_v30 = vmax.f32 %v9800_v25, %v1865_v3  ;;  %v6689_v45 = vld [vmem:[%s9725_s3 + $0x10] sm:$0xff]  ;;  %v1970_v60 = vmax.f32 %v8305_v12, 0.0  ;;  %v6704_v13 = vld [vmem:[%s9725_s3 + $0x88] sm:$0xff]  ;;  %v1984_v25 = vmax.f32 %v8319_v8, 0.0 }
 0x160   :  { %v1940_v31 = vadd.f32 %v8224_v47, %v1896_v42  ;;  %v2227_v56 = vrot.slane %v1969_v1, 4  ;;  %4538 = vmatpush.bf16.msra.mxu0 %v6689_v45  ;;  %v6712_v3 = vld [vmem:[%s9725_s3 + $0xc8] sm:$0xff]  ;;  %v1985_v45 = vmax.f32 %v8326_v17, 0.0  ;;  %4565 = vmatpush.bf16.msra.mxu2 %v6704_v13  ;;  %v9834_v26 = vmax.f32 %v7823_v39, %v8086_v57 }
 0x161   :  { %v1941_v23 = vadd.f32 %v8224_v47, %v1897_v30  ;;  %v1971_v30 = vmax.f32 %v8322_v38, 0.0  ;;  %4578 = vmatpush.bf16.msra.mxu3 %v6712_v3  ;;  %v2015_v37 = vrot.slane %v1970_v60, 4  ;;  %v8416_v41 = vadd.f32 %v8294_v44, %v8307_v50  ;;  %v6724_v8 = vld [vmem:[%s9725_s3 + $0x128] sm:$0xff] }
 0x162   :  { %v1972_v62 = vmax.f32 %v1940_v31, 0.0 }
 0x163   :  { %v1973_v63 = vmax.f32 %v1941_v23, 0.0  ;;  %v1697_v59 = vpop.f32.mrf.mxu2  ;;  %v1671_v15 = vpop.f32.mrf.mxu0 }
 0x164   :  { %v2000_v48 = vrot.slane %v1972_v62, 4  ;;  %v2004_v42 = vsel %vm2001_vm3, %v1972_v62, %v2003_v32  ;;  %v1866_v2 = vmax.f32 %v8138_v5, %v1697_v59  ;;  %v1711_v29 = vpop.f32.mrf.mxu3  ;;  %v6696_v5 = vld [vmem:[%s9725_s3 + $0x48] sm:$0xff]  ;;  %v9802_v59 = vld [vmem:[#allocation25_spill] sm:$0xff]  ;;  %v1685_v3 = vpop.f32.mrf.mxu1  ;;  %4539 = vmatpush.bf16.msra.mxu0 %v6688_v11  ;;  %v2239_v11 = vrot.slane %v1971_v30, 4 }
 0x165   :  { %v2225_v31 = vrot.slane %v1973_v63, 4  ;;  %v2228_v23 = vsel %vm2001_vm3, %v1973_v63, %v2227_v56  ;;  %v8361_v32 = vperm.slane %v2004_v42, %v8336_v53  ;;  %v9801_v63 = vmax.f32 %v7715_v40, %v8042_v27  ;;  %4552 = vmatpush.bf16.msra.mxu1 %v6696_v5  ;;  %v6703_v40 = vld [vmem:[%s9725_s3 + $0x80] sm:$0xff] }
 0x166   :  { %v2002_v62 = vsel %vm2001_vm3, %v2000_v48, %v1968_v6  ;;  %v1867_v13 = vmax.f32 %v9802_v59, %v1711_v29  ;;  %v8371_v9 = vperm.slane %v2228_v23, %v8336_v53  ;;  %v1880_v6 = vmax.f32 %v9803_v20, %v1671_v15  ;;  %v6711_v27 = vld [vmem:[%s9725_s3 + $0xc0] sm:$0xff]  ;;  %v6742_v15 = vld [vmem:[%s9725_s3 + $0x1b8] sm:$0xff]  ;;  %4566 = vmatpush.bf16.msra.mxu2 %v6703_v40 }
 0x167   :  { %v1898_v56 = vmax.f32 %v9801_v63, %v1866_v2  ;;  %v2226_v28 = vsel %vm2001_vm3, %v2225_v31, %v1969_v1  ;;  %v8381_v48 = vperm.slane %v2002_v62, %v8336_v53  ;;  %v9804_v42 = vld [vmem:[#allocation2_spill] sm:$0xff]  ;;  %v9805_v2 = vld [vmem:[#allocation13_spill] sm:$0xff]  ;;  %v2115_v20 = vrot.slane %v1984_v25, 4  ;;  %4579 = vmatpush.bf16.msra.mxu3 %v6711_v27 }
 0x168   :  { %v9806_v29 = vmax.f32 %v9804_v42, %v9805_v2  ;;  %v6750_v23 = vld [vmem:[%s9725_s3 + $0x1f8] sm:$0xff]  ;;  %v8398_v5 = vperm.slane %v2226_v28, %v8336_v53  ;;  %v1912_v62 = vmax.f32 %v1848_v4, %v1880_v6  ;;  %v9807_v63 = vld [vmem:[#allocation26_spill] sm:$0xff]  ;;  %v8412_v28 = vadd.f32 %v8294_v44, %v8298_v51 }
 0x169   :  { %v1942_v1 = vadd.f32 %v8224_v47, %v1898_v56  ;;  %v1881_v56 = vmax.f32 %v9807_v63, %v1685_v3  ;;  %v6687_v59 = vld [vmem:[%s9725_s3] sm:$0xff]  ;;  %v6726_v3 = vld [vmem:[%s9725_s3 + $0x138] sm:$0xff]  ;;  %v2063_v51 = vrot.slane %v8361_v32, 4  ;;  %v2287_v40 = vrot.slane %v8371_v9, 4 }
 0x16a   :  { %v1899_v31 = vmax.f32 %v9806_v29, %v1867_v13  ;;  %v6695_v13 = vld [vmem:[%s9725_s3 + $0x40] sm:$0xff]  ;;  %4611 = vmatpush.bf16.msrb.mxu2 %v6742_v15  ;;  %v6734_v6 = vld [vmem:[%s9725_s3 + $0x178] sm:$0xff]  ;;  %v1956_v50 = vadd.f32 %v8294_v44, %v1912_v62  ;;  %4540 = vmatpush.bf16.msra.mxu0 %v6687_v59  ;;  %v6741_v62 = vld [vmem:[%s9725_s3 + $0x1b0] sm:$0xff]  ;;  %v2051_v33 = vrot.slane %v8381_v48, 4 }
 0x16b   :  { %v1974_v34 = vmax.f32 %v1942_v1, 0.0  ;;  %4624 = vmatpush.bf16.msrb.mxu3 %v6750_v23  ;;  %v1913_v27 = vmax.f32 %v1849_v19, %v1881_v56  ;;  %v1699_v1 = vpop.f32.mrf.mxu2  ;;  %4553 = vmatpush.bf16.msra.mxu1 %v6695_v13  ;;  %v2275_v19 = vrot.slane %v8398_v5, 4  ;;  %v8442_v56 = vpop.f32.mrf.mxu0 }
 0x16c   :  { %v1943_v4 = vadd.f32 %v8224_v47, %v1899_v31  ;;  %v9808_v31 = vld [vmem:[#allocation27_spill] sm:$0xff]  ;;  %v1713_v23 = vpop.f32.mrf.mxu3  ;;  %v1988_v63 = vmax.f32 %v1956_v50, 0.0 }
 0x16d   :  { %v2013_v42 = vrot.slane %v1974_v34, 4  ;;  %v2016_v2 = vsel %vm2001_vm3, %v1974_v34, %v2015_v37  ;;  %v1882_v15 = vmax.f32 %v9808_v31, %v1699_v1  ;;  %v1957_v1 = vadd.f32 %v8294_v44, %v1913_v27 }
 0x16e   :  { %v1975_v29 = vmax.f32 %v1943_v4, 0.0  ;;  %4585 = vmatpush.bf16.msrb.mxu0 %v6726_v3  ;;  %v2024_v37 = vperm.slane %v2016_v2, %v8336_v53  ;;  %4612 = vmatpush.bf16.msrb.mxu2 %v6741_v62  ;;  %v6725_v3 = vld [vmem:[%s9725_s3 + $0x130] sm:$0xff]  ;;  %v2113_v36 = vrot.slane %v1988_v63, 4  ;;  %v6748_v2 = vld [vmem:[%s9725_s3 + $0x1e8] sm:$0xff]  ;;  %v1986_v62 = vmax.f32 %v8412_v28, 0.0 }
 0x16f   :  { %4598 = vmatpush.bf16.msrb.mxu1 %v6734_v6  ;;  %v2014_v59 = vsel %vm2001_vm3, %v2013_v42, %v1970_v60  ;;  %v1914_v4 = vmax.f32 %v1850_v22, %v1882_v15  ;;  %4625 = vmatpush.bf16.msrb.mxu3 %v6749_v43  ;;  %v6733_v6 = vld [vmem:[%s9725_s3 + $0x170] sm:$0xff]  ;;  %v2116_v22 = vsel %vm2001_vm3, %v1988_v63, %v2115_v20  ;;  %v8467_v42 = vpop.f32.mrf.mxu1 }
 0x170   :  { %v2237_v13 = vrot.slane %v1975_v29, 4  ;;  %v2240_v34 = vsel %vm2001_vm3, %v1975_v29, %v2239_v11  ;;  %v2020_v12 = vperm.slane %v2014_v59, %v8336_v53  ;;  %v2061_v60 = vrot.slane %v2024_v37, 4 }
 0x171   :  { %v8459_v50 = vsel %vm2001_vm3, %v2024_v37, %v2063_v51  ;;  %v2248_v11 = vperm.slane %v2240_v34, %v8336_v53  ;;  %v6740_v51 = vld [vmem:[%s9725_s3 + $0x1a8] sm:$0xff]  ;;  %v1883_v15 = vmax.f32 %v8150_v55, %v1713_v23  ;;  %v2114_v55 = vsel %vm2001_vm3, %v2113_v36, %v1984_v25  ;;  %v9810_v36 = vld [vmem:[#allocation29_spill] sm:$0xff] }
 0x172   :  { %v2238_v58 = vsel %vm2001_vm3, %v2237_v13, %v1971_v30  ;;  %4586 = vmatpush.bf16.msrb.mxu0 %v6725_v3  ;;  %v2049_v38 = vrot.slane %v2020_v12, 4  ;;  %v8476_v30 = vsel %vm2001_vm3, %v2020_v12, %v2051_v33  ;;  %v8480_v20 = vsel %vm2001_vm3, %v2061_v60, %v8361_v32  ;;  %4613 = vmatpush.bf16.msrb.mxu2 %v6740_v51  ;;  %v6732_v25 = vld [vmem:[%s9725_s3 + $0x168] sm:$0xff] }
 0x173   :  { %4599 = vmatpush.bf16.msrb.mxu1 %v6733_v6  ;;  %v2244_v27 = vperm.slane %v2238_v58, %v8336_v53  ;;  %v2285_v29 = vrot.slane %v2248_v11, 4  ;;  %v8484_v31 = vsel %vm2001_vm3, %v2248_v11, %v2287_v40  ;;  %4626 = vmatpush.bf16.msrb.mxu3 %v6748_v2  ;;  %v1753_v37 = vpop.f32.mrf.mxu2  ;;  %v8503_v40 = vperm.slane %v2116_v22, %v8336_v53  ;;  %v9809_v6 = vld [vmem:[#allocation28_spill] sm:$0xff]  ;;  %v9811_v51 = vld [vmem:[#allocation3_spill] sm:$0xff] }
 0x174   :  { %v8490_v43 = vsel %vm2001_vm3, %v2049_v38, %v8381_v48  ;;  %v2339_v48 = vrot.slane %v1985_v45, 4  ;;  %v1767_v28 = vpop.f32.mrf.mxu3  ;;  %v1987_v23 = vmax.f32 %v8416_v41, 0.0  ;;  %v1989_v59 = vmax.f32 %v1957_v1, 0.0  ;;  %v8530_v1 = vpop.f32.mrf.mxu0 }
 0x175   :  { %v2273_v33 = vrot.slane %v2244_v27, 4  ;;  %v8493_v32 = vsel %vm2001_vm3, %v2244_v27, %v2275_v19  ;;  %v8497_v63 = vsel %vm2001_vm3, %v2285_v29, %v8371_v9  ;;  %v8513_v9 = vperm.slane %v2114_v55, %v8336_v53  ;;  %v9815_v55 = vld [vmem:[#allocation32_spill] sm:$0xff] }
 0x176   :  { %v6953_v13 = vmov 1934713408   ;;  %v1958_v3 = vadd.f32 %v8294_v44, %v1914_v4  ;;  %v1868_v12 = vmax.f32 %v9809_v6, %v8442_v56  ;;  %v2127_v60 = vrot.slane %v1986_v62, 4  ;;  %4587 = vmatpush.bf16.msrb.mxu0 %v6724_v8  ;;  %v6739_v4 = vld [vmem:[%s9725_s3 + $0x1a0] sm:$0xff]  ;;  %v9816_v6 = vld [vmem:[#allocation4_spill] sm:$0xff] }
 0x177   :  { %v8510_v19 = vsel %vm2001_vm3, %v2273_v33, %v8398_v5  ;;  %v2054_v34 = vunpack.c.l.s4 %v6953_v13  ;;  %v1915_v5 = vmax.f32 %v1851_v21, %v1883_v15  ;;  %v2337_v11 = vrot.slane %v1989_v59, 4  ;;  %4600 = vmatpush.bf16.msrb.mxu1 %v6732_v25  ;;  %v9814_v15 = vld [vmem:[#allocation30_spill] sm:$0xff]  ;;  %4614 = vmatpush.bf16.msrb.mxu2 %v6739_v4  ;;  %v6746_v4 = vld [vmem:[%s9725_s3 + $0x1d8] sm:$0xff] }
 0x178   :  { %v2340_v58 = vsel %vm2001_vm3, %v1989_v59, %v2339_v48  ;;  %v1869_v22 = vmax.f32 %v9810_v36, %v8467_v42  ;;  %v1990_v21 = vmax.f32 %v1958_v3, 0.0  ;;  %v9812_v42 = vld [vmem:[#allocation14_spill] sm:$0xff]  ;;  %v2351_v27 = vrot.slane %v1987_v23, 4  ;;  %4627 = vmatpush.bf16.msrb.mxu3 %v6747_v61 }
 0x179   :  { %v8539_v49 = vperm.slane %v2340_v58, %v8336_v53  ;;  %v1959_v56 = vadd.f32 %v8294_v44, %v1915_v5  ;;  %v9813_v2 = vmax.f32 %v9811_v51, %v9812_v42  ;;  %v2338_v29 = vsel %vm2001_vm3, %v2337_v11, %v1985_v45  ;;  %v6723_v59 = vld [vmem:[%s9725_s3 + $0x120] sm:$0xff]  ;;  %v9820_v51 = vld [vmem:[#allocation16_spill] sm:$0xff] }
 0x17a   :  { %v1870_v33 = vmax.f32 %v9814_v15, %v1753_v37  ;;  %v1871_v48 = vmax.f32 %v9815_v55, %v1767_v28  ;;  %v6731_v8 = vld [vmem:[%s9725_s3 + $0x160] sm:$0xff]  ;;  %v2175_v25 = vrot.slane %v8503_v40, 4  ;;  %v8560_v13 = vperm.slane %v2338_v29, %v8336_v53  ;;  %v8563_v37 = vpop.f32.mrf.mxu1  ;;  %4588 = vmatpush.bf16.msrb.mxu0 %v6723_v59  ;;  %v9823_v29 = vld [vmem:[#allocation17_spill] sm:$0xff] }
 0x17b   :  { %v1900_v38 = vmax.f32 %v9813_v2, %v1868_v12  ;;  %v2125_v17 = vrot.slane %v1990_v21, 4  ;;  %v2128_v45 = vsel %vm2001_vm3, %v1990_v21, %v2127_v60  ;;  %v2163_v28 = vrot.slane %v8513_v9, 4  ;;  %v9817_v12 = vld [vmem:[#allocation15_spill] sm:$0xff]  ;;  %v8570_v36 = vpop.f32.mrf.mxu2  ;;  %4601 = vmatpush.bf16.msrb.mxu1 %v6731_v8  ;;  %v6738_v60 = vld [vmem:[%s9725_s3 + $0x198] sm:$0xff]  ;;  %v9822_v2 = vld [vmem:[#allocation6_spill] sm:$0xff] }
 0x17c   :  { %v2136_v3 = vperm.slane %v2128_v45, %v8336_v53  ;;  %v1991_v5 = vmax.f32 %v1959_v56, 0.0  ;;  %v9818_v11 = vmax.f32 %v9816_v6, %v9817_v12  ;;  %v9819_v56 = vld [vmem:[#allocation5_spill] sm:$0xff]  ;;  %v9824_v15 = vmax.f32 %v9822_v2, %v9823_v29  ;;  %v8588_v59 = vpop.f32.mrf.mxu3  ;;  %4615 = vmatpush.bf16.msrb.mxu2 %v6738_v60  ;;  %4628 = vmatpush.bf16.msrb.mxu3 %v6746_v4  ;;  %v6735_v12 = vld [vmem:[%s9725_s3 + $0x180] sm:$0xff] }
 0x17d   :  { %v2126_v61 = vsel %vm2001_vm3, %v2125_v17, %v1986_v62  ;;  %v8580_v21 = vadd.f32 %v8224_v47, %v1900_v38  ;;  %v6722_v38 = vld [vmem:[%s9725_s3 + $0x118] sm:$0xff]  ;;  %v9825_v17 = vld [vmem:[#allocation22_spill] sm:$0xff] }
 0x17e   :  { %v1901_v58 = vmax.f32 %v9818_v11, %v1869_v22  ;;  %v9821_v22 = vmax.f32 %v9819_v56, %v9820_v51  ;;  %v1903_v55 = vmax.f32 %v9824_v15, %v1871_v48  ;;  %v2132_v8 = vperm.slane %v2126_v61, %v8336_v53  ;;  %v9826_v48 = vld [vmem:[#allocation11_spill] sm:$0xff]  ;;  %v9828_v56 = vld [vmem:[#allocation12_spill] sm:$0xff]  ;;  %4589 = vmatpush.bf16.msrb.mxu0 %v6722_v38 }
 0x17f   :  { %v2173_v45 = vrot.slane %v2136_v3, 4  ;;  %v8592_v6 = vsel %vm2001_vm3, %v2136_v3, %v2175_v25  ;;  %v2349_v62 = vrot.slane %v1991_v5, 4  ;;  %v9827_v11 = vld [vmem:[#allocation23_spill] sm:$0xff]  ;;  %v8604_v51 = vunpack.c.0.s8 %v2054_v34  ;;  %v6737_v34 = vld [vmem:[%s9725_s3 + $0x190] sm:$0xff] }
 0x180   :  { %v1902_v42 = vmax.f32 %v9821_v22, %v1870_v33  ;;  %v6730_v33 = vld [vmem:[%s9725_s3 + $0x158] sm:$0xff]  ;;  %v2352_v25 = vsel %vm2001_vm3, %v1991_v5, %v2351_v27  ;;  %v2161_v3 = vrot.slane %v2132_v8, 4  ;;  %v8608_v60 = vsel %vm2001_vm3, %v2132_v8, %v2163_v28  ;;  %v6745_v27 = vld [vmem:[%s9725_s3 + $0x1d0] sm:$0xff]  ;;  %v1781_v8 = vpop.f32.mrf.mxu0  ;;  %4616 = vmatpush.bf16.msrb.mxu2 %v6737_v34  ;;  %v6744_v34 = vld [vmem:[%s9725_s3 + $0x1c8] sm:$0xff] }
 0x181   :  { %v8612_v22 = vsel %vm2001_vm3, %v2173_v45, %v8503_v40  ;;  %v2350_v2 = vsel %vm2001_vm3, %v2349_v62, %v1987_v23  ;;  %4602 = vmatpush.bf16.msrb.mxu1 %v6730_v33  ;;  %v2387_v28 = vrot.slane %v8560_v13, 4  ;;  %v2399_v5 = vrot.slane %v8539_v49, 4  ;;  %v6721_v45 = vld [vmem:[%s9725_s3 + $0x110] sm:$0xff]  ;;  %4629 = vmatpush.bf16.msrb.mxu3 %v6745_v27 }
 0x182   :  { %v2356_v40 = vperm.slane %v2350_v2, %v8336_v53  ;;  %v2360_v41 = vperm.slane %v2352_v25, %v8336_v53  ;;  %v8629_v23 = vsel %vm2001_vm3, %v2161_v3, %v8513_v9  ;;  %v9750_v4 = vmax.f32 %v8580_v21, 0.0  ;;  %v6729_v62 = vld [vmem:[%s9725_s3 + $0x150] sm:$0xff]  ;;  %4590 = vmatpush.bf16.msrb.mxu0 %v6721_v45  ;;  %v6736_v2 = vld [vmem:[%s9725_s3 + $0x188] sm:$0xff] }
 0x183   :  { %v8633_v29 = vadd.f32 %v8224_v47, %v1901_v58  ;;  %v8636_v15 = vadd.f32 %v8224_v47, %v1902_v42  ;;  %v8652_v42 = vperm.slane %v8476_v30, %v8604_v51  ;;  %v8656_v25 = vperm.slane %v8459_v50, %v8604_v51 }
 0x184   :  { %v2385_v9 = vrot.slane %v2356_v40, 4  ;;  %v8645_v38 = vsel %vm2001_vm3, %v2356_v40, %v2387_v28  ;;  %v2397_v33 = vrot.slane %v2360_v41, 4  ;;  %v8648_v58 = vsel %vm2001_vm3, %v2360_v41, %v2399_v5  ;;  %v9830_v28 = vld [vmem:[#allocation33_spill] sm:$0xff]  ;;  %v1795_v40 = vpop.f32.mrf.mxu1  ;;  %v1809_v41 = vpop.f32.mrf.mxu2  ;;  %4617 = vmatpush.bf16.msrb.mxu2 %v6736_v2  ;;  %v9833_v2 = vld [vmem:[#allocation35_spill] sm:$0xff] }
 0x185   :  { %v8659_v3 = vadd.f32 %v8224_v47, %v1903_v55  ;;  %4603 = vmatpush.bf16.msrb.mxu1 %v6729_v62  ;;  %v9829_v55 = vld [vmem:[#allocation31_spill] sm:$0xff]  ;;  %v1885_v5 = vmax.f32 %v9830_v28, %v8563_v37  ;;  %v2027_v45 = vrot.slane %v9750_v4, 4  ;;  %v1977_v62 = vmax.f32 %v8633_v29, 0.0  ;;  %4630 = vmatpush.bf16.msrb.mxu3 %v6744_v34  ;;  %v9839_v4 = vld [vmem:[#allocation18_spill] sm:$0xff] }
 0x186   :  { %v8669_v30 = vsel %vm2001_vm3, %v2385_v9, %v8560_v13  ;;  %v8673_v50 = vsel %vm2001_vm3, %v2397_v33, %v8539_v49  ;;  %v1884_v27 = vmax.f32 %v9829_v55, %v8530_v1  ;;  %v1978_v13 = vmax.f32 %v8636_v15, 0.0  ;;  %v9831_v9 = vld [vmem:[#allocation34_spill] sm:$0xff]  ;;  %v6720_v1 = vld [vmem:[%s9725_s3 + $0x108] sm:$0xff]  ;;  %v9832_v55 = vld [vmem:[#allocation36_spill] sm:$0xff] }
 0x187   :  { %v1886_v61 = vmax.f32 %v9831_v9, %v8570_v36  ;;  %v6728_v49 = vld [vmem:[%s9725_s3 + $0x148] sm:$0xff]  ;;  %v1917_v33 = vmax.f32 %v1853_v10, %v1885_v5  ;;  %v1887_v36 = vmax.f32 %v9832_v55, %v8588_v59  ;;  %v1872_v28 = vmax.f32 %v9833_v2, %v1781_v8  ;;  %v1823_v9 = vpop.f32.mrf.mxu3  ;;  %v9836_v59 = vld [vmem:[#allocation38_spill] sm:$0xff]  ;;  %4591 = vmatpush.bf16.msrb.mxu0 %v6720_v1 }
 0x188   :  { %v1916_v37 = vmax.f32 %v1852_v54, %v1884_v27  ;;  %v9835_v54 = vld [vmem:[#allocation37_spill] sm:$0xff]  ;;  %v1874_v8 = vmax.f32 %v9836_v59, %v1809_v41  ;;  %v9837_v5 = vmax.f32 %v7828_v46, %v8090_v18  ;;  %v9838_v2 = vld [vmem:[#allocation7_spill] sm:$0xff]  ;;  %v9847_v59 = vld [vmem:[#allocation40_spill] sm:$0xff]  ;;  %4618 = vmatpush.bf16.msrb.mxu2 %v6735_v12  ;;  %v2251_v46 = vrot.slane %v1977_v62, 4 }
 0x189   :  { %v1918_v7 = vmax.f32 %v9834_v26, %v1886_v61  ;;  %v1873_v10 = vmax.f32 %v9835_v54, %v1795_v40  ;;  %4604 = vmatpush.bf16.msrb.mxu1 %v6728_v49  ;;  %v8716_v27 = vadd.f32 %v8294_v44, %v1917_v33  ;;  %v9840_v39 = vmax.f32 %v9838_v2, %v9839_v4  ;;  %v9841_v40 = vld [vmem:[#allocation8_spill] sm:$0xff]  ;;  %v9842_v41 = vld [vmem:[#allocation19_spill] sm:$0xff]  ;;  %v1783_v2 = vpop.f32.mrf.mxu0 }
 0x18a   :  { %v8713_v34 = vadd.f32 %v8294_v44, %v1916_v37  ;;  %v1919_v55 = vmax.f32 %v9837_v5, %v1887_v36  ;;  %v9843_v1 = vmax.f32 %v9841_v40, %v9842_v41  ;;  %v9844_v37 = vld [vmem:[#allocation9_spill] sm:$0xff]  ;;  %v9845_v26 = vld [vmem:[#allocation20_spill] sm:$0xff]  ;;  %v1875_v0 = vmax.f32 %v9847_v59, %v1823_v9  ;;  %4631 = vmatpush.bf16.msrb.mxu3 %v6743_v24 }
 0x18b   :  { %v1904_v57 = vmax.f32 %v9840_v39, %v1872_v28  ;;  %v8725_v61 = vadd.f32 %v8294_v44, %v1918_v7  ;;  %v9846_v54 = vmax.f32 %v9844_v37, %v9845_v26  ;;  %v9751_v4 = vmax.f32 %v8716_v27, 0.0  ;;  %v9849_v9 = vld [vmem:[#allocation21_spill] sm:$0xff] }
 0x18c   :  { %v1905_v49 = vmax.f32 %v9843_v1, %v1873_v10  ;;  %v9752_v18 = vmax.f32 %v8713_v34, 0.0  ;;  %v2039_v28 = vrot.slane %v1978_v13, 4  ;;  %v9851_v39 = vmax.f32 %v8659_v3, 0.0  ;;  %v6719_v1 = vld [vmem:[%s9725_s3 + $0x100] sm:$0xff] }
 0x18d   :  { %v1906_v33 = vmax.f32 %v9846_v54, %v1874_v8  ;;  %v1948_v36 = vadd.f32 %v8224_v47, %v1904_v57  ;;  %v9848_v8 = vld [vmem:[#allocation10_spill] sm:$0xff]  ;;  %v1994_v41 = vmax.f32 %v8725_v61, 0.0  ;;  %v8750_v57 = vadd.f32 %v8294_v44, %v1919_v55  ;;  %4592 = vmatpush.bf16.msrb.mxu0 %v6719_v1 }
 0x18e   :  { %v1949_v7 = vadd.f32 %v8224_v47, %v1905_v49  ;;  %v9850_v12 = vmax.f32 %v9848_v8, %v9849_v9  ;;  %v2263_v40 = vrot.slane %v9851_v39, 4  ;;  %v6727_v49 = vld [vmem:[%s9725_s3 + $0x140] sm:$0xff]  ;;  %v8763_v55 = vrot.slane %v9751_v4, 4 }
 0x18f   :  { %v1950_v10 = vadd.f32 %v8224_v47, %v1906_v33  ;;  %v1980_v24 = vmax.f32 %v1948_v36, 0.0  ;;  %v9852_v36 = vld [vmem:[#allocation39_spill] sm:$0xff]  ;;  %4605 = vmatpush.bf16.msrb.mxu1 %v6727_v49  ;;  %v9854_v29 = vmax.f32 %v7877_v14, %v8108_v35 }
 0x190   :  { %v1907_v5 = vmax.f32 %v9850_v12, %v1875_v0  ;;  %v2139_v0 = vrot.slane %v9752_v18, 4  ;;  %v1981_v37 = vmax.f32 %v1949_v7, 0.0  ;;  %v1888_v8 = vmax.f32 %v9852_v36, %v1783_v2 }
 0x191   :  { %v1982_v26 = vmax.f32 %v1950_v10, 0.0  ;;  %v2025_v33 = vrot.slane %v1980_v24, 4  ;;  %v2028_v59 = vsel %vm2001_vm3, %v1980_v24, %v2027_v45  ;;  %v9853_v10 = vmax.f32 %v8580_v21, 0.0 }
 0x192   :  { %v1951_v54 = vadd.f32 %v8224_v47, %v1907_v5  ;;  %v2036_v9 = vperm.slane %v2028_v59, %v8336_v53  ;;  %v2249_v12 = vrot.slane %v1981_v37, 4  ;;  %v2252_v39 = vsel %vm2001_vm3, %v1981_v37, %v2251_v46 }
 0x193   :  { %v2037_v7 = vrot.slane %v1982_v26, 4  ;;  %v2026_v47 = vsel %vm2001_vm3, %v2025_v33, %v9853_v10  ;;  %v2260_v5 = vperm.slane %v2252_v39, %v8336_v53  ;;  %v2040_v4 = vsel %vm2001_vm3, %v1982_v26, %v2039_v28  ;;  %v1825_v39 = vpop.f32.mrf.mxu3 }
 0x194   :  { %v1983_v18 = vmax.f32 %v1951_v54, 0.0  ;;  %v1995_v45 = vmax.f32 %v8750_v57, 0.0  ;;  %v2032_v2 = vperm.slane %v2026_v47, %v8336_v53  ;;  %v2250_v24 = vsel %vm2001_vm3, %v2249_v12, %v1977_v62  ;;  %v1797_v62 = vpop.f32.mrf.mxu1  ;;  %v1811_v12 = vpop.f32.mrf.mxu2  ;;  %v9856_v47 = vld [vmem:[#allocation41_spill] sm:$0xff] }
 0x195   :  { %v2038_v46 = vsel %vm2001_vm3, %v2037_v7, %v1978_v13  ;;  %v2087_v21 = vrot.slane %v2036_v9, 4  ;;  %v2256_v1 = vperm.slane %v2250_v24, %v8336_v53  ;;  %v2048_v28 = vperm.slane %v2040_v4, %v8336_v53 }
 0x196   :  { %v2044_v49 = vperm.slane %v2038_v46, %v8336_v53  ;;  %v2075_v37 = vrot.slane %v2032_v2, 4  ;;  %v2261_v26 = vrot.slane %v1983_v18, 4  ;;  %v2264_v54 = vsel %vm2001_vm3, %v1983_v18, %v2263_v40 }
 0x197   :  { %v1920_v33 = vmax.f32 %v9854_v29, %v1888_v8  ;;  %v2299_v59 = vrot.slane %v2256_v1, 4  ;;  %v2311_v15 = vrot.slane %v2260_v5, 4  ;;  %v2085_v36 = vrot.slane %v2048_v28, 4 }
 0x198   :  { %v8790_v13 = vsel %vm2001_vm3, %v2048_v28, %v2087_v21  ;;  %v2073_v7 = vrot.slane %v2044_v49, 4  ;;  %v8793_v4 = vsel %vm2001_vm3, %v2044_v49, %v2075_v37  ;;  %v9855_v10 = vmax.f32 %v8659_v3, 0.0  ;;  %v9857_v49 = vld [vmem:[#allocation42_spill] sm:$0xff]  ;;  %v9858_v3 = vld [vmem:[#allocation43_spill] sm:$0xff] }
 0x199   :  { %v2272_v14 = vperm.slane %v2264_v54, %v8336_v53  ;;  %v8800_v35 = vsel %vm2001_vm3, %v2085_v36, %v2036_v9  ;;  %v1964_v8 = vadd.f32 %v8294_v44, %v1920_v33  ;;  %v1889_v24 = vmax.f32 %v9856_v47, %v1797_v62 }
 0x19a   :  { %v2262_v18 = vsel %vm2001_vm3, %v2261_v26, %v9855_v10  ;;  %v1890_v28 = vmax.f32 %v9857_v49, %v1811_v12  ;;  %v1891_v37 = vmax.f32 %v9858_v3, %v1825_v39  ;;  %v2151_v26 = vrot.slane %v1994_v41, 4 }
 0x19b   :  { %v2268_v40 = vperm.slane %v2262_v18, %v8336_v53  ;;  %v2309_v46 = vrot.slane %v2272_v14, 4  ;;  %v8806_v21 = vsel %vm2001_vm3, %v2272_v14, %v2311_v15  ;;  %v1996_v29 = vmax.f32 %v1964_v8, 0.0 }
 0x19c   :  { %v9859_v33 = vmax.f32 %v7881_v16, %v8114_v52  ;;  %v9860_v15 = vmax.f32 %v9826_v48, %v9825_v17  ;;  %v9861_v39 = vmax.f32 %v9828_v56, %v9827_v11  ;;  %v2375_v11 = vrot.slane %v1995_v45, 4 }
 0x19d   :  { %v2297_v54 = vrot.slane %v2268_v40, 4  ;;  %v2300_v9 = vsel %vm2001_vm3, %v2268_v40, %v2299_v59  ;;  %v8814_v36 = vsel %vm2001_vm3, %v2309_v46, %v2260_v5  ;;  %v2137_v18 = vrot.slane %v1996_v29, 4 }
 0x19e   :  { %v1921_v62 = vmax.f32 %v9859_v33, %v1889_v24  ;;  %v1922_v12 = vmax.f32 %v9860_v15, %v1890_v28  ;;  %v1923_v10 = vmax.f32 %v9861_v39, %v1891_v37  ;;  %v2140_v14 = vsel %vm2001_vm3, %v1996_v29, %v2139_v0 }
 0x19f   :  { %v8828_v59 = vperm.slane %v8490_v43, %v8604_v51  ;;  %v2074_v5 = vsel %vm2001_vm3, %v2073_v7, %v2032_v2  ;;  %v2148_v16 = vperm.slane %v2140_v14, %v8336_v53  ;;  %v9862_v56 = vmax.f32 %v8713_v34, 0.0 }
 0x1a0   :  { %v1965_v52 = vadd.f32 %v8294_v44, %v1921_v62  ;;  %v1966_v17 = vadd.f32 %v8294_v44, %v1922_v12  ;;  %v1967_v48 = vadd.f32 %v8294_v44, %v1923_v10  ;;  %v2080_v43 = vperm.slane %v2074_v5, %v8604_v51 }
 0x1a1   :  { %v2138_v0 = vsel %vm2001_vm3, %v2137_v18, %v9862_v56  ;;  %v2099_v40 = vrot.slane %v8828_v59, 4  ;;  %v2280_v47 = vperm.slane %v8510_v19, %v8604_v51  ;;  %v2199_v44 = vrot.slane %v2148_v16, 4 }
 0x1a2   :  { %v8843_v2 = vperm.slane %v2138_v0, %v8336_v53  ;;  %v1997_v7 = vmax.f32 %v1965_v52, 0.0  ;;  %v1998_v8 = vmax.f32 %v1966_v17, 0.0  ;;  %v1999_v24 = vmax.f32 %v1967_v48, 0.0 }
 0x1a3   :  { %v2100_v46 = vsel %vm2001_vm3, %v2080_v43, %v2099_v40  ;;  %v2298_v34 = vsel %vm2001_vm3, %v2297_v54, %v2256_v1  ;;  %v9863_v15 = vmax.f32 %v8716_v27, 0.0  ;;  %v8880_v5 = vperm.slane %v8480_v20, %v8604_v51 }
 0x1a4   :  { %v2187_v49 = vrot.slane %v8843_v2, 4  ;;  %v2361_v28 = vrot.slane %v1997_v7, 4  ;;  %v2364_v3 = vsel %vm2001_vm3, %v1997_v7, %v8763_v55  ;;  %v2149_v37 = vrot.slane %v1998_v8, 4 }
 0x1a5   :  { %v2372_v29 = vperm.slane %v2364_v3, %v8336_v53  ;;  %v2152_v33 = vsel %vm2001_vm3, %v1998_v8, %v2151_v26  ;;  %v2373_v62 = vrot.slane %v1999_v24, 4  ;;  %v2376_v19 = vsel %vm2001_vm3, %v1999_v24, %v2375_v11  ;;  %v6782_v24 = vld [vmem:[%s9725_s3 + $0x2f8] sm:$0xff] }
 0x1a6   :  { %v2362_v12 = vsel %vm2001_vm3, %v2361_v28, %v9863_v15  ;;  %v2150_v1 = vsel %vm2001_vm3, %v2149_v37, %v1994_v41  ;;  %v2160_v54 = vperm.slane %v2152_v33, %v8336_v53  ;;  %v2384_v55 = vperm.slane %v2376_v19, %v8336_v53 }
 0x1a7   :  { %v8864_v39 = vperm.slane %v2362_v12, %v8336_v53  ;;  %v2423_v10 = vrot.slane %v2372_v29, 4  ;;  %v8867_v26 = vperm.slane %v2150_v1, %v8336_v53  ;;  %v2374_v27 = vsel %vm2001_vm3, %v2373_v62, %v1995_v45  ;;  %v6781_v1 = vld [vmem:[%s9725_s3 + $0x2f0] sm:$0xff] }
 0x1a8   :  { %v2197_v18 = vrot.slane %v2160_v54, 4  ;;  %v8873_v61 = vsel %vm2001_vm3, %v2160_v54, %v2199_v44  ;;  %v8876_v41 = vperm.slane %v2374_v27, %v8336_v53  ;;  %v2421_v14 = vrot.slane %v2384_v55, 4 }
 0x1a9   :  { %v2284_v52 = vperm.slane %v8493_v32, %v8604_v51  ;;  %v2411_v17 = vrot.slane %v8864_v39, 4  ;;  %v8887_v57 = vsel %vm2001_vm3, %v8867_v26, %v2187_v49  ;;  %v8891_v45 = vperm.slane %v8497_v63, %v8604_v51  ;;  %v6774_v32 = vld [vmem:[%s9725_s3 + $0x2b8] sm:$0xff] }
 0x1aa   :  { %v8894_v53 = vsel %vm2001_vm3, %v2197_v18, %v2148_v16  ;;  %v8897_v48 = vsel %vm2001_vm3, %v2421_v14, %v2372_v29  ;;  %v8900_v20 = vsel %vm2001_vm3, %v2384_v55, %v2423_v10  ;;  %v2451_v56 = vpack.c.bf16 %v2100_v46, %v2100_v46  ;;  %v6772_v18 = vld [vmem:[%s9725_s3 + $0x2a8] sm:$0xff] }
 0x1ab   :  { %v8907_v11 = vsel %vm2001_vm3, %v8876_v41, %v2411_v17  ;;  %v2304_v63 = vperm.slane %v2298_v34, %v8604_v51  ;;  %v2323_v0 = vrot.slane %v2280_v47, 4  ;;  %v2097_v16 = vrot.slane %v2080_v43, 4 }
 0x1ac   :  { %v2084_v40 = vperm.slane %v8793_v4, %v8604_v51  ;;  %v2103_v7 = vrot.slane %v8652_v42, 4  ;;  %v2308_v8 = vperm.slane %v2300_v9, %v8604_v51  ;;  %4567 = vmatmul.bf16.vlgmr.msra.gmra.mxu2 %v2451_v56  ;;  %v2327_v46 = vrot.slane %v2284_v52, 4  ;;  %v6758_v9 = vld [vmem:[%s9725_s3 + $0x238] sm:$0xff] }
 0x1ad   :  { %v2324_v44 = vsel %vm2001_vm3, %v2304_v63, %v2323_v0  ;;  %v2321_v49 = vrot.slane %v2304_v63, 4  ;;  %v2092_v34 = vperm.slane %v8800_v35, %v8604_v51  ;;  %4663 = vmatpush.bf16.msra.mxu2 %v6774_v32  ;;  %v2098_v4 = vsel %vm2001_vm3, %v2097_v16, %v8828_v59  ;;  %v6766_v35 = vld [vmem:[%s9725_s3 + $0x278] sm:$0xff]  ;;  %v6773_v59 = vld [vmem:[%s9725_s3 + $0x2b0] sm:$0xff] }
 0x1ae   :  { %v2452_v43 = vpack.c.bf16 %v2324_v44, %v2324_v44  ;;  %v8926_v28 = vsel %vm2001_vm3, %v2084_v40, %v2103_v7  ;;  %v2101_v3 = vrot.slane %v2084_v40, 4  ;;  %v2296_v37 = vperm.slane %v8484_v31, %v8604_v51 }
 0x1af   :  { %v2449_v29 = vpack.c.bf16 %v2098_v4, %v2098_v4  ;;  %v2322_v33 = vsel %vm2001_vm3, %v2321_v49, %v2280_v47  ;;  %v8938_v62 = vsel %vm2001_vm3, %v2308_v8, %v2327_v46  ;;  %v2096_v19 = vperm.slane %v8790_v13, %v8604_v51 }
 0x1b0   :  { %4580 = vmatmul.bf16.vlgmr.msra.gmra.mxu3 %v2452_v43  ;;  %v2450_v15 = vpack.c.bf16 %v2322_v33, %v2322_v33  ;;  %v8944_v31 = vsel %vm2001_vm3, %v2101_v3, %v8652_v42  ;;  %v2325_v47 = vrot.slane %v2308_v8, 4  ;;  %v2320_v12 = vperm.slane %v8806_v21, %v8604_v51  ;;  %v6757_v42 = vld [vmem:[%s9725_s3 + $0x230] sm:$0xff]  ;;  %v6756_v8 = vld [vmem:[%s9725_s3 + $0x228] sm:$0xff]  ;;  %v6770_v33 = vld [vmem:[%s9725_s3 + $0x298] sm:$0xff] }
 0x1b1   :  { %4676 = vmatpush.bf16.msra.mxu3 %v6782_v24  ;;  %4541 = vmatmul.bf16.vlgmr.msra.gmra.mxu0 %v2449_v29  ;;  %v2107_v54 = vrot.slane %v8880_v5, 4  ;;  %v2316_v13 = vperm.slane %v8814_v36, %v8604_v51  ;;  %v2331_v55 = vrot.slane %v8891_v45, 4  ;;  %v2105_v10 = vrot.slane %v2092_v34, 4  ;;  %v6765_v36 = vld [vmem:[%s9725_s3 + $0x270] sm:$0xff] }
 0x1b2   :  { %4554 = vmatmul.bf16.vlgmr.msra.gmra.mxu1 %v2450_v15  ;;  %4637 = vmatpush.bf16.msra.mxu0 %v6758_v9  ;;  %v8959_v21 = vsel %vm2001_vm3, %v2325_v47, %v2284_v52  ;;  %v2111_v27 = vrot.slane %v8656_v25, 4  ;;  %v2335_v32 = vrot.slane %v2296_v37, 4  ;;  %v8976_v56 = vperm.slane %v8592_v6, %v8604_v51  ;;  %v6780_v6 = vld [vmem:[%s9725_s3 + $0x2e8] sm:$0xff]  ;;  %v6755_v9 = vld [vmem:[%s9725_s3 + $0x220] sm:$0xff] }
 0x1b3   :  { %4650 = vmatpush.bf16.msra.mxu1 %v6766_v35  ;;  %4664 = vmatpush.bf16.msra.mxu2 %v6773_v59  ;;  %v8969_v14 = vsel %vm2001_vm3, %v2092_v34, %v2107_v54  ;;  %v8972_v17 = vsel %vm2001_vm3, %v2316_v13, %v2331_v55  ;;  %v2329_v52 = vrot.slane %v2316_v13, 4  ;;  %v8980_v63 = vsel %vm2001_vm3, %v2105_v10, %v8880_v5  ;;  %v6754_v54 = vld [vmem:[%s9725_s3 + $0x218] sm:$0xff] }
 0x1b4   :  { %v8983_v0 = vsel %vm2001_vm3, %v2096_v19, %v2111_v27  ;;  %v8987_v16 = vperm.slane %v8608_v60, %v8604_v51  ;;  %v8991_v40 = vperm.slane %v8612_v22, %v8604_v51  ;;  %v9001_v7 = vsel %vm2001_vm3, %v2320_v12, %v2335_v32 }
 0x1b5   :  { %4677 = vmatpush.bf16.msra.mxu3 %v6781_v1  ;;  %v8998_v5 = vsel %vm2001_vm3, %v2329_v52, %v8891_v45  ;;  %v9005_v60 = vperm.slane %v8645_v38, %v8604_v51  ;;  %v9009_v22 = vperm.slane %v8648_v58, %v8604_v51  ;;  %v2109_v44 = vrot.slane %v2096_v19, 4  ;;  %v6764_v38 = vld [vmem:[%s9725_s3 + $0x268] sm:$0xff]  ;;  %v6771_v58 = vld [vmem:[%s9725_s3 + $0x2a0] sm:$0xff] }
 0x1b6   :  { %4638 = vmatpush.bf16.msra.mxu0 %v6757_v42  ;;  %v2333_v24 = vrot.slane %v2320_v12, 4  ;;  %v2185_v45 = vrot.slane %v8867_v26, 4  ;;  %v2409_v49 = vrot.slane %v8876_v41, 4  ;;  %v2168_v46 = vperm.slane %v8629_v23, %v8604_v51 }
 0x1b7   :  { %4651 = vmatpush.bf16.msra.mxu1 %v6765_v36  ;;  %4665 = vmatpush.bf16.msra.mxu2 %v6772_v18  ;;  %v2392_v34 = vperm.slane %v8669_v30, %v8604_v51  ;;  %v9028_v26 = vperm.slane %v8673_v50, %v8604_v51  ;;  %v9032_v41 = vperm.slane %v8873_v61, %v8604_v51  ;;  %v6779_v30 = vld [vmem:[%s9725_s3 + $0x2e0] sm:$0xff]  ;;  %v2439_v29 = vrot.slane %v9005_v60, 4 }
 0x1b8   :  { %v9036_v43 = vsel %vm2001_vm3, %v2109_v44, %v8656_v25  ;;  %v9039_v4 = vsel %vm2001_vm3, %v2333_v24, %v2296_v37  ;;  %v9043_v23 = vperm.slane %v8900_v20, %v8604_v51  ;;  %v2455_v50 = vpack.c.bf16 %v8926_v28, %v8926_v28  ;;  %v6763_v28 = vld [vmem:[%s9725_s3 + $0x260] sm:$0xff] }
 0x1b9   :  { %4678 = vmatpush.bf16.msra.mxu3 %v6780_v6  ;;  %v2456_v61 = vpack.c.bf16 %v8938_v62, %v8938_v62  ;;  %v2215_v25 = vrot.slane %v8987_v16, 4  ;;  %v2211_v20 = vrot.slane %v2168_v46, 4  ;;  %v2196_v3 = vperm.slane %v8887_v57, %v8604_v51 }
 0x1ba   :  { %4639 = vmatpush.bf16.msra.mxu0 %v6756_v8  ;;  %v2420_v37 = vperm.slane %v8907_v11, %v8604_v51  ;;  %v2186_v35 = vsel %vm2001_vm3, %v2185_v45, %v8843_v2  ;;  %v2410_v57 = vsel %vm2001_vm3, %v2409_v49, %v8864_v39  ;;  %v2435_v59 = vrot.slane %v2392_v34, 4  ;;  %v6778_v2 = vld [vmem:[%s9725_s3 + $0x2d8] sm:$0xff] }
 0x1bb   :  { %4652 = vmatpush.bf16.msra.mxu1 %v6764_v38  ;;  %4666 = vmatpush.bf16.msra.mxu2 %v6771_v58  ;;  %v2204_v11 = vperm.slane %v8894_v53, %v8604_v51  ;;  %v2192_v62 = vperm.slane %v2186_v35, %v8604_v51  ;;  %v2416_v19 = vperm.slane %v2410_v57, %v8604_v51  ;;  %v2213_v53 = vrot.slane %v2196_v3, 4  ;;  %v6805_v35 = vld [vmem:[%s9725_s3 + $0x3b0] sm:$0xff] }
 0x1bc   :  { %v9076_v15 = vsel %vm2001_vm3, %v2196_v3, %v2215_v25  ;;  %v9079_v47 = vsel %vm2001_vm3, %v2420_v37, %v2439_v29  ;;  %4619 = vmatmul.bf16.vlgmr.msrb.gmra.mxu2 %v2455_v50  ;;  %v2453_v39 = vpack.c.bf16 %v8944_v31, %v8944_v31  ;;  %v2437_v12 = vrot.slane %v2420_v37, 4  ;;  %v6814_v3 = vld [vmem:[%s9725_s3 + $0x3f8] sm:$0xff]  ;;  %v6751_v37 = vld [vmem:[%s9725_s3 + $0x200] sm:$0xff] }
 0x1bd   :  { %4679 = vmatpush.bf16.msra.mxu3 %v6779_v30  ;;  %v2428_v1 = vperm.slane %v8897_v48, %v8604_v51  ;;  %v9092_v13 = vsel %vm2001_vm3, %v2192_v62, %v2211_v20  ;;  %v9095_v55 = vsel %vm2001_vm3, %v2416_v19, %v2435_v59  ;;  %v2209_v42 = vrot.slane %v2192_v62, 4  ;;  %v6762_v51 = vld [vmem:[%s9725_s3 + $0x258] sm:$0xff]  ;;  %v6769_v48 = vld [vmem:[%s9725_s3 + $0x290] sm:$0xff]  ;;  %v6759_v29 = vld [vmem:[%s9725_s3 + $0x240] sm:$0xff] }
 0x1be   :  { %4640 = vmatpush.bf16.msra.mxu0 %v6755_v9  ;;  %v2433_v10 = vrot.slane %v2416_v19, 4  ;;  %v2454_v31 = vpack.c.bf16 %v8959_v21, %v8959_v21  ;;  %v9107_v27 = vsel %vm2001_vm3, %v2213_v53, %v8987_v16  ;;  %v2219_v36 = vrot.slane %v8991_v40, 4  ;;  %v6777_v16 = vld [vmem:[%s9725_s3 + $0x2d0] sm:$0xff]  ;;  %v6776_v9 = vld [vmem:[%s9725_s3 + $0x2c8] sm:$0xff]  ;;  %v6806_v20 = vld [vmem:[%s9725_s3 + $0x3b8] sm:$0xff] }
 0x1bf   :  { %4653 = vmatpush.bf16.msra.mxu1 %v6763_v28  ;;  %4667 = vmatpush.bf16.msra.mxu2 %v6770_v33  ;;  %v2217_v18 = vrot.slane %v2204_v11, 4  ;;  %v9111_v52 = vsel %vm2001_vm3, %v2209_v42, %v2168_v46  ;;  %v9118_v32 = vsel %vm2001_vm3, %v2437_v12, %v9005_v60  ;;  %v2443_v6 = vrot.slane %v9028_v26, 4  ;;  %v6753_v60 = vld [vmem:[%s9725_s3 + $0x210] sm:$0xff]  ;;  %v6790_v28 = vld [vmem:[%s9725_s3 + $0x338] sm:$0xff]  ;;  %v6803_v53 = vld [vmem:[%s9725_s3 + $0x3a0] sm:$0xff] }
 0x1c0   :  { %4632 = vmatmul.bf16.vlgmr.msrb.gmra.mxu3 %v2456_v61  ;;  %v9114_v21 = vsel %vm2001_vm3, %v2433_v10, %v2392_v34  ;;  %v2441_v8 = vrot.slane %v2428_v1, 4  ;;  %v2223_v44 = vrot.slane %v8976_v56, 4  ;;  %v2447_v24 = vrot.slane %v9009_v22, 4  ;;  %v6761_v46 = vld [vmem:[%s9725_s3 + $0x250] sm:$0xff]  ;;  %v6768_v34 = vld [vmem:[%s9725_s3 + $0x288] sm:$0xff]  ;;  %v6798_v33 = vld [vmem:[%s9725_s3 + $0x378] sm:$0xff] }
 0x1c1   :  { %4680 = vmatpush.bf16.msra.mxu3 %v6778_v2  ;;  %4593 = vmatmul.bf16.vlgmr.msrb.gmra.mxu0 %v2453_v39  ;;  %v9130_v45 = vsel %vm2001_vm3, %v2204_v11, %v2219_v36  ;;  %v9133_v49 = vsel %vm2001_vm3, %v2428_v1, %v2443_v6  ;;  %v9137_v38 = vsel %vm2001_vm3, %v2217_v18, %v8991_v40  ;;  %v2221_v58 = vrot.slane %v9032_v41, 4  ;;  %v6813_v59 = vld [vmem:[%s9725_s3 + $0x3f0] sm:$0xff]  ;;  %v6812_v39 = vld [vmem:[%s9725_s3 + $0x3e8] sm:$0xff]  ;;  %v6811_v12 = vld [vmem:[%s9725_s3 + $0x3e0] sm:$0xff] }
 0x1c2   :  { %4606 = vmatmul.bf16.vlgmr.msrb.gmra.mxu1 %v2454_v31  ;;  %4641 = vmatpush.bf16.msra.mxu0 %v6754_v54  ;;  %v2445_v30 = vrot.slane %v9043_v23, 4  ;;  %v9149_v50 = vsel %vm2001_vm3, %v2441_v8, %v9028_v26  ;;  %v9153_v40 = vsel %vm2001_vm3, %v9032_v41, %v2223_v44  ;;  %v9157_v61 = vsel %vm2001_vm3, %v9043_v23, %v2447_v24  ;;  %v6752_v26 = vld [vmem:[%s9725_s3 + $0x208] sm:$0xff]  ;;  %v6767_v23 = vld [vmem:[%s9725_s3 + $0x280] sm:$0xff]  ;;  %v6789_v62 = vld [vmem:[%s9725_s3 + $0x330] sm:$0xff] }
 0x1c3   :  { %4654 = vmatpush.bf16.msra.mxu1 %v6762_v51  ;;  %4668 = vmatpush.bf16.msra.mxu2 %v6769_v48  ;;  %v9161_v25 = vsel %vm2001_vm3, %v2221_v58, %v8976_v56  ;;  %v6760_v56 = vld [vmem:[%s9725_s3 + $0x248] sm:$0xff]  ;;  %v2459_v57 = vpack.c.bf16 %v8969_v14, %v8969_v14  ;;  %v2460_v11 = vpack.c.bf16 %v8972_v17, %v8972_v17  ;;  %v6797_v14 = vld [vmem:[%s9725_s3 + $0x370] sm:$0xff]  ;;  %v6787_v1 = vld [vmem:[%s9725_s3 + $0x320] sm:$0xff] }
 0x1c4   :  { %v9171_v41 = vsel %vm2001_vm3, %v2445_v30, %v9009_v22  ;;  %v6775_v22 = vld [vmem:[%s9725_s3 + $0x2c0] sm:$0xff]  ;;  %v2457_v19 = vpack.c.bf16 %v8980_v63, %v8980_v63  ;;  %v2458_v2 = vpack.c.bf16 %v8998_v5, %v8998_v5  ;;  %v6804_v17 = vld [vmem:[%s9725_s3 + $0x3a8] sm:$0xff]  ;;  %v6802_v42 = vld [vmem:[%s9725_s3 + $0x398] sm:$0xff] }
 0x1c5   :  { %4681 = vmatpush.bf16.msra.mxu3 %v6777_v16  ;;  %v6788_v63 = vld [vmem:[%s9725_s3 + $0x328] sm:$0xff]  ;;  %v6795_v54 = vld [vmem:[%s9725_s3 + $0x360] sm:$0xff]  ;;  %v6810_v10 = vld [vmem:[%s9725_s3 + $0x3d8] sm:$0xff] }
 0x1c6   :  { %4642 = vmatpush.bf16.msra.mxu0 %v6753_v60  ;;  %v6796_v5 = vld [vmem:[%s9725_s3 + $0x368] sm:$0xff]  ;;  %v6786_v31 = vld [vmem:[%s9725_s3 + $0x318] sm:$0xff]  ;;  %v6801_v48 = vld [vmem:[%s9725_s3 + $0x390] sm:$0xff] }
 0x1c7   :  { %4655 = vmatpush.bf16.msra.mxu1 %v6761_v46  ;;  %4669 = vmatpush.bf16.msra.mxu2 %v6768_v34  ;;  %v6794_v51 = vld [vmem:[%s9725_s3 + $0x358] sm:$0xff]  ;;  %v6809_v36 = vld [vmem:[%s9725_s3 + $0x3d0] sm:$0xff]  ;;  %v6800_v16 = vld [vmem:[%s9725_s3 + $0x388] sm:$0xff] }
 0x1c8   :  { %v6785_v18 = vld [vmem:[%s9725_s3 + $0x310] sm:$0xff]  ;;  %v6808_v8 = vld [vmem:[%s9725_s3 + $0x3c8] sm:$0xff]  ;;  %v6799_v60 = vld [vmem:[%s9725_s3 + $0x380] sm:$0xff] }
 0x1c9   :  { %4682 = vmatpush.bf16.msra.mxu3 %v6776_v9  ;;  %v6793_v6 = vld [vmem:[%s9725_s3 + $0x350] sm:$0xff]  ;;  %v6784_v44 = vld [vmem:[%s9725_s3 + $0x308] sm:$0xff]  ;;  %v6807_v58 = vld [vmem:[%s9725_s3 + $0x3c0] sm:$0xff] }
 0x1ca   :  { %4643 = vmatpush.bf16.msra.mxu0 %v6752_v26  ;;  %v6792_v24 = vld [vmem:[%s9725_s3 + $0x348] sm:$0xff]  ;;  %v6838_v46 = vld [vmem:[%s9725_s3 + $0x4b8] sm:$0xff]  ;;  %v6783_v30 = vld [vmem:[%s9725_s3 + $0x300] sm:$0xff] }
 0x1cb   :  { %4656 = vmatpush.bf16.msra.mxu1 %v6760_v56  ;;  %4670 = vmatpush.bf16.msra.mxu2 %v6767_v23  ;;  %v6846_v34 = vld [vmem:[%s9725_s3 + $0x4f8] sm:$0xff]  ;;  %v6791_v9 = vld [vmem:[%s9725_s3 + $0x340] sm:$0xff]  ;;  %v2463_v56 = vpack.c.bf16 %v8983_v0, %v8983_v0  ;;  %v6845_v0 = vld [vmem:[%s9725_s3 + $0x4f0] sm:$0xff] }
 0x1cc   :  { %v6822_v26 = vld [vmem:[%s9725_s3 + $0x438] sm:$0xff] }
 0x1cd   :  { %4683 = vmatpush.bf16.msra.mxu3 %v6775_v22  ;;  %v6830_v23 = vld [vmem:[%s9725_s3 + $0x478] sm:$0xff]  ;;  %v6837_v22 = vld [vmem:[%s9725_s3 + $0x4b0] sm:$0xff] }
 0x1ce   :  { %4644 = vmatpush.bf16.msra.mxu0 %v6751_v37  ;;  %4671 = vmatmul.bf16.vlgmr.msra.gmra.mxu2 %v2459_v57  ;;  %v2462_v37 = vpack.c.bf16 %v9039_v4, %v9039_v4  ;;  %v6844_v4 = vld [vmem:[%s9725_s3 + $0x4e8] sm:$0xff]  ;;  %v6843_v57 = vld [vmem:[%s9725_s3 + $0x4e0] sm:$0xff] }
 0x1cf   :  { %4715 = vmatpush.bf16.msrb.mxu2 %v6806_v20  ;;  %4657 = vmatpush.bf16.msra.mxu1 %v6759_v29  ;;  %v2464_v20 = vpack.c.bf16 %v9001_v7, %v9001_v7  ;;  %v6821_v7 = vld [vmem:[%s9725_s3 + $0x430] sm:$0xff] }
 0x1d0   :  { %4684 = vmatmul.bf16.vlgmr.msra.gmra.mxu3 %v2460_v11  ;;  %v6829_v29 = vld [vmem:[%s9725_s3 + $0x470] sm:$0xff]  ;;  %v6827_v11 = vld [vmem:[%s9725_s3 + $0x460] sm:$0xff] }
 0x1d1   :  { %4728 = vmatpush.bf16.msrb.mxu3 %v6814_v3  ;;  %4645 = vmatmul.bf16.vlgmr.msra.gmra.mxu0 %v2457_v19  ;;  %v2461_v3 = vpack.c.bf16 %v9036_v43, %v9036_v43  ;;  %v6836_v43 = vld [vmem:[%s9725_s3 + $0x4a8] sm:$0xff]  ;;  %v6842_v19 = vld [vmem:[%s9725_s3 + $0x4d8] sm:$0xff] }
 0x1d2   :  { %4689 = vmatpush.bf16.msrb.mxu0 %v6790_v28  ;;  %4658 = vmatmul.bf16.vlgmr.msra.gmra.mxu1 %v2458_v2  ;;  %v6820_v28 = vld [vmem:[%s9725_s3 + $0x428] sm:$0xff]  ;;  %v6826_v2 = vld [vmem:[%s9725_s3 + $0x458] sm:$0xff] }
 0x1d3   :  { %4702 = vmatpush.bf16.msrb.mxu1 %v6798_v33  ;;  %4716 = vmatpush.bf16.msrb.mxu2 %v6805_v35  ;;  %v6828_v33 = vld [vmem:[%s9725_s3 + $0x468] sm:$0xff]  ;;  %v6835_v35 = vld [vmem:[%s9725_s3 + $0x4a0] sm:$0xff] }
 0x1d5   :  { %4729 = vmatpush.bf16.msrb.mxu3 %v6813_v59  ;;  %v6819_v59 = vld [vmem:[%s9725_s3 + $0x420] sm:$0xff] }
 0x1d6   :  { %4690 = vmatpush.bf16.msrb.mxu0 %v6789_v62  ;;  %v6834_v62 = vld [vmem:[%s9725_s3 + $0x498] sm:$0xff] }
 0x1d7   :  { %4703 = vmatpush.bf16.msrb.mxu1 %v6797_v14  ;;  %4717 = vmatpush.bf16.msrb.mxu2 %v6804_v17  ;;  %v6818_v14 = vld [vmem:[%s9725_s3 + $0x418] sm:$0xff]  ;;  %v6833_v17 = vld [vmem:[%s9725_s3 + $0x490] sm:$0xff] }
 0x1d9   :  { %4730 = vmatpush.bf16.msrb.mxu3 %v6812_v39  ;;  %v6841_v39 = vld [vmem:[%s9725_s3 + $0x4d0] sm:$0xff] }
 0x1da   :  { %4691 = vmatpush.bf16.msrb.mxu0 %v6788_v63  ;;  %v6817_v63 = vld [vmem:[%s9725_s3 + $0x410] sm:$0xff] }
 0x1db   :  { %4704 = vmatpush.bf16.msrb.mxu1 %v6796_v5  ;;  %4718 = vmatpush.bf16.msrb.mxu2 %v6803_v53  ;;  %v6825_v5 = vld [vmem:[%s9725_s3 + $0x450] sm:$0xff]  ;;  %v6832_v53 = vld [vmem:[%s9725_s3 + $0x488] sm:$0xff] }
 0x1dd   :  { %4731 = vmatpush.bf16.msrb.mxu3 %v6811_v12  ;;  %v6840_v12 = vld [vmem:[%s9725_s3 + $0x4c8] sm:$0xff] }
 0x1de   :  { %4692 = vmatpush.bf16.msrb.mxu0 %v6787_v1  ;;  %v6816_v1 = vld [vmem:[%s9725_s3 + $0x408] sm:$0xff] }
 0x1df   :  { %4705 = vmatpush.bf16.msrb.mxu1 %v6795_v54  ;;  %4719 = vmatpush.bf16.msrb.mxu2 %v6802_v42  ;;  %v6824_v54 = vld [vmem:[%s9725_s3 + $0x448] sm:$0xff]  ;;  %v6831_v42 = vld [vmem:[%s9725_s3 + $0x480] sm:$0xff] }
 0x1e1   :  { %4732 = vmatpush.bf16.msrb.mxu3 %v6810_v10  ;;  %v6839_v10 = vld [vmem:[%s9725_s3 + $0x4c0] sm:$0xff] }
 0x1e2   :  { %4693 = vmatpush.bf16.msrb.mxu0 %v6786_v31  ;;  %v6870_v31 = vld [vmem:[%s9725_s3 + $0x5b8] sm:$0xff] }
 0x1e3   :  { %4706 = vmatpush.bf16.msrb.mxu1 %v6794_v51  ;;  %4720 = vmatpush.bf16.msrb.mxu2 %v6801_v48  ;;  %v6878_v51 = vld [vmem:[%s9725_s3 + $0x5f8] sm:$0xff]  ;;  %v6815_v48 = vld [vmem:[%s9725_s3 + $0x400] sm:$0xff] }
 0x1e5   :  { %4733 = vmatpush.bf16.msrb.mxu3 %v6809_v36  ;;  %v6823_v36 = vld [vmem:[%s9725_s3 + $0x440] sm:$0xff] }
 0x1e6   :  { %4694 = vmatpush.bf16.msrb.mxu0 %v6785_v18  ;;  %v6854_v18 = vld [vmem:[%s9725_s3 + $0x538] sm:$0xff] }
 0x1e7   :  { %4707 = vmatpush.bf16.msrb.mxu1 %v6793_v6  ;;  %4721 = vmatpush.bf16.msrb.mxu2 %v6800_v16  ;;  %v2467_v6 = vpack.c.bf16 %v9092_v13, %v9092_v13  ;;  %v6862_v16 = vld [vmem:[%s9725_s3 + $0x578] sm:$0xff]  ;;  %v6877_v13 = vld [vmem:[%s9725_s3 + $0x5f0] sm:$0xff] }
 0x1e9   :  { %4734 = vmatpush.bf16.msrb.mxu3 %v6808_v8  ;;  %v2468_v8 = vpack.c.bf16 %v9095_v55, %v9095_v55  ;;  %v6853_v55 = vld [vmem:[%s9725_s3 + $0x530] sm:$0xff] }
 0x1ea   :  { %4695 = vmatpush.bf16.msrb.mxu0 %v6784_v44  ;;  %v6869_v44 = vld [vmem:[%s9725_s3 + $0x5b0] sm:$0xff] }
 0x1eb   :  { %4708 = vmatpush.bf16.msrb.mxu1 %v6792_v24  ;;  %4722 = vmatpush.bf16.msrb.mxu2 %v6799_v60  ;;  %v2465_v24 = vpack.c.bf16 %v9111_v52, %v9111_v52  ;;  %v2466_v60 = vpack.c.bf16 %v9114_v21, %v9114_v21  ;;  %v6868_v52 = vld [vmem:[%s9725_s3 + $0x5a8] sm:$0xff] }
 0x1ec   :  { %v6876_v21 = vld [vmem:[%s9725_s3 + $0x5e8] sm:$0xff] }
 0x1ed   :  { %4735 = vmatpush.bf16.msrb.mxu3 %v6807_v58  ;;  %v6861_v58 = vld [vmem:[%s9725_s3 + $0x570] sm:$0xff] }
 0x1ee   :  { %4696 = vmatpush.bf16.msrb.mxu0 %v6783_v30  ;;  %4723 = vmatmul.bf16.vlgmr.msrb.gmra.mxu2 %v2463_v56  ;;  %v6867_v30 = vld [vmem:[%s9725_s3 + $0x5a0] sm:$0xff] }
 0x1ef   :  { %4767 = vmatpush.bf16.msra.mxu2 %v6838_v46  ;;  %4709 = vmatpush.bf16.msrb.mxu1 %v6791_v9  ;;  %v6852_v46 = vld [vmem:[%s9725_s3 + $0x528] sm:$0xff]  ;;  %v6875_v9 = vld [vmem:[%s9725_s3 + $0x5e0] sm:$0xff] }
 0x1f0   :  { %4736 = vmatmul.bf16.vlgmr.msrb.gmra.mxu3 %v2464_v20  ;;  %v6859_v56 = vld [vmem:[%s9725_s3 + $0x560] sm:$0xff]  ;;  %v6874_v20 = vld [vmem:[%s9725_s3 + $0x5d8] sm:$0xff] }
 0x1f1   :  { %4780 = vmatpush.bf16.msra.mxu3 %v6846_v34  ;;  %4697 = vmatmul.bf16.vlgmr.msrb.gmra.mxu0 %v2461_v3  ;;  %v6860_v34 = vld [vmem:[%s9725_s3 + $0x568] sm:$0xff]  ;;  %v6858_v3 = vld [vmem:[%s9725_s3 + $0x558] sm:$0xff] }
 0x1f2   :  { %4741 = vmatpush.bf16.msra.mxu0 %v6822_v26  ;;  %4710 = vmatmul.bf16.vlgmr.msrb.gmra.mxu1 %v2462_v37  ;;  %v6851_v26 = vld [vmem:[%s9725_s3 + $0x520] sm:$0xff]  ;;  %v6873_v37 = vld [vmem:[%s9725_s3 + $0x5d0] sm:$0xff] }
 0x1f3   :  { %4754 = vmatpush.bf16.msra.mxu1 %v6830_v23  ;;  %4768 = vmatpush.bf16.msra.mxu2 %v6837_v22  ;;  %v6866_v23 = vld [vmem:[%s9725_s3 + $0x598] sm:$0xff] }
 0x1f4   :  { %v6850_v22 = vld [vmem:[%s9725_s3 + $0x518] sm:$0xff] }
 0x1f5   :  { %4781 = vmatpush.bf16.msra.mxu3 %v6845_v0  ;;  %v6865_v0 = vld [vmem:[%s9725_s3 + $0x590] sm:$0xff] }
 0x1f6   :  { %4742 = vmatpush.bf16.msra.mxu0 %v6821_v7  ;;  %v6849_v7 = vld [vmem:[%s9725_s3 + $0x510] sm:$0xff] }
 0x1f7   :  { %4755 = vmatpush.bf16.msra.mxu1 %v6829_v29  ;;  %4769 = vmatpush.bf16.msra.mxu2 %v6836_v43  ;;  %v6857_v29 = vld [vmem:[%s9725_s3 + $0x550] sm:$0xff]  ;;  %v6864_v43 = vld [vmem:[%s9725_s3 + $0x588] sm:$0xff] }
 0x1f9   :  { %4782 = vmatpush.bf16.msra.mxu3 %v6844_v4  ;;  %v6872_v4 = vld [vmem:[%s9725_s3 + $0x5c8] sm:$0xff] }
 0x1fa   :  { %4743 = vmatpush.bf16.msra.mxu0 %v6820_v28  ;;  %v6848_v28 = vld [vmem:[%s9725_s3 + $0x508] sm:$0xff] }
 0x1fb   :  { %4756 = vmatpush.bf16.msra.mxu1 %v6828_v33  ;;  %4770 = vmatpush.bf16.msra.mxu2 %v6835_v35  ;;  %v6856_v33 = vld [vmem:[%s9725_s3 + $0x548] sm:$0xff]  ;;  %v6863_v35 = vld [vmem:[%s9725_s3 + $0x580] sm:$0xff] }
 0x1fd   :  { %4783 = vmatpush.bf16.msra.mxu3 %v6843_v57  ;;  %v6871_v57 = vld [vmem:[%s9725_s3 + $0x5c0] sm:$0xff] }
 0x1fe   :  { %4744 = vmatpush.bf16.msra.mxu0 %v6819_v59  ;;  %v6902_v59 = vld [vmem:[%s9725_s3 + $0x6b8] sm:$0xff] }
 0x1ff   :  { %4757 = vmatpush.bf16.msra.mxu1 %v6827_v11  ;;  %4771 = vmatpush.bf16.msra.mxu2 %v6834_v62  ;;  %v6910_v11 = vld [vmem:[%s9725_s3 + $0x6f8] sm:$0xff]  ;;  %v6847_v62 = vld [vmem:[%s9725_s3 + $0x500] sm:$0xff] }
 0x201   :  { %4784 = vmatpush.bf16.msra.mxu3 %v6842_v19  ;;  %v6855_v19 = vld [vmem:[%s9725_s3 + $0x540] sm:$0xff] }
 0x202   :  { %4745 = vmatpush.bf16.msra.mxu0 %v6818_v14  ;;  %v6886_v14 = vld [vmem:[%s9725_s3 + $0x638] sm:$0xff] }
 0x203   :  { %4758 = vmatpush.bf16.msra.mxu1 %v6826_v2  ;;  %4772 = vmatpush.bf16.msra.mxu2 %v6833_v17  ;;  %v2471_v2 = vpack.c.bf16 %v9076_v15, %v9076_v15  ;;  %v6894_v17 = vld [vmem:[%s9725_s3 + $0x678] sm:$0xff]  ;;  %v6909_v15 = vld [vmem:[%s9725_s3 + $0x6f0] sm:$0xff] }
 0x205   :  { %4785 = vmatpush.bf16.msra.mxu3 %v6841_v39  ;;  %v2472_v39 = vpack.c.bf16 %v9079_v47, %v9079_v47  ;;  %v6885_v47 = vld [vmem:[%s9725_s3 + $0x630] sm:$0xff] }
 0x206   :  { %4746 = vmatpush.bf16.msra.mxu0 %v6817_v63  ;;  %v6901_v63 = vld [vmem:[%s9725_s3 + $0x6b0] sm:$0xff] }
 0x207   :  { %4759 = vmatpush.bf16.msra.mxu1 %v6825_v5  ;;  %4773 = vmatpush.bf16.msra.mxu2 %v6832_v53  ;;  %v2469_v5 = vpack.c.bf16 %v9107_v27, %v9107_v27  ;;  %v2470_v53 = vpack.c.bf16 %v9118_v32, %v9118_v32  ;;  %v6900_v27 = vld [vmem:[%s9725_s3 + $0x6a8] sm:$0xff]  ;;  %v6948_v32 = vld [vmem:[%s9726_s4] ss:$0 sm:$0xff] }
 0x209   :  { %4786 = vmatpush.bf16.msra.mxu3 %v6840_v12  ;;  %v6893_v12 = vld [vmem:[%s9725_s3 + $0x670] sm:$0xff] }
 0x20a   :  { %4747 = vmatpush.bf16.msra.mxu0 %v6816_v1  ;;  %v6908_v1 = vld [vmem:[%s9725_s3 + $0x6e8] sm:$0xff] }
 0x20b   :  { %4760 = vmatpush.bf16.msra.mxu1 %v6824_v54  ;;  %4774 = vmatpush.bf16.msra.mxu2 %v6831_v42  ;;  %v6884_v54 = vld [vmem:[%s9725_s3 + $0x628] sm:$0xff] }
 0x20c   :  { %v6892_v42 = vld [vmem:[%s9725_s3 + $0x668] sm:$0xff] }
 0x20d   :  { %4787 = vmatpush.bf16.msra.mxu3 %v6839_v10 }
 0x20e   :  { %4748 = vmatpush.bf16.msra.mxu0 %v6815_v48  ;;  %4775 = vmatmul.bf16.vlgmr.msra.gmra.mxu2 %v2467_v6  ;;  %v6899_v48 = vld [vmem:[%s9725_s3 + $0x6a0] sm:$0xff] }
 0x20f   :  { %4819 = vmatpush.bf16.msrb.mxu2 %v6870_v31  ;;  %4761 = vmatpush.bf16.msra.mxu1 %v6823_v36  ;;  %v6907_v36 = vld [vmem:[%s9725_s3 + $0x6e0] sm:$0xff] }
 0x210   :  { %4788 = vmatmul.bf16.vlgmr.msra.gmra.mxu3 %v2468_v8  ;;  %v6891_v8 = vld [vmem:[%s9725_s3 + $0x660] sm:$0xff] }
 0x211   :  { %4832 = vmatpush.bf16.msrb.mxu3 %v6878_v51  ;;  %4749 = vmatmul.bf16.vlgmr.msra.gmra.mxu0 %v2465_v24 }
 0x212   :  { %4793 = vmatpush.bf16.msrb.mxu0 %v6854_v18  ;;  %4762 = vmatmul.bf16.vlgmr.msra.gmra.mxu1 %v2466_v60  ;;  %v6906_v60 = vld [vmem:[%s9725_s3 + $0x6d8] sm:$0xff] }
 0x213   :  { %4806 = vmatpush.bf16.msrb.mxu1 %v6862_v16  ;;  %4820 = vmatpush.bf16.msrb.mxu2 %v6869_v44  ;;  %v6883_v16 = vld [vmem:[%s9725_s3 + $0x620] sm:$0xff] }
 0x215   :  { %4833 = vmatpush.bf16.msrb.mxu3 %v6877_v13  ;;  %v6898_v13 = vld [vmem:[%s9725_s3 + $0x698] sm:$0xff] }
 0x216   :  { %4794 = vmatpush.bf16.msrb.mxu0 %v6853_v55 }
 0x217   :  { %4807 = vmatpush.bf16.msrb.mxu1 %v6861_v58  ;;  %4821 = vmatpush.bf16.msrb.mxu2 %v6868_v52  ;;  %v6882_v58 = vld [vmem:[%s9725_s3 + $0x618] sm:$0xff] }
 0x218   :  { %v6890_v52 = vld [vmem:[%s9725_s3 + $0x658] sm:$0xff] }
 0x219   :  { %4834 = vmatpush.bf16.msrb.mxu3 %v6876_v21 }
 0x21a   :  { %4795 = vmatpush.bf16.msrb.mxu0 %v6852_v46 }
 0x21b   :  { %4808 = vmatpush.bf16.msrb.mxu1 %v6860_v34  ;;  %4822 = vmatpush.bf16.msrb.mxu2 %v6867_v30  ;;  %v6897_v34 = vld [vmem:[%s9725_s3 + $0x690] sm:$0xff] }
 0x21c   :  { %v6905_v30 = vld [vmem:[%s9725_s3 + $0x6d0] sm:$0xff] }
 0x21d   :  { %4835 = vmatpush.bf16.msrb.mxu3 %v6875_v9 }
 0x21e   :  { %4796 = vmatpush.bf16.msrb.mxu0 %v6851_v26  ;;  %v6881_v26 = vld [vmem:[%s9725_s3 + $0x610] sm:$0xff] }
 0x21f   :  { %4809 = vmatpush.bf16.msrb.mxu1 %v6859_v56  ;;  %4823 = vmatpush.bf16.msrb.mxu2 %v6866_v23  ;;  %v6889_v56 = vld [vmem:[%s9725_s3 + $0x650] sm:$0xff] }
 0x221   :  { %4836 = vmatpush.bf16.msrb.mxu3 %v6874_v20  ;;  %v6896_v20 = vld [vmem:[%s9725_s3 + $0x688] sm:$0xff] }
 0x222   :  { %4797 = vmatpush.bf16.msrb.mxu0 %v6850_v22  ;;  %v6904_v22 = vld [vmem:[%s9725_s3 + $0x6c8] sm:$0xff] }
 0x223   :  { %4810 = vmatpush.bf16.msrb.mxu1 %v6858_v3  ;;  %4824 = vmatpush.bf16.msrb.mxu2 %v6865_v0  ;;  %v6880_v3 = vld [vmem:[%s9725_s3 + $0x608] sm:$0xff] }
 0x224   :  { %v6888_v0 = vld [vmem:[%s9725_s3 + $0x648] sm:$0xff] }
 0x225   :  { %4837 = vmatpush.bf16.msrb.mxu3 %v6873_v37 }
 0x226   :  { %4798 = vmatpush.bf16.msrb.mxu0 %v6849_v7 }
 0x227   :  { %4811 = vmatpush.bf16.msrb.mxu1 %v6857_v29  ;;  %4825 = vmatpush.bf16.msrb.mxu2 %v6864_v43  ;;  %v6895_v43 = vld [vmem:[%s9725_s3 + $0x680] sm:$0xff] }
 0x229   :  { %4838 = vmatpush.bf16.msrb.mxu3 %v6872_v4  ;;  %v6903_v4 = vld [vmem:[%s9725_s3 + $0x6c0] sm:$0xff] }
 0x22a   :  { %4799 = vmatpush.bf16.msrb.mxu0 %v6848_v28  ;;  %v6934_v28 = vld [vmem:[%s9725_s3 + $0x7b8] sm:$0xff] }
 0x22b   :  { %4812 = vmatpush.bf16.msrb.mxu1 %v6856_v33  ;;  %4826 = vmatpush.bf16.msrb.mxu2 %v6863_v35 }
 0x22d   :  { %4839 = vmatpush.bf16.msrb.mxu3 %v6871_v57  ;;  %v6942_v57 = vld [vmem:[%s9725_s3 + $0x7f8] sm:$0xff] }
 0x22e   :  { %4800 = vmatpush.bf16.msrb.mxu0 %v6847_v62  ;;  %4827 = vmatmul.bf16.vlgmr.msrb.gmra.mxu2 %v2471_v2  ;;  %v4542_v10 = vpop.f32.mrf.mxu0  ;;  %v2475_v2 = vpack.c.bf16 %v9130_v45, %v9130_v45  ;;  %v6941_v45 = vld [vmem:[%s9725_s3 + $0x7f0] sm:$0xff] }
 0x22f   :  { %4871 = vmatpush.bf16.msra.mxu2 %v6902_v59  ;;  %4813 = vmatpush.bf16.msrb.mxu1 %v6855_v19  ;;  %v4543_v31 = vadd.f32 %v6948_v32, %v4542_v10  ;;  %v4555_v51 = vpop.f32.mrf.mxu1  ;;  %v4568_v18 = vpop.f32.mrf.mxu2  ;;  %v6879_v59 = vld [vmem:[%s9725_s3 + $0x600] sm:$0xff]  ;;  %v6932_v32 = vld [vmem:[%s9725_s3 + $0x7a8] sm:$0xff] }
 0x230   :  { %4840 = vmatmul.bf16.vlgmr.msrb.gmra.mxu3 %v2472_v39  ;;  %v6931_v10 = vld [vmem:[%s9725_s3 + $0x7a0] sm:$0xff] }
 0x231   :  { %4884 = vmatpush.bf16.msra.mxu3 %v6910_v11  ;;  %4801 = vmatmul.bf16.vlgmr.msrb.gmra.mxu0 %v2469_v5  ;;  %v4556_v6 = vadd.f32 %v4555_v51, %v4543_v31  ;;  %v6887_v11 = vld [vmem:[%s9725_s3 + $0x640] sm:$0xff]  ;;  %v6933_v5 = vld [vmem:[%s9725_s3 + $0x7b0] sm:$0xff] }
 0x232   :  { %4845 = vmatpush.bf16.msra.mxu0 %v6886_v14  ;;  %4814 = vmatmul.bf16.vlgmr.msrb.gmra.mxu1 %v2470_v53  ;;  %v6918_v14 = vld [vmem:[%s9725_s3 + $0x738] sm:$0xff]  ;;  %v6939_v31 = vld [vmem:[%s9725_s3 + $0x7e0] sm:$0xff] }
 0x233   :  { %4858 = vmatpush.bf16.msra.mxu1 %v6894_v17  ;;  %4872 = vmatpush.bf16.msra.mxu2 %v6901_v63  ;;  %v4569_v44 = vadd.f32 %v4568_v18, %v4556_v6  ;;  %v4581_v24 = vpop.f32.mrf.mxu3  ;;  %v6926_v17 = vld [vmem:[%s9725_s3 + $0x778] sm:$0xff]  ;;  %v2476_v63 = vpack.c.bf16 %v9133_v49, %v9133_v49  ;;  %v6923_v6 = vld [vmem:[%s9725_s3 + $0x760] sm:$0xff] }
 0x235   :  { %4885 = vmatpush.bf16.msra.mxu3 %v6909_v15  ;;  %v4582_v55 = vadd.f32 %v4581_v24, %v4569_v44  ;;  %v2473_v15 = vpack.c.bf16 %v9137_v38, %v9137_v38  ;;  %v6925_v38 = vld [vmem:[%s9725_s3 + $0x770] sm:$0xff]  ;;  %v6938_v44 = vld [vmem:[%s9725_s3 + $0x7d8] sm:$0xff] }
 0x236   :  { %4846 = vmatpush.bf16.msra.mxu0 %v6885_v47  ;;  %v4544_v21 = vpop.f32.mrf.mxu0  ;;  %v2474_v47 = vpack.c.bf16 %v9149_v50, %v9149_v50  ;;  %v6940_v50 = vld [vmem:[%s9725_s3 + $0x7e8] sm:$0xff] }
 0x237   :  { %4859 = vmatpush.bf16.msra.mxu1 %v6893_v12  ;;  %4873 = vmatpush.bf16.msra.mxu2 %v6900_v27  ;;  %v4557_v46 = vpop.f32.mrf.mxu1  ;;  %v4570_v9 = vpop.f32.mrf.mxu2  ;;  %v6917_v12 = vld [vmem:[%s9725_s3 + $0x730] sm:$0xff] }
 0x238   :  { %v6937_v46 = vld [vmem:[%s9725_s3 + $0x7d0] sm:$0xff] }
 0x239   :  { %4886 = vmatpush.bf16.msra.mxu3 %v6908_v1 }
 0x23a   :  { %4847 = vmatpush.bf16.msra.mxu0 %v6884_v54  ;;  %v6916_v54 = vld [vmem:[%s9725_s3 + $0x728] sm:$0xff] }
 0x23b   :  { %4860 = vmatpush.bf16.msra.mxu1 %v6892_v42  ;;  %4874 = vmatpush.bf16.msra.mxu2 %v6899_v48  ;;  %v4583_v23 = vpop.f32.mrf.mxu3  ;;  %v6924_v42 = vld [vmem:[%s9725_s3 + $0x768] sm:$0xff]  ;;  %v6915_v48 = vld [vmem:[%s9725_s3 + $0x720] sm:$0xff] }
 0x23c   :  { %v6936_v23 = vld [vmem:[%s9725_s3 + $0x7c8] sm:$0xff] }
 0x23d   :  { %4887 = vmatpush.bf16.msra.mxu3 %v6907_v36 }
 0x23e   :  { %4848 = vmatpush.bf16.msra.mxu0 %v6883_v16  ;;  %v4594_v37 = vpop.f32.mrf.mxu0  ;;  %v6930_v16 = vld [vmem:[%s9725_s3 + $0x798] sm:$0xff] }
 0x23f   :  { %4861 = vmatpush.bf16.msra.mxu1 %v6891_v8  ;;  %4875 = vmatpush.bf16.msra.mxu2 %v6898_v13  ;;  %v4595_v7 = vadd.f32 %v4594_v37, %v4582_v55  ;;  %v4607_v29 = vpop.f32.mrf.mxu1  ;;  %v4620_v33 = vpop.f32.mrf.mxu2  ;;  %v6914_v13 = vld [vmem:[%s9725_s3 + $0x718] sm:$0xff]  ;;  %v6927_v37 = vld [vmem:[%s9725_s3 + $0x780] sm:$0xff] }
 0x241   :  { %4888 = vmatpush.bf16.msra.mxu3 %v6906_v60  ;;  %v4608_v35 = vadd.f32 %v4607_v29, %v4595_v7  ;;  %v6935_v7 = vld [vmem:[%s9725_s3 + $0x7c0] sm:$0xff] }
 0x242   :  { %4849 = vmatpush.bf16.msra.mxu0 %v6882_v58  ;;  %v6922_v58 = vld [vmem:[%s9725_s3 + $0x758] sm:$0xff]  ;;  %v6911_v29 = vld [vmem:[%s9725_s3 + $0x700] sm:$0xff] }
 0x243   :  { %4862 = vmatpush.bf16.msra.mxu1 %v6890_v52  ;;  %4876 = vmatpush.bf16.msra.mxu2 %v6897_v34  ;;  %v4621_v62 = vadd.f32 %v4620_v33, %v4608_v35  ;;  %v4633_v19 = vpop.f32.mrf.mxu3  ;;  %v6929_v52 = vld [vmem:[%s9725_s3 + $0x790] sm:$0xff]  ;;  %v2477_v33 = vpack.c.bf16 %v9161_v25, %v9161_v25  ;;  %v2478_v35 = vpack.c.bf16 %v9171_v41, %v9171_v41 }
 0x245   :  { %4889 = vmatpush.bf16.msra.mxu3 %v6905_v30  ;;  %v4634_v39 = vadd.f32 %v4633_v19, %v4621_v62  ;;  %v6913_v30 = vld [vmem:[%s9725_s3 + $0x710] sm:$0xff] }
 0x246   :  { %4850 = vmatpush.bf16.msra.mxu0 %v6881_v26  ;;  %v4596_v53 = vpop.f32.mrf.mxu0  ;;  %v6921_v26 = vld [vmem:[%s9725_s3 + $0x750] sm:$0xff] }
 0x247   :  { %4863 = vmatpush.bf16.msra.mxu1 %v6889_v56  ;;  %4877 = vmatpush.bf16.msra.mxu2 %v6896_v20  ;;  %v4609_v49 = vpop.f32.mrf.mxu1  ;;  %v4622_v27 = vpop.f32.mrf.mxu2  ;;  %v6928_v56 = vld [vmem:[%s9725_s3 + $0x788] sm:$0xff] }
 0x249   :  { %4890 = vmatpush.bf16.msra.mxu3 %v6904_v22  ;;  %v6912_v22 = vld [vmem:[%s9725_s3 + $0x708] sm:$0xff] }
 0x24a   :  { %4851 = vmatpush.bf16.msra.mxu0 %v6880_v3 }
 0x24b   :  { %4864 = vmatpush.bf16.msra.mxu1 %v6888_v0  ;;  %4878 = vmatpush.bf16.msra.mxu2 %v6895_v43  ;;  %v4635_v1 = vpop.f32.mrf.mxu3  ;;  %v6920_v0 = vld [vmem:[%s9725_s3 + $0x748] sm:$0xff]  ;;  %v6919_v43 = vld [vmem:[%s9725_s3 + $0x740] sm:$0xff] }
 0x24d   :  { %4891 = vmatpush.bf16.msra.mxu3 %v6903_v4  ;;  %v2479_v4 = vpack.c.bf16 %v9153_v40, %v9153_v40 }
 0x24e   :  { %4852 = vmatpush.bf16.msra.mxu0 %v6879_v59  ;;  %4879 = vmatmul.bf16.vlgmr.msra.gmra.mxu2 %v2475_v2  ;;  %v4646_v51 = vpop.f32.mrf.mxu0 }
 0x24f   :  { %4923 = vmatpush.bf16.msrb.mxu2 %v6934_v28  ;;  %4865 = vmatpush.bf16.msra.mxu1 %v6887_v11  ;;  %v4647_v36 = vadd.f32 %v4646_v51, %v4634_v39  ;;  %v4659_v18 = vpop.f32.mrf.mxu1  ;;  %v2480_v28 = vpack.c.bf16 %v9157_v61, %v9157_v61 }
 0x250   :  { %4892 = vmatmul.bf16.vlgmr.msra.gmra.mxu3 %v2476_v63 }
 0x251   :  { %4936 = vmatpush.bf16.msrb.mxu3 %v6942_v57  ;;  %4853 = vmatmul.bf16.vlgmr.msra.gmra.mxu0 %v2473_v15  ;;  %v4660_v8 = vadd.f32 %v4659_v18, %v4647_v36  ;;  %v4672_v24 = vpop.f32.mrf.mxu2 }
 0x252   :  { %4897 = vmatpush.bf16.msrb.mxu0 %v6918_v14  ;;  %4866 = vmatmul.bf16.vlgmr.msra.gmra.mxu1 %v2474_v47 }
 0x253   :  { %4910 = vmatpush.bf16.msrb.mxu1 %v6926_v17  ;;  %4924 = vmatpush.bf16.msrb.mxu2 %v6933_v5  ;;  %v4673_v60 = vadd.f32 %v4672_v24, %v4660_v8  ;;  %v4685_v55 = vpop.f32.mrf.mxu3 }
 0x255   :  { %4937 = vmatpush.bf16.msrb.mxu3 %v6941_v45  ;;  %v4686_v21 = vadd.f32 %v4685_v55, %v4673_v60 }
 0x256   :  { %4898 = vmatpush.bf16.msrb.mxu0 %v6917_v12  ;;  %v4648_v34 = vpop.f32.mrf.mxu0 }
 0x257   :  { %4911 = vmatpush.bf16.msrb.mxu1 %v6925_v38  ;;  %4925 = vmatpush.bf16.msrb.mxu2 %v6932_v32  ;;  %v4661_v9 = vpop.f32.mrf.mxu1 }
 0x259   :  { %4938 = vmatpush.bf16.msrb.mxu3 %v6940_v50  ;;  %v4674_v20 = vpop.f32.mrf.mxu2 }
 0x25a   :  { %4899 = vmatpush.bf16.msrb.mxu0 %v6916_v54 }
 0x25b   :  { %4912 = vmatpush.bf16.msrb.mxu1 %v6924_v42  ;;  %4926 = vmatpush.bf16.msrb.mxu2 %v6931_v10  ;;  %v4687_v3 = vpop.f32.mrf.mxu3 }
 0x25d   :  { %4939 = vmatpush.bf16.msrb.mxu3 %v6939_v31 }
 0x25e   :  { %4900 = vmatpush.bf16.msrb.mxu0 %v6915_v48 }
 0x25f   :  { %4913 = vmatpush.bf16.msrb.mxu1 %v6923_v6  ;;  %4927 = vmatpush.bf16.msrb.mxu2 %v6930_v16 }
 0x261   :  { %4940 = vmatpush.bf16.msrb.mxu3 %v6938_v44 }
 0x262   :  { %4901 = vmatpush.bf16.msrb.mxu0 %v6914_v13 }
 0x263   :  { %4914 = vmatpush.bf16.msrb.mxu1 %v6922_v58  ;;  %4928 = vmatpush.bf16.msrb.mxu2 %v6929_v52 }
 0x265   :  { %4941 = vmatpush.bf16.msrb.mxu3 %v6937_v46 }
 0x266   :  { %4902 = vmatpush.bf16.msrb.mxu0 %v6913_v30 }
 0x267   :  { %4915 = vmatpush.bf16.msrb.mxu1 %v6921_v26  ;;  %4929 = vmatpush.bf16.msrb.mxu2 %v6928_v56 }
 0x269   :  { %4942 = vmatpush.bf16.msrb.mxu3 %v6936_v23 }
 0x26a   :  { %4903 = vmatpush.bf16.msrb.mxu0 %v6912_v22 }
 0x26b   :  { %4916 = vmatpush.bf16.msrb.mxu1 %v6920_v0  ;;  %4930 = vmatpush.bf16.msrb.mxu2 %v6927_v37 }
 0x26d   :  { %4943 = vmatpush.bf16.msrb.mxu3 %v6935_v7 }
 0x26e   :  { %4904 = vmatpush.bf16.msrb.mxu0 %v6911_v29  ;;  %4931 = vmatmul.bf16.vlgmr.msrb.gmra.mxu2 %v2479_v4  ;;  %v4698_v57 = vpop.f32.mrf.mxu0 }
 0x26f   :  { %4917 = vmatpush.bf16.msrb.mxu1 %v6919_v43  ;;  %v4699_v59 = vadd.f32 %v4698_v57, %v4686_v21  ;;  %v4711_v11 = vpop.f32.mrf.mxu1 }
 0x270   :  { %4944 = vmatmul.bf16.vlgmr.msrb.gmra.mxu3 %v2480_v28 }
 0x271   :  { %4905 = vmatmul.bf16.vlgmr.msrb.gmra.mxu0 %v2477_v33  ;;  %v4712_v62 = vadd.f32 %v4711_v11, %v4699_v59  ;;  %v4724_v40 = vpop.f32.mrf.mxu2 }
 0x272   :  { %4918 = vmatmul.bf16.vlgmr.msrb.gmra.mxu1 %v2478_v35 }
 0x273   :  { %v4725_v19 = vadd.f32 %v4724_v40, %v4712_v62  ;;  %v4737_v14 = vpop.f32.mrf.mxu3 }
 0x275   :  { %v4738_v2 = vadd.f32 %v4737_v14, %v4725_v19 }
 0x276   :  { %v4700_v61 = vpop.f32.mrf.mxu0 }
 0x277   :  { %v4713_v17 = vpop.f32.mrf.mxu1 }
 0x279   :  { %v4726_v39 = vpop.f32.mrf.mxu2 }
 0x27b   :  { %v4739_v63 = vpop.f32.mrf.mxu3 }
 0x28e   :  { %v4750_v5 = vpop.f32.mrf.mxu0 }
 0x28f   :  { %v4751_v25 = vadd.f32 %v4750_v5, %v4738_v2  ;;  %v4763_v15 = vpop.f32.mrf.mxu1 }
 0x291   :  { %v4764_v45 = vadd.f32 %v4763_v15, %v4751_v25  ;;  %v4776_v53 = vpop.f32.mrf.mxu2 }
 0x293   :  { %v4777_v41 = vadd.f32 %v4776_v53, %v4764_v45  ;;  %v4789_v47 = vpop.f32.mrf.mxu3 }
 0x295   :  { %v4790_v49 = vadd.f32 %v4789_v47, %v4777_v41 }
 0x296   :  { %v4752_v12 = vpop.f32.mrf.mxu0 }
 0x297   :  { %v4765_v38 = vpop.f32.mrf.mxu1 }
 0x299   :  { %v4778_v27 = vpop.f32.mrf.mxu2 }
 0x29b   :  { %v4791_v32 = vpop.f32.mrf.mxu3 }
 0x2ae   :  { %v4802_v50 = vpop.f32.mrf.mxu0 }
 0x2af   :  { %v4815_v1 = vpop.f32.mrf.mxu1  ;;  %v4803_v6 = vadd.f32 %v4802_v50, %v4790_v49 }
 0x2b1   :  { %v4828_v54 = vpop.f32.mrf.mxu2  ;;  %v4816_v44 = vadd.f32 %v4815_v1, %v4803_v6 }
 0x2b3   :  { %v4841_v42 = vpop.f32.mrf.mxu3  ;;  %v4829_v60 = vadd.f32 %v4828_v54, %v4816_v44 }
 0x2b5   :  { %v4842_v52 = vadd.f32 %v4841_v42, %v4829_v60 }
 0x2b6   :  { %v4804_v10 = vpop.f32.mrf.mxu0 }
 0x2b7   :  { %v4817_v31 = vpop.f32.mrf.mxu1 }
 0x2b9   :  { %v4830_v51 = vpop.f32.mrf.mxu2 }
 0x2bb   :  { %v4843_v48 = vpop.f32.mrf.mxu3 }
 0x2ce   :  { %v4854_v36 = vpop.f32.mrf.mxu0 }
 0x2cf   :  { %v4867_v18 = vpop.f32.mrf.mxu1  ;;  %v4855_v21 = vadd.f32 %v4854_v36, %v4842_v52 }
 0x2d1   :  { %v4880_v16 = vpop.f32.mrf.mxu2  ;;  %v4868_v46 = vadd.f32 %v4867_v18, %v4855_v21 }
 0x2d3   :  { %v4893_v8 = vpop.f32.mrf.mxu3  ;;  %v4881_v34 = vadd.f32 %v4880_v16, %v4868_v46 }
 0x2d5   :  { %v4894_v30 = vadd.f32 %v4893_v8, %v4881_v34 }
 0x2d6   :  { %v4856_v24 = vpop.f32.mrf.mxu0 }
 0x2d7   :  { %v4869_v13 = vpop.f32.mrf.mxu1 }
 0x2d9   :  { %v4882_v55 = vpop.f32.mrf.mxu2 }
 0x2db   :  { %v4895_v58 = vpop.f32.mrf.mxu3 }
 0x2ee   :  { %v4906_v9 = vpop.f32.mrf.mxu0 }
 0x2ef   :  { %v4907_v26 = vadd.f32 %v4906_v9, %v4894_v30  ;;  %v4919_v56 = vpop.f32.mrf.mxu1 }
 0x2f1   :  { %v4920_v23 = vadd.f32 %v4919_v56, %v4907_v26  ;;  %v4932_v20 = vpop.f32.mrf.mxu2 }
 0x2f3   :  { %v4933_v22 = vadd.f32 %v4932_v20, %v4920_v23  ;;  %v4945_v3 = vpop.f32.mrf.mxu3 }
 0x2f5   :  { %v4946_v0 = vadd.f32 %v4945_v3, %v4933_v22 }
 0x2f6   :  { %v4908_v37 = vpop.f32.mrf.mxu0 }
 0x2f7   :  { %4949 = vst [vmem:[%s9727_s5] sm:$0xff] %v4946_v0  ;;  %v4921_v7 = vpop.f32.mrf.mxu1 }
 0x2f9   :  { %v4934_v29 = vpop.f32.mrf.mxu2 }
 0x2fb   :  { %v4947_v43 = vpop.f32.mrf.mxu3 }

</bundles_post_ra>
